<compile_context>
chip_gen: v7x
topology: tpu7x:2x2x1
jax: 0.10.0
libtpu: 0.0.40
codegen_flags: <defaults>
</compile_context>

<pallas_src>
import jax
import jax.numpy as jnp
from jax.experimental import pallas as pl
from jax.experimental.pallas import tpu as pltpu

NUM_CLASSES = 10


# ----------------------------------------------------------------------------
# Kernels
# ----------------------------------------------------------------------------
def conv_relu_pool_kernel(p_ref, w_ref, b_ref, o_ref):
    """Fused conv (im2col matmul over the 4 pool positions) + bias + ReLU +
    2x2 max-pool.

    p_ref : (Kp, 4*tn) bf16  patch columns, ordered [pos0 | pos1 | pos2 | pos3]
    w_ref : (Cout, Kp) bf16
    b_ref : (Cout, 1)  f32
    o_ref : (Cout, tn) bf16  pooled output (lane-dense: tn multiple of 128)

    The 4-position dot is split in two halves with a running max so the live
    f32 intermediate is (Cout, 2*tn) instead of (Cout, 4*tn).
    """
    tn = o_ref.shape[1]
    w = w_ref[...]
    b = b_ref[...]

    z01 = jnp.dot(w, p_ref[:, : 2 * tn], preferred_element_type=jnp.float32)
    z01 = jnp.maximum(z01 + b, 0.0)
    m = jnp.maximum(z01[:, :tn], z01[:, tn:])

    z23 = jnp.dot(w, p_ref[:, 2 * tn:], preferred_element_type=jnp.float32)
    z23 = jnp.maximum(z23 + b, 0.0)
    m = jnp.maximum(m, jnp.maximum(z23[:, :tn], z23[:, tn:]))

    o_ref[...] = m.astype(o_ref.dtype)


def fused_mlp_kernel(x_ref, w1_ref, b1_ref, w2_ref, b2_ref, w3_ref, b3_ref,
                     o_ref, acc_ref):
    """fc1 -> relu -> fc2 -> relu -> fc3 in one pallas_call.

    Grid = (batch tiles, fc1-OUT tiles).  Each inner step computes one fc1
    slice (bf16 x, bf16 W, f32 acc) and accumulates its fc2 partial product
    into an f32 scratch; the last inner step adds fc2 bias, applies ReLU and
    runs fc3 (OUT zero-padded to a lane-dense 128).
    """
    k = pl.program_id(1)

    @pl.when(k == 0)
    def _init():
        acc_ref[...] = jnp.zeros_like(acc_ref)

    h1 = jnp.dot(x_ref[...], w1_ref[...], preferred_element_type=jnp.float32)
    h1 = jnp.maximum(h1 + b1_ref[...], 0.0)
    acc_ref[...] += jnp.dot(h1.astype(jnp.bfloat16), w2_ref[...],
                            preferred_element_type=jnp.float32)

    @pl.when(k == pl.num_programs(1) - 1)
    def _finalize():
        h2 = jnp.maximum(acc_ref[...] + b2_ref[...], 0.0)
        y = jnp.dot(h2.astype(jnp.bfloat16), w3_ref[...],
                    preferred_element_type=jnp.float32) + b3_ref[...]
        o_ref[...] = y.astype(o_ref.dtype)


# ----------------------------------------------------------------------------
# Wrappers (glue: im2col in bf16, pooling-window regrouping)
# ----------------------------------------------------------------------------
def _pick_conv_tile(n_pooled, w2):
    """Largest lane-dense pooled-pixel tile (multiple of 128, whole pooled
    rows, <=1024) dividing N.  Single big tile on small problems; >=2 steps
    (sharded across v7x's two TensorCores) appear once N >= 2048."""
    for t in (1024, 512, 256, 128):
        if n_pooled % t == 0 and t % w2 == 0:
            return t
    return n_pooled  # tiny/ragged fallback: correct, just not lane-dense


def conv_relu_pool(x_nhwc, w_t, b_col):
    """x_nhwc: (B,H,W,Cin) bf16; w_t: (Cout,Kp) bf16, K ordered (dy,dx,ci) and
    zero-padded; b_col: (Cout,1) f32.  Returns (Cout, N) bf16 with pooled-pixel
    ordering (b, y2, x2)."""
    B, H, W, Cin = x_nhwc.shape
    Cout, Kp = w_t.shape
    K = 9 * Cin
    H2, W2 = H // 2, W // 2
    N = B * H2 * W2

    # im2col glue in bf16 (single concat + single transpose), done by XLA.
    # TODO(synk): build the 9 shifted views inside the kernel from a halo'd
    # activation block to avoid the ~9x HBM patch inflation at large batch.
    xp = jnp.pad(x_nhwc, ((0, 0), (1, 1), (1, 1), (0, 0)))
    views = [xp[:, dy:dy + H, dx:dx + W, :]
             for dy in range(3) for dx in range(3)]
    if Kp != K:
        views.append(jnp.zeros((B, H, W, Kp - K), xp.dtype))
    patches = jnp.concatenate(views, axis=-1)                 # (B, H, W, Kp)

    tn = _pick_conv_tile(N, W2)
    nt = N // tn
    rpt = tn // W2                                            # pooled rows/tile
    # (tile, row, py, x2, px, Kp) -> (Kp, tile, py, px, row, x2): every grid
    # block is a contiguous (Kp, 4*tn) slab with columns ordered
    # (pool-pos, pixel), and the output block is lane-dense.
    p_t = patches.reshape(nt, rpt, 2, W2, 2, Kp)
    p_t = p_t.transpose(5, 0, 2, 4, 1, 3).reshape(Kp, 4 * N)

    return pl.pallas_call(
        conv_relu_pool_kernel,
        out_shape=jax.ShapeDtypeStruct((Cout, N), jnp.bfloat16),
        grid=(nt,),
        in_specs=[
            pl.BlockSpec((Kp, 4 * tn), lambda i: (0, i)),
            pl.BlockSpec((Cout, Kp), lambda i: (0, 0)),
            pl.BlockSpec((Cout, 1), lambda i: (0, 0)),
        ],
        out_specs=pl.BlockSpec((Cout, tn), lambda i: (0, i)),
        compiler_params=pltpu.CompilerParams(
            dimension_semantics=("parallel",)),
    )(p_t, w_t, b_col)


def _pick_batch_tile(batch):
    if batch <= 512:
        return batch
    for t in (512, 256, 128, 64):
        if batch % t == 0:
            return t
    return batch  # TODO(synk): pad ragged large batches


def fused_mlp(x, pp):
    """x: (B, 4096) bf16.  Returns (B, 128) f32 (zero-padded logits)."""
    B, IN = x.shape
    H1 = pp["fc1_w"].shape[1]           # 1024
    H2 = pp["fc2_w"].shape[1]           # 512
    OUTP = pp["fc3_w"].shape[1]         # 128 (10 zero-padded)
    t1 = 256 if H1 % 256 == 0 else H1   # fc1-OUT / fc2-IN weight-streaming tile
    tb = _pick_batch_tile(B)            # batch tile ("parallel" axis)

    # TODO(synk): prefetch fc1/fc2 weights during the conv stage via a
    # cross-pallas_call DMA future; the MLP is weight-DMA-bound at small B.
    return pl.pallas_call(
        fused_mlp_kernel,
        out_shape=jax.ShapeDtypeStruct((B, OUTP), jnp.float32),
        grid=(B // tb, H1 // t1),
        in_specs=[
            pl.BlockSpec((tb, IN), lambda b, k: (b, 0)),     # activations (bf16)
            pl.BlockSpec((IN, t1), lambda b, k: (0, k)),     # fc1 W tile (bf16)
            pl.BlockSpec((1, t1), lambda b, k: (0, k)),      # fc1 b tile
            pl.BlockSpec((t1, H2), lambda b, k: (k, 0)),     # fc2 W tile (bf16)
            pl.BlockSpec((1, H2), lambda b, k: (0, 0)),      # fc2 b, resident
            pl.BlockSpec((H2, OUTP), lambda b, k: (0, 0)),   # fc3 W (bf16)
            pl.BlockSpec((1, OUTP), lambda b, k: (0, 0)),    # fc3 b
        ],
        out_specs=pl.BlockSpec((tb, OUTP), lambda b, k: (b, 0)),
        scratch_shapes=[pltpu.VMEM((tb, H2), jnp.float32)],
        compiler_params=pltpu.CompilerParams(
            dimension_semantics=("parallel", "arbitrary")),
    )(x, pp["fc1_w"], pp["fc1_b"], pp["fc2_w"], pp["fc2_b"],
      pp["fc3_w"], pp["fc3_b"])


# ----------------------------------------------------------------------------
# One-time weight preparation (outside jit) + full forward pass
# ----------------------------------------------------------------------------
def prepare_params(p):
    """Conv weights -> bf16 (Cout, Kp) matmul matrices; FC weights transposed
    and cast to bf16; fc3 output padded to a lane-dense 128 columns."""
    def conv_wb(w, b):
        cout, cin = w.shape[0], w.shape[1]
        k = 9 * cin
        kp = ((k + 15) // 16) * 16   # bf16 sublane packing (27 -> 32 for conv1)
        wt = jnp.transpose(w, (0, 2, 3, 1)).reshape(cout, k)  # (Cout,(dy,dx,ci))
        wt = jnp.pad(wt, ((0, 0), (0, kp - k))).astype(jnp.bfloat16)
        return wt, b.reshape(cout, 1).astype(jnp.float32)

    c1_w, c1_b = conv_wb(p["conv1_w"], p["conv1_b"])
    c2_w, c2_b = conv_wb(p["conv2_w"], p["conv2_b"])

    out_pad = 128
    w3 = jnp.transpose(p["fc3_w"]).astype(jnp.bfloat16)        # (512, 10)
    w3 = jnp.pad(w3, ((0, 0), (0, out_pad - w3.shape[1])))
    b3 = jnp.pad(p["fc3_b"], (0, out_pad - p["fc3_b"].shape[0]))
    return {
        "c1_w": c1_w, "c1_b": c1_b, "c2_w": c2_w, "c2_b": c2_b,
        "fc1_w": jnp.transpose(p["fc1_w"]).astype(jnp.bfloat16),  # (4096,1024)
        "fc1_b": p["fc1_b"].reshape(1, -1).astype(jnp.float32),
        "fc2_w": jnp.transpose(p["fc2_w"]).astype(jnp.bfloat16),  # (1024, 512)
        "fc2_b": p["fc2_b"].reshape(1, -1).astype(jnp.float32),
        "fc3_w": w3,
        "fc3_b": b3.reshape(1, -1).astype(jnp.float32),
    }


def cnn_forward(x_nchw, pp):
    B = x_nchw.shape[0]
    x = jnp.transpose(x_nchw, (0, 2, 3, 1)).astype(jnp.bfloat16)  # NHWC, bf16
    H, W = x.shape[1], x.shape[2]

    y1 = conv_relu_pool(x, pp["c1_w"], pp["c1_b"])                # (32, B*16*16)
    C1 = pp["c1_w"].shape[0]
    H, W = H // 2, W // 2
    y1 = y1.reshape(C1, B, H, W).transpose(1, 2, 3, 0)            # NHWC for conv2

    y2 = conv_relu_pool(y1, pp["c2_w"], pp["c2_b"])               # (64, B*8*8)
    C2 = pp["c2_w"].shape[0]
    H, W = H // 2, W // 2
    # torch's x.view(B,-1) on an NCHW tensor flattens (C,H,W): single transpose.
    flat = y2.reshape(C2, B, H, W).transpose(1, 0, 2, 3).reshape(B, C2 * H * W)

    # dropout1 / dropout2: identity (eval mode)
    logits = fused_mlp(flat, pp)                                  # (B, 128) f32
    return logits[:, :NUM_CLASSES]


# ----------------------------------------------------------------------------
# Pure-JAX reference (f32 convs; FC uses the same bf16 weight streaming)
# ----------------------------------------------------------------------------
def ref_forward(x, p):
    def conv_block(y, w, b):
        y = jax.lax.conv_general_dilated(
            y, w, (1, 1), "SAME", dimension_numbers=("NCHW", "OIHW", "NCHW"))
        y = jnp.maximum(y + b[None, :, None, None], 0.0)
        return jax.lax.reduce_window(y, -jnp.inf, jax.lax.max,
                                     (1, 1, 2, 2), (1, 1, 2, 2), "VALID")

    def lin(h, w, b, relu):
        y = jnp.dot(h.astype(jnp.bfloat16), w.T.astype(jnp.bfloat16),
                    preferred_element_type=jnp.float32) + b
        return jnp.maximum(y, 0.0) if relu else y

    y = conv_block(x, p["conv1_w"], p["conv1_b"])
    y = conv_block(y, p["conv2_w"], p["conv2_b"])
    y = y.reshape(y.shape[0], -1)
    y = lin(y, p["fc1_w"], p["fc1_b"], True)
    y = lin(y, p["fc2_w"], p["fc2_b"], True)
    return lin(y, p["fc3_w"], p["fc3_b"], False)


def init_params(key):
    ks = jax.random.split(key, 10)
    s = 0.05
    return {
        "conv1_w": s * jax.random.normal(ks[0], (32, 3, 3, 3), jnp.float32),
        "conv1_b": s * jax.random.normal(ks[1], (32,), jnp.float32),
        "conv2_w": s * jax.random.normal(ks[2], (64, 32, 3, 3), jnp.float32),
        "conv2_b": s * jax.random.normal(ks[3], (64,), jnp.float32),
        "fc1_w": s * jax.random.normal(ks[4], (1024, 64 * 8 * 8), jnp.float32),
        "fc1_b": s * jax.random.normal(ks[5], (1024,), jnp.float32),
        "fc2_w": s * jax.random.normal(ks[6], (512, 1024), jnp.float32),
        "fc2_b": s * jax.random.normal(ks[7], (512,), jnp.float32),
        "fc3_w": s * jax.random.normal(ks[8], (NUM_CLASSES, 512), jnp.float32),
        "fc3_b": s * jax.random.normal(ks[9], (NUM_CLASSES,), jnp.float32),
    }


if __name__ == "__main__":
    key = jax.random.PRNGKey(0)
    k_x, k_p = jax.random.split(key)
    # fc1 expects 64*8*8 features -> input must be (B, 3, 32, 32)
    x = jax.random.normal(k_x, (2, 3, 32, 32), jnp.float32)
    params = init_params(k_p)

    prepped = prepare_params(params)      # one-time weight re-layout (not per call)
    out = jax.jit(cnn_forward)(x, prepped)
    out = jax.block_until_ready(out)
    assert out.shape == (2, NUM_CLASSES), out.shape

    ref = ref_forward(x, params)
    assert jnp.allclose(out, ref, rtol=2e-2, atol=2e-2), (
        float(jnp.max(jnp.abs(out - ref))))

    print("KERNEL_OK")
</pallas_src>

<mosaic_0001>
module attributes {stable_mosaic.version = 11 : i64} {
  func.func @conv_relu_pool_kernel(%arg0: i32, %arg1: memref<32x2048xbf16, #tpu.memory_space<vmem>>, %arg2: memref<32x32xbf16, #tpu.memory_space<vmem>>, %arg3: memref<32x1xf32, #tpu.memory_space<vmem>>, %arg4: memref<32x512xbf16, #tpu.memory_space<vmem>>) attributes {dimension_semantics = [#tpu.dimension_semantics<parallel>], iteration_bounds = array<i64: 1>, scalar_prefetch = 0 : i64, scratch_operands = 0 : i64, tpu.core_type = #tpu.core_type<tc>, window_params = [{transform_indices = @transform_0, window_bounds = array<i64: 32, 2048>}, {pipeline_mode = #tpu.pipeline_mode<synchronous>, transform_indices = @transform_1, window_bounds = array<i64: 32, 32>}, {pipeline_mode = #tpu.pipeline_mode<synchronous>, transform_indices = @transform_2, window_bounds = array<i64: 32, 1>}, {transform_indices = @transform_3, window_bounds = array<i64: 32, 512>}]} {
    %c0 = arith.constant 0 : index
    %c0_0 = arith.constant 0 : index
    %0 = vector.load %arg2[%c0, %c0_0] : memref<32x32xbf16, #tpu.memory_space<vmem>>, vector<32x32xbf16>
    %c0_1 = arith.constant 0 : index
    %c0_2 = arith.constant 0 : index
    %1 = vector.load %arg3[%c0_1, %c0_2] : memref<32x1xf32, #tpu.memory_space<vmem>>, vector<32x1xf32>
    %c0_3 = arith.constant 0 : index
    %c0_4 = arith.constant 0 : index
    %2 = vector.load %arg1[%c0_3, %c0_4] : memref<32x2048xbf16, #tpu.memory_space<vmem>>, vector<32x1024xbf16>
    %cst = arith.constant dense<0.000000e+00> : vector<32x1024xf32>
    %3 = tpu.matmul %0, %2, %cst {dimension_numbers = #tpu.dot_dimension_numbers<[1], [0], [0], [1], [0, 0, 1, 1], [], []>} : vector<32x32xbf16>, vector<32x1024xbf16>, vector<32x1024xf32> -> vector<32x1024xf32>
    %4 = vector.broadcast %1 : vector<32x1xf32> to vector<32x1024xf32>
    %5 = arith.addf %3, %4 : vector<32x1024xf32>
    %cst_5 = arith.constant 0.000000e+00 : f32
    %6 = vector.broadcast %cst_5 : f32 to vector<32x1024xf32>
    %7 = arith.maximumf %5, %6 : vector<32x1024xf32>
    %8 = vector.extract_strided_slice %7 {offsets = [0, 0], sizes = [32, 512], strides = [1, 1]} : vector<32x1024xf32> to vector<32x512xf32>
    %9 = vector.extract_strided_slice %7 {offsets = [0, 512], sizes = [32, 512], strides = [1, 1]} : vector<32x1024xf32> to vector<32x512xf32>
    %10 = arith.maximumf %8, %9 : vector<32x512xf32>
    %c0_6 = arith.constant 0 : index
    %c1024 = arith.constant 1024 : index
    %11 = vector.load %arg1[%c0_6, %c1024] : memref<32x2048xbf16, #tpu.memory_space<vmem>>, vector<32x1024xbf16>
    %cst_7 = arith.constant dense<0.000000e+00> : vector<32x1024xf32>
    %12 = tpu.matmul %0, %11, %cst_7 {dimension_numbers = #tpu.dot_dimension_numbers<[1], [0], [0], [1], [0, 0, 1, 1], [], []>} : vector<32x32xbf16>, vector<32x1024xbf16>, vector<32x1024xf32> -> vector<32x1024xf32>
    %13 = vector.broadcast %1 : vector<32x1xf32> to vector<32x1024xf32>
    %14 = arith.addf %12, %13 : vector<32x1024xf32>
    %cst_8 = arith.constant 0.000000e+00 : f32
    %15 = vector.broadcast %cst_8 : f32 to vector<32x1024xf32>
    %16 = arith.maximumf %14, %15 : vector<32x1024xf32>
    %17 = vector.extract_strided_slice %16 {offsets = [0, 0], sizes = [32, 512], strides = [1, 1]} : vector<32x1024xf32> to vector<32x512xf32>
    %18 = vector.extract_strided_slice %16 {offsets = [0, 512], sizes = [32, 512], strides = [1, 1]} : vector<32x1024xf32> to vector<32x512xf32>
    %19 = arith.maximumf %17, %18 : vector<32x512xf32>
    %20 = arith.maximumf %10, %19 : vector<32x512xf32>
    %21 = arith.truncf %20 : vector<32x512xf32> to vector<32x512xbf16>
    %c0_9 = arith.constant 0 : index
    %c0_10 = arith.constant 0 : index
    %22 = vector.load %arg4[%c0_9, %c0_10] : memref<32x512xbf16, #tpu.memory_space<vmem>>, vector<32x512xbf16>
    tpu.vector_store %arg4[%c0_9, %c0_10], %21 {strides = array<i32>} : memref<32x512xbf16, #tpu.memory_space<vmem>>, vector<32x512xbf16>,
    return
  }
  func.func @transform_0(%arg0: i32) -> (i32, i32) {
    %c0_i32 = arith.constant 0 : i32
    %c0_i32_0 = arith.constant 0 : i32
    return %c0_i32, %arg0 : i32, i32
  }
  func.func @transform_1(%arg0: i32) -> (i32, i32) {
    %c0_i32 = arith.constant 0 : i32
    %c0_i32_0 = arith.constant 0 : i32
    %c0_i32_1 = arith.constant 0 : i32
    return %c0_i32, %c0_i32_0 : i32, i32
  }
  func.func @transform_2(%arg0: i32) -> (i32, i32) {
    %c0_i32 = arith.constant 0 : i32
    %c0_i32_0 = arith.constant 0 : i32
    %c0_i32_1 = arith.constant 0 : i32
    return %c0_i32, %c0_i32_0 : i32, i32
  }
  func.func @transform_3(%arg0: i32) -> (i32, i32) {
    %c0_i32 = arith.constant 0 : i32
    %c0_i32_0 = arith.constant 0 : i32
    return %c0_i32, %arg0 : i32, i32
  }
}

module attributes {stable_mosaic.version = 11 : i64} {
  func.func @conv_relu_pool_kernel(%arg0: i32, %arg1: memref<288x512xbf16, #tpu.memory_space<vmem>>, %arg2: memref<64x288xbf16, #tpu.memory_space<vmem>>, %arg3: memref<64x1xf32, #tpu.memory_space<vmem>>, %arg4: memref<64x128xbf16, #tpu.memory_space<vmem>>) attributes {dimension_semantics = [#tpu.dimension_semantics<parallel>], iteration_bounds = array<i64: 1>, scalar_prefetch = 0 : i64, scratch_operands = 0 : i64, tpu.core_type = #tpu.core_type<tc>, window_params = [{transform_indices = @transform_0, window_bounds = array<i64: 288, 512>}, {pipeline_mode = #tpu.pipeline_mode<synchronous>, transform_indices = @transform_1, window_bounds = array<i64: 64, 288>}, {pipeline_mode = #tpu.pipeline_mode<synchronous>, transform_indices = @transform_2, window_bounds = array<i64: 64, 1>}, {transform_indices = @transform_3, window_bounds = array<i64: 64, 128>}]} {
    %c0 = arith.constant 0 : index
    %c0_0 = arith.constant 0 : index
    %0 = vector.load %arg2[%c0, %c0_0] : memref<64x288xbf16, #tpu.memory_space<vmem>>, vector<64x288xbf16>
    %c0_1 = arith.constant 0 : index
    %c0_2 = arith.constant 0 : index
    %1 = vector.load %arg3[%c0_1, %c0_2] : memref<64x1xf32, #tpu.memory_space<vmem>>, vector<64x1xf32>
    %c0_3 = arith.constant 0 : index
    %c0_4 = arith.constant 0 : index
    %2 = vector.load %arg1[%c0_3, %c0_4] : memref<288x512xbf16, #tpu.memory_space<vmem>>, vector<288x256xbf16>
    %cst = arith.constant dense<0.000000e+00> : vector<64x256xf32>
    %3 = tpu.matmul %0, %2, %cst {dimension_numbers = #tpu.dot_dimension_numbers<[1], [0], [0], [1], [0, 0, 1, 1], [], []>} : vector<64x288xbf16>, vector<288x256xbf16>, vector<64x256xf32> -> vector<64x256xf32>
    %4 = vector.broadcast %1 : vector<64x1xf32> to vector<64x256xf32>
    %5 = arith.addf %3, %4 : vector<64x256xf32>
    %cst_5 = arith.constant 0.000000e+00 : f32
    %6 = vector.broadcast %cst_5 : f32 to vector<64x256xf32>
    %7 = arith.maximumf %5, %6 : vector<64x256xf32>
    %8 = vector.extract_strided_slice %7 {offsets = [0, 0], sizes = [64, 128], strides = [1, 1]} : vector<64x256xf32> to vector<64x128xf32>
    %9 = vector.extract_strided_slice %7 {offsets = [0, 128], sizes = [64, 128], strides = [1, 1]} : vector<64x256xf32> to vector<64x128xf32>
    %10 = arith.maximumf %8, %9 : vector<64x128xf32>
    %c0_6 = arith.constant 0 : index
    %c256 = arith.constant 256 : index
    %11 = vector.load %arg1[%c0_6, %c256] : memref<288x512xbf16, #tpu.memory_space<vmem>>, vector<288x256xbf16>
    %cst_7 = arith.constant dense<0.000000e+00> : vector<64x256xf32>
    %12 = tpu.matmul %0, %11, %cst_7 {dimension_numbers = #tpu.dot_dimension_numbers<[1], [0], [0], [1], [0, 0, 1, 1], [], []>} : vector<64x288xbf16>, vector<288x256xbf16>, vector<64x256xf32> -> vector<64x256xf32>
    %13 = vector.broadcast %1 : vector<64x1xf32> to vector<64x256xf32>
    %14 = arith.addf %12, %13 : vector<64x256xf32>
    %cst_8 = arith.constant 0.000000e+00 : f32
    %15 = vector.broadcast %cst_8 : f32 to vector<64x256xf32>
    %16 = arith.maximumf %14, %15 : vector<64x256xf32>
    %17 = vector.extract_strided_slice %16 {offsets = [0, 0], sizes = [64, 128], strides = [1, 1]} : vector<64x256xf32> to vector<64x128xf32>
    %18 = vector.extract_strided_slice %16 {offsets = [0, 128], sizes = [64, 128], strides = [1, 1]} : vector<64x256xf32> to vector<64x128xf32>
    %19 = arith.maximumf %17, %18 : vector<64x128xf32>
    %20 = arith.maximumf %10, %19 : vector<64x128xf32>
    %21 = arith.truncf %20 : vector<64x128xf32> to vector<64x128xbf16>
    %c0_9 = arith.constant 0 : index
    %c0_10 = arith.constant 0 : index
    %22 = vector.load %arg4[%c0_9, %c0_10] : memref<64x128xbf16, #tpu.memory_space<vmem>>, vector<64x128xbf16>
    tpu.vector_store %arg4[%c0_9, %c0_10], %21 {strides = array<i32>} : memref<64x128xbf16, #tpu.memory_space<vmem>>, vector<64x128xbf16>,
    return
  }
  func.func @transform_0(%arg0: i32) -> (i32, i32) {
    %c0_i32 = arith.constant 0 : i32
    %c0_i32_0 = arith.constant 0 : i32
    return %c0_i32, %arg0 : i32, i32
  }
  func.func @transform_1(%arg0: i32) -> (i32, i32) {
    %c0_i32 = arith.constant 0 : i32
    %c0_i32_0 = arith.constant 0 : i32
    %c0_i32_1 = arith.constant 0 : i32
    return %c0_i32, %c0_i32_0 : i32, i32
  }
  func.func @transform_2(%arg0: i32) -> (i32, i32) {
    %c0_i32 = arith.constant 0 : i32
    %c0_i32_0 = arith.constant 0 : i32
    %c0_i32_1 = arith.constant 0 : i32
    return %c0_i32, %c0_i32_0 : i32, i32
  }
  func.func @transform_3(%arg0: i32) -> (i32, i32) {
    %c0_i32 = arith.constant 0 : i32
    %c0_i32_0 = arith.constant 0 : i32
    return %c0_i32, %arg0 : i32, i32
  }
}

module attributes {stable_mosaic.version = 11 : i64} {
  func.func @fused_mlp_kernel(%arg0: i32, %arg1: i32, %arg2: memref<2x4096xbf16, #tpu.memory_space<vmem>>, %arg3: memref<4096x256xbf16, #tpu.memory_space<vmem>>, %arg4: memref<1x256xf32, #tpu.memory_space<vmem>>, %arg5: memref<256x512xbf16, #tpu.memory_space<vmem>>, %arg6: memref<1x512xf32, #tpu.memory_space<vmem>>, %arg7: memref<512x128xbf16, #tpu.memory_space<vmem>>, %arg8: memref<1x128xf32, #tpu.memory_space<vmem>>, %arg9: memref<2x128xf32, #tpu.memory_space<vmem>>, %arg10: memref<2x512xf32, #tpu.memory_space<vmem>>) attributes {dimension_semantics = [#tpu.dimension_semantics<parallel>, #tpu.dimension_semantics<arbitrary>], iteration_bounds = array<i64: 1, 4>, scalar_prefetch = 0 : i64, scratch_operands = 1 : i64, tpu.core_type = #tpu.core_type<tc>, window_params = [{transform_indices = @transform_0, window_bounds = array<i64: 2, 4096>}, {transform_indices = @transform_1, window_bounds = array<i64: 4096, 256>}, {transform_indices = @transform_2, window_bounds = array<i64: 1, 256>}, {transform_indices = @transform_3, window_bounds = array<i64: 256, 512>}, {pipeline_mode = #tpu.pipeline_mode<synchronous>, transform_indices = @transform_4, window_bounds = array<i64: 1, 512>}, {pipeline_mode = #tpu.pipeline_mode<synchronous>, transform_indices = @transform_5, window_bounds = array<i64: 512, 128>}, {pipeline_mode = #tpu.pipeline_mode<synchronous>, transform_indices = @transform_6, window_bounds = array<i64: 1, 128>}, {transform_indices = @transform_7, window_bounds = array<i64: 2, 128>}]} {
    %c0_i32 = arith.constant 0 : i32
    %0 = arith.cmpi eq, %arg1, %c0_i32 : i32
    %1 = arith.extui %0 : i1 to i32
    %c0_i32_0 = arith.constant 0 : i32
    %2 = arith.cmpi ne, %1, %c0_i32_0 : i32
    scf.if %2 {
      %cst_15 = arith.constant 0.000000e+00 : f32
      %20 = vector.broadcast %cst_15 : f32 to vector<2x512xf32>
      %c0_16 = arith.constant 0 : index
      %c0_17 = arith.constant 0 : index
      %21 = vector.load %arg10[%c0_16, %c0_17] : memref<2x512xf32, #tpu.memory_space<vmem>>, vector<2x512xf32>
      tpu.vector_store %arg10[%c0_16, %c0_17], %20 {strides = array<i32>} : memref<2x512xf32, #tpu.memory_space<vmem>>, vector<2x512xf32>,
    } else {
    }
    %c0 = arith.constant 0 : index
    %c0_1 = arith.constant 0 : index
    %3 = vector.load %arg2[%c0, %c0_1] : memref<2x4096xbf16, #tpu.memory_space<vmem>>, vector<2x4096xbf16>
    %c0_2 = arith.constant 0 : index
    %c0_3 = arith.constant 0 : index
    %4 = vector.load %arg3[%c0_2, %c0_3] : memref<4096x256xbf16, #tpu.memory_space<vmem>>, vector<4096x256xbf16>
    %cst = arith.constant dense<0.000000e+00> : vector<2x256xf32>
    %5 = tpu.matmul %3, %4, %cst {dimension_numbers = #tpu.dot_dimension_numbers<[1], [0], [0], [1], [0, 0, 1, 1], [], []>} : vector<2x4096xbf16>, vector<4096x256xbf16>, vector<2x256xf32> -> vector<2x256xf32>
    %c0_4 = arith.constant 0 : index
    %c0_5 = arith.constant 0 : index
    %6 = vector.load %arg4[%c0_4, %c0_5] : memref<1x256xf32, #tpu.memory_space<vmem>>, vector<1x256xf32>
    %7 = vector.broadcast %6 : vector<1x256xf32> to vector<2x256xf32>
    %8 = arith.addf %5, %7 : vector<2x256xf32>
    %cst_6 = arith.constant 0.000000e+00 : f32
    %9 = vector.broadcast %cst_6 : f32 to vector<2x256xf32>
    %10 = arith.maximumf %8, %9 : vector<2x256xf32>
    %c0_7 = arith.constant 0 : index
    %c0_8 = arith.constant 0 : index
    %11 = vector.load %arg10[%c0_7, %c0_8] : memref<2x512xf32, #tpu.memory_space<vmem>>, vector<2x512xf32>
    %12 = arith.truncf %10 : vector<2x256xf32> to vector<2x256xbf16>
    %c0_9 = arith.constant 0 : index
    %c0_10 = arith.constant 0 : index
    %13 = vector.load %arg5[%c0_9, %c0_10] : memref<256x512xbf16, #tpu.memory_space<vmem>>, vector<256x512xbf16>
    %cst_11 = arith.constant dense<0.000000e+00> : vector<2x512xf32>
    %14 = tpu.matmul %12, %13, %cst_11 {dimension_numbers = #tpu.dot_dimension_numbers<[1], [0], [0], [1], [0, 0, 1, 1], [], []>} : vector<2x256xbf16>, vector<256x512xbf16>, vector<2x512xf32> -> vector<2x512xf32>
    %15 = arith.addf %11, %14 : vector<2x512xf32>
    %c0_12 = arith.constant 0 : index
    %c0_13 = arith.constant 0 : index
    %16 = vector.load %arg10[%c0_12, %c0_13] : memref<2x512xf32, #tpu.memory_space<vmem>>, vector<2x512xf32>
    tpu.vector_store %arg10[%c0_12, %c0_13], %15 {strides = array<i32>} : memref<2x512xf32, #tpu.memory_space<vmem>>, vector<2x512xf32>,
    %c3_i32 = arith.constant 3 : i32
    %17 = arith.cmpi eq, %arg1, %c3_i32 : i32
    %18 = arith.extui %17 : i1 to i32
    %c0_i32_14 = arith.constant 0 : i32
    %19 = arith.cmpi ne, %18, %c0_i32_14 : i32
    scf.if %19 {
      %c0_15 = arith.constant 0 : index
      %c0_16 = arith.constant 0 : index
      %20 = vector.load %arg10[%c0_15, %c0_16] : memref<2x512xf32, #tpu.memory_space<vmem>>, vector<2x512xf32>
      %c0_17 = arith.constant 0 : index
      %c0_18 = arith.constant 0 : index
      %21 = vector.load %arg6[%c0_17, %c0_18] : memref<1x512xf32, #tpu.memory_space<vmem>>, vector<1x512xf32>
      %22 = vector.broadcast %21 : vector<1x512xf32> to vector<2x512xf32>
      %23 = arith.addf %20, %22 : vector<2x512xf32>
      %cst_19 = arith.constant 0.000000e+00 : f32
      %24 = vector.broadcast %cst_19 : f32 to vector<2x512xf32>
      %25 = arith.maximumf %23, %24 : vector<2x512xf32>
      %26 = arith.truncf %25 : vector<2x512xf32> to vector<2x512xbf16>
      %c0_20 = arith.constant 0 : index
      %c0_21 = arith.constant 0 : index
      %27 = vector.load %arg7[%c0_20, %c0_21] : memref<512x128xbf16, #tpu.memory_space<vmem>>, vector<512x128xbf16>
      %cst_22 = arith.constant dense<0.000000e+00> : vector<2x128xf32>
      %28 = tpu.matmul %26, %27, %cst_22 {dimension_numbers = #tpu.dot_dimension_numbers<[1], [0], [0], [1], [0, 0, 1, 1], [], []>} : vector<2x512xbf16>, vector<512x128xbf16>, vector<2x128xf32> -> vector<2x128xf32>
      %c0_23 = arith.constant 0 : index
      %c0_24 = arith.constant 0 : index
      %29 = vector.load %arg8[%c0_23, %c0_24] : memref<1x128xf32, #tpu.memory_space<vmem>>, vector<1x128xf32>
      %30 = vector.broadcast %29 : vector<1x128xf32> to vector<2x128xf32>
      %31 = arith.addf %28, %30 : vector<2x128xf32>
      %c0_25 = arith.constant 0 : index
      %c0_26 = arith.constant 0 : index
      %32 = vector.load %arg9[%c0_25, %c0_26] : memref<2x128xf32, #tpu.memory_space<vmem>>, vector<2x128xf32>
      tpu.vector_store %arg9[%c0_25, %c0_26], %31 {strides = array<i32>} : memref<2x128xf32, #tpu.memory_space<vmem>>, vector<2x128xf32>,
    } else {
    }
    return
  }
  func.func @transform_0(%arg0: i32, %arg1: i32) -> (i32, i32) {
    %c0_i32 = arith.constant 0 : i32
    %c0_i32_0 = arith.constant 0 : i32
    return %arg0, %c0_i32 : i32, i32
  }
  func.func @transform_1(%arg0: i32, %arg1: i32) -> (i32, i32) {
    %c0_i32 = arith.constant 0 : i32
    %c0_i32_0 = arith.constant 0 : i32
    return %c0_i32, %arg1 : i32, i32
  }
  func.func @transform_2(%arg0: i32, %arg1: i32) -> (i32, i32) {
    %c0_i32 = arith.constant 0 : i32
    %c0_i32_0 = arith.constant 0 : i32
    return %c0_i32, %arg1 : i32, i32
  }
  func.func @transform_3(%arg0: i32, %arg1: i32) -> (i32, i32) {
    %c0_i32 = arith.constant 0 : i32
    %c0_i32_0 = arith.constant 0 : i32
    return %arg1, %c0_i32 : i32, i32
  }
  func.func @transform_4(%arg0: i32, %arg1: i32) -> (i32, i32) {
    %c0_i32 = arith.constant 0 : i32
    %c0_i32_0 = arith.constant 0 : i32
    %c0_i32_1 = arith.constant 0 : i32
    return %c0_i32, %c0_i32_0 : i32, i32
  }
  func.func @transform_5(%arg0: i32, %arg1: i32) -> (i32, i32) {
    %c0_i32 = arith.constant 0 : i32
    %c0_i32_0 = arith.constant 0 : i32
    %c0_i32_1 = arith.constant 0 : i32
    return %c0_i32, %c0_i32_0 : i32, i32
  }
  func.func @transform_6(%arg0: i32, %arg1: i32) -> (i32, i32) {
    %c0_i32 = arith.constant 0 : i32
    %c0_i32_0 = arith.constant 0 : i32
    %c0_i32_1 = arith.constant 0 : i32
    return %c0_i32, %c0_i32_0 : i32, i32
  }
  func.func @transform_7(%arg0: i32, %arg1: i32) -> (i32, i32) {
    %c0_i32 = arith.constant 0 : i32
    %c0_i32_0 = arith.constant 0 : i32
    return %arg0, %c0_i32 : i32, i32
  }
}

</mosaic_0001>

<bundles_post_ra>
// kernel: cnn_forward.3
= control target key start
LH: loop header
LB: loop body
LE: loop exit
PB: predicated region body
PF: predicated region fallthrough
CT: control target
= control target key end

     0   :  { %v919_v3 = vmov 0   ;;  %vm149_vm0 = vcmask 261120   ;;  %s1313_s0 = inlined_call_operand.vmem [shape: bf16[32,2048], index: 0, kind: input, shape index: {}]   ;;  %s1314_s1 = inlined_call_operand.vmem [shape: bf16[32,32], index: 1, kind: input, shape index: {}]   ;;  %s1315_s2 = inlined_call_operand.vmem [shape: f32[32,1], index: 2, kind: input, shape index: {}]   ;;  %s1316_s3 = inlined_call_operand.vmem [shape: bf16[32,512], index: 3, kind: output, shape index: {}]  }
   0x1   :  { %v23_v0 = vld [vmem:[%s1313_s0] sm:$0xff]  ;;  %v24_v2 = vld [vmem:[%s1313_s0 + $0x8] sm:$0xff]  ;;  %188 = vmatprep.mubr.bf16.mxu0 %v919_v3  ;;  %241 = vmatprep.mubr.bf16.mxu1 %v919_v3  ;;  %v25_v15 = vld [vmem:[%s1313_s0 + $0x10] sm:$0xff] }
   0x2   :  { %v27_v1 = vld [vmem:[%s1313_s0 + $0x40] sm:$0xff]  ;;  %v28_v5 = vld [vmem:[%s1313_s0 + $0x48] sm:$0xff]  ;;  %915 = vset.pattern.permute.xlu0 %v919_v3  ;;  %916 = vset.pattern.permute.xlu1 %v919_v3  ;;  %v29_v17 = vld [vmem:[%s1313_s0 + $0x50] sm:$0xff] }
   0x3   :  { %v851_v4 = vcombine.high %v23_v0, %v27_v1  ;;  %v850_v6 = vcombine.low %v23_v0, %v27_v1  ;;  %v31_v7 = vld [vmem:[%s1313_s0 + $0x80] sm:$0xff]  ;;  %v853_v9 = vcombine.high %v24_v2, %v28_v5  ;;  %v852_v10 = vcombine.low %v24_v2, %v28_v5  ;;  %v32_v12 = vld [vmem:[%s1313_s0 + $0x88] sm:$0xff]  ;;  %v26_v18 = vld [vmem:[%s1313_s0 + $0x18] sm:$0xff] }
   0x4   :  { %v35_v8 = vld [vmem:[%s1313_s0 + $0xc0] sm:$0xff]  ;;  %v36_v13 = vld [vmem:[%s1313_s0 + $0xc8] sm:$0xff]  ;;  %v30_v19 = vld [vmem:[%s1313_s0 + $0x58] sm:$0xff]  ;;  %v855_v21 = vcombine.high %v25_v15, %v29_v17  ;;  %v854_v26 = vcombine.low %v25_v15, %v29_v17 }
   0x5   :  { %v859_v11 = vcombine.high %v31_v7, %v35_v8  ;;  %156 = vmatprep.subr.bf16.mxu0 %v851_v4  ;;  %v861_v14 = vcombine.high %v32_v12, %v36_v13  ;;  %209 = vmatprep.subr.bf16.mxu1 %v853_v9  ;;  %v858_v16 = vcombine.low %v31_v7, %v35_v8  ;;  %v983_v23 = vld [vmem:[%s1314_s1] sm:$0xff]   ;;  %v33_v24 = vld [vmem:[%s1313_s0 + $0x90] sm:$0xff]  ;;  %v34_v27 = vld [vmem:[%s1313_s0 + $0x98] sm:$0xff] }
   0x6   :  { %157 = vmatpush1.bf16.msra.mxu0 %v850_v6  ;;  %210 = vmatpush1.bf16.msra.mxu1 %v852_v10  ;;  %v860_v20 = vcombine.low %v32_v12, %v36_v13  ;;  %v857_v22 = vcombine.high %v26_v18, %v30_v19  ;;  %v37_v25 = vld [vmem:[%s1313_s0 + $0xd0] sm:$0xff]  ;;  %v38_v28 = vld [vmem:[%s1313_s0 + $0xd8] sm:$0xff]  ;;  %v856_v29 = vcombine.low %v26_v18, %v30_v19  ;;  %v416_v31 = vld [vmem:[%s1313_s0 + $0x20] sm:$0xff] }
   0x7   :  { %158 = vmatprep.subr.bf16.mxu0 %v859_v11  ;;  %211 = vmatprep.subr.bf16.mxu1 %v861_v14  ;;  %v863_v30 = vcombine.high %v33_v24, %v37_v25  ;;  %v420_v32 = vld [vmem:[%s1313_s0 + $0x60] sm:$0xff]  ;;  %v865_v33 = vcombine.high %v34_v27, %v38_v28  ;;  %v417_v34 = vld [vmem:[%s1313_s0 + $0x28] sm:$0xff]  ;;  %v862_v36 = vcombine.low %v33_v24, %v37_v25  ;;  %v21_v40 = vld [vmem:[%s1315_s2 + $0x10] sm:$0xff] }
   0x8   :  { %v421_v35 = vld [vmem:[%s1313_s0 + $0x68] sm:$0xff]  ;;  %v19_v37 = vld [vmem:[%s1315_s2] sm:$0xff]  ;;  %v864_v38 = vcombine.low %v34_v27, %v38_v28  ;;  %v875_v39 = vcombine.high %v416_v31, %v420_v32  ;;  %51 = vperm.xlu1 %916, %v21_v40   ;;  %v22_v44 = vld [vmem:[%s1315_s2 + $0x18] sm:$0xff]  ;;  %v874_v47 = vcombine.low %v416_v31, %v420_v32 }
   0x9   :  { %v877_v41 = vcombine.high %v417_v34, %v421_v35  ;;  %v1024_v42 = vld [vmem:[%s1314_s1 + $0x8] sm:$0xff]   ;;  %41 = vperm.xlu0 %915, %v19_v37   ;;  %v424_v45 = vld [vmem:[%s1313_s0 + $0xa0] sm:$0xff]  ;;  %v876_v50 = vcombine.low %v417_v34, %v421_v35  ;;  %v418_v52 = vld [vmem:[%s1313_s0 + $0x30] sm:$0xff] }
   0xa   :  { %159 = vmatpush1.bf16.msra.mxu0 %v858_v16  ;;  %212 = vmatpush1.bf16.msra.mxu1 %v860_v20  ;;  %v20_v43 = vld [vmem:[%s1315_s2 + $0x8] sm:$0xff]  ;;  %v428_v46 = vld [vmem:[%s1313_s0 + $0xe0] sm:$0xff]  ;;  %v422_v53 = vld [vmem:[%s1313_s0 + $0x70] sm:$0xff] }
   0xb   :  { %262 = vmatprep.subr.bf16.mxu0 %v855_v21  ;;  %315 = vmatprep.subr.bf16.mxu1 %v857_v22  ;;  %v425_v48 = vld [vmem:[%s1313_s0 + $0xa8] sm:$0xff]  ;;  %v883_v51 = vcombine.high %v424_v45, %v428_v46  ;;  %v419_v55 = vld [vmem:[%s1313_s0 + $0x38] sm:$0xff]  ;;  %v882_v57 = vcombine.low %v424_v45, %v428_v46  ;;  %v879_v59 = vcombine.high %v418_v52, %v422_v53  ;;  %v426_v61 = vld [vmem:[%s1313_s0 + $0xb0] sm:$0xff] }
   0xc   :  { %56 = vperm.xlu1 %916, %v22_v44   ;;  %v429_v49 = vld [vmem:[%s1313_s0 + $0xe8] sm:$0xff]  ;;  %v423_v56 = vld [vmem:[%s1313_s0 + $0x78] sm:$0xff]  ;;  %v430_v62 = vld [vmem:[%s1313_s0 + $0xf0] sm:$0xff]  ;;  %v878_v63 = vcombine.low %v418_v52, %v422_v53 }
   0xd   :  { %866 = vmatmul.mubr.msk.bf16.vlgmr.msra.gmra.mrb[0].mxu0 %vm149_vm0, %v983_v23  ;;  %868 = vmatmul.mubr.msk.bf16.vlgmr.msra.gmra.mrb[0].mxu1 %vm149_vm0, %v983_v23  ;;  %v885_v54 = vcombine.high %v425_v48, %v429_v49  ;;  %v884_v58 = vcombine.low %v425_v48, %v429_v49  ;;  %v881_v60 = vcombine.high %v419_v55, %v423_v56  ;;  %v427_v0 = vld [vmem:[%s1313_s0 + $0xb8] sm:$0xff] }
   0xe   :  { %263 = vmatpush1.bf16.msra.mxu0 %v854_v26  ;;  %316 = vmatpush1.bf16.msra.mxu1 %v856_v29  ;;  %v431_v1 = vld [vmem:[%s1313_s0 + $0xf8] sm:$0xff]  ;;  %v880_v2 = vcombine.low %v419_v55, %v423_v56  ;;  %v887_v4 = vcombine.high %v426_v61, %v430_v62  ;;  %v886_v6 = vcombine.low %v426_v61, %v430_v62 }
   0xf   :  { %198 = vmatprep.mubr.bf16.mxu0 %v919_v3  ;;  %251 = vmatprep.mubr.bf16.mxu1 %v919_v3  ;;  %v889_v5 = vcombine.high %v427_v0, %v431_v1  ;;  %v888_v7 = vcombine.low %v427_v0, %v431_v1 }
  0x10   :  { %264 = vmatprep.subr.bf16.mxu0 %v863_v30  ;;  %317 = vmatprep.subr.bf16.mxu1 %v865_v33 }
  0x11   :  { %46 = vperm.xlu0 %915, %v20_v43  }
  0x12   :  { %265 = vmatpush1.bf16.msra.mxu0 %v862_v36  ;;  %318 = vmatpush1.bf16.msra.mxu1 %v864_v38 }
  0x13   :  { %512 = vmatprep.subr.bf16.mxu0 %v875_v39  ;;  %565 = vmatprep.subr.bf16.mxu1 %v877_v41 }
  0x15   :  { %867 = vmatmul.mubr.msk.bf16.gmra.mrb[4].mxu0 %vm149_vm0, %v1024_v42  ;;  %869 = vmatmul.mubr.msk.bf16.gmra.mrb[4].mxu1 %vm149_vm0, %v1024_v42 }
  0x16   :  { %294 = vmatprep.mubr.bf16.mxu0 %v919_v3  ;;  %347 = vmatprep.mubr.bf16.mxu1 %v919_v3 }
  0x1d   :  { %870 = vmatmul.mubr.msk.bf16.vlgmr.msra.gmra.mrb[8].mxu0 %vm149_vm0, %v983_v23  ;;  %872 = vmatmul.mubr.msk.bf16.vlgmr.msra.gmra.mrb[8].mxu1 %vm149_vm0, %v983_v23 }
  0x1e   :  { %513 = vmatpush1.bf16.msra.mxu0 %v874_v47  ;;  %566 = vmatpush1.bf16.msra.mxu1 %v876_v50 }
  0x1f   :  { %304 = vmatprep.mubr.bf16.mxu0 %v919_v3  ;;  %357 = vmatprep.mubr.bf16.mxu1 %v919_v3 }
  0x20   :  { %514 = vmatprep.subr.bf16.mxu0 %v883_v51  ;;  %567 = vmatprep.subr.bf16.mxu1 %v885_v54 }
  0x22   :  { %515 = vmatpush1.bf16.msra.mxu0 %v882_v57  ;;  %568 = vmatpush1.bf16.msra.mxu1 %v884_v58 }
  0x23   :  { %618 = vmatprep.subr.bf16.mxu0 %v879_v59  ;;  %671 = vmatprep.subr.bf16.mxu1 %v881_v60 }
  0x25   :  { %871 = vmatmul.mubr.msk.bf16.gmra.mrb[12].mxu0 %vm149_vm0, %v1024_v42  ;;  %873 = vmatmul.mubr.msk.bf16.gmra.mrb[12].mxu1 %vm149_vm0, %v1024_v42 }
  0x26   :  { %544 = vmatprep.mubr.bf16.mxu0 %v919_v3  ;;  %597 = vmatprep.mubr.bf16.mxu1 %v919_v3 }
  0x2d   :  { %890 = vmatmul.mubr.msk.bf16.vlgmr.msra.gmra.mrb[16].mxu0 %vm149_vm0, %v983_v23  ;;  %892 = vmatmul.mubr.msk.bf16.vlgmr.msra.gmra.mrb[16].mxu1 %vm149_vm0, %v983_v23 }
  0x2e   :  { %619 = vmatpush1.bf16.msra.mxu0 %v878_v63  ;;  %672 = vmatpush1.bf16.msra.mxu1 %v880_v2 }
  0x2f   :  { %554 = vmatprep.mubr.bf16.mxu0 %v919_v3  ;;  %607 = vmatprep.mubr.bf16.mxu1 %v919_v3 }
  0x30   :  { %620 = vmatprep.subr.bf16.mxu0 %v887_v4  ;;  %673 = vmatprep.subr.bf16.mxu1 %v889_v5 }
  0x32   :  { %621 = vmatpush1.bf16.msra.mxu0 %v886_v6  ;;  %674 = vmatpush1.bf16.msra.mxu1 %v888_v7 }
  0x35   :  { %891 = vmatmul.mubr.msk.bf16.gmra.mrb[20].mxu0 %vm149_vm0, %v1024_v42  ;;  %893 = vmatmul.mubr.msk.bf16.gmra.mrb[20].mxu1 %vm149_vm0, %v1024_v42 }
  0x36   :  { %650 = vmatprep.mubr.bf16.mxu0 %v919_v3  ;;  %703 = vmatprep.mubr.bf16.mxu1 %v919_v3 }
  0x3d   :  { %894 = vmatmul.mubr.msk.bf16.vlgmr.msra.gmra.mrb[24].mxu0 %vm149_vm0, %v983_v23  ;;  %896 = vmatmul.mubr.msk.bf16.vlgmr.msra.gmra.mrb[24].mxu1 %vm149_vm0, %v983_v23 }
  0x3e   :  { %660 = vmatprep.mubr.bf16.mxu0 %v919_v3  ;;  %713 = vmatprep.mubr.bf16.mxu1 %v919_v3 }
  0x45   :  { %895 = vmatmul.mubr.msk.bf16.gmra.mrb[28].mxu0 %vm149_vm0, %v1024_v42  ;;  %897 = vmatmul.mubr.msk.bf16.gmra.mrb[28].mxu1 %vm149_vm0, %v1024_v42 }
  0x87   :  { %v1110_v17 = vpop.permute.xlu1 %51 }
  0x88   :  { %v1108_v8 = vpop.permute.xlu0 %41 }
  0x8b   :  { %v1125_v39 = vpop.permute.xlu1 %56 }
  0x90   :  { %v1112_v18 = vpop.permute.xlu0 %46 }
  0xe0   :  { %v190_v9 = vpop.f32.mrb[0].mxu0  ;;  %v243_v10 = vpop.f32.mrb[0].mxu1 }
  0xe1   :  { %v192_v11 = vpop.f32.mrb[1].mxu0  ;;  %v245_v12 = vpop.f32.mrb[1].mxu1  ;;  %v191_v23 = vadd.f32 %v190_v9, %v1108_v8  ;;  %v244_v24 = vadd.f32 %v243_v10, %v1108_v8 }
  0xe2   :  { %v194_v13 = vpop.f32.mrb[2].mxu0  ;;  %v247_v14 = vpop.f32.mrb[2].mxu1  ;;  %v193_v25 = vadd.f32 %v192_v11, %v1108_v8  ;;  %v246_v26 = vadd.f32 %v245_v12, %v1108_v8 }
  0xe3   :  { %v196_v15 = vpop.f32.mrb[3].mxu0  ;;  %v249_v16 = vpop.f32.mrb[3].mxu1  ;;  %v195_v29 = vadd.f32 %v194_v13, %v1112_v18  ;;  %v248_v30 = vadd.f32 %v247_v14, %v1112_v18  ;;  %v368_v35 = vmax.f32 %v191_v23, 0.0  ;;  %v370_v36 = vmax.f32 %v244_v24, 0.0 }
  0xe4   :  { %v197_v31 = vadd.f32 %v196_v15, %v1112_v18  ;;  %v250_v32 = vadd.f32 %v249_v16, %v1112_v18  ;;  %v369_v37 = vmax.f32 %v193_v25, 0.0  ;;  %v371_v38 = vmax.f32 %v246_v26, 0.0 }
  0xe5   :  { %v376_v40 = vmax.f32 %v195_v29, 0.0  ;;  %v378_v41 = vmax.f32 %v248_v30, 0.0 }
  0xe6   :  { %v377_v42 = vmax.f32 %v197_v31, 0.0  ;;  %v379_v43 = vmax.f32 %v250_v32, 0.0 }
  0xe8   :  { %v200_v3 = vpop.f32.mrb[4].mxu0  ;;  %v253_v19 = vpop.f32.mrb[4].mxu1 }
  0xe9   :  { %v202_v20 = vpop.f32.mrb[5].mxu0  ;;  %v255_v21 = vpop.f32.mrb[5].mxu1  ;;  %v1123_v34 = vadd.f32 %v200_v3, %v1110_v17  ;;  %v1129_v46 = vadd.f32 %v253_v19, %v1110_v17 }
  0xea   :  { %v204_v22 = vpop.f32.mrb[6].mxu0  ;;  %v257_v27 = vpop.f32.mrb[6].mxu1  ;;  %v1132_v47 = vadd.f32 %v202_v20, %v1110_v17  ;;  %v1136_v51 = vadd.f32 %v255_v21, %v1110_v17 }
  0xeb   :  { %v206_v28 = vpop.f32.mrb[7].mxu0  ;;  %v259_v33 = vpop.f32.mrb[7].mxu1  ;;  %v384_v45 = vmax.f32 %v1123_v34, 0.0  ;;  %v1139_v52 = vadd.f32 %v204_v22, %v1125_v39  ;;  %v1144_v57 = vadd.f32 %v257_v27, %v1125_v39  ;;  %v386_v19 = vmax.f32 %v1129_v46, 0.0 }
  0xec   :  { %v207_v14 = vadd.f32 %v206_v28, %v1125_v39  ;;  %v385_v20 = vmax.f32 %v1132_v47, 0.0  ;;  %v387_v24 = vmax.f32 %v1136_v51, 0.0  ;;  %v260_v31 = vadd.f32 %v259_v33, %v1125_v39 }
  0xed   :  { %v392_v25 = vmax.f32 %v1139_v52, 0.0  ;;  %v394_v30 = vmax.f32 %v1144_v57, 0.0 }
  0xf0   :  { %v296_v44 = vpop.f32.mrb[8].mxu0  ;;  %v349_v49 = vpop.f32.mrb[8].mxu1 }
  0xf1   :  { %v297_v48 = vadd.f32 %v296_v44, %v1108_v8  ;;  %v298_v50 = vpop.f32.mrb[9].mxu0  ;;  %v350_v53 = vadd.f32 %v349_v49, %v1108_v8  ;;  %v351_v55 = vpop.f32.mrb[9].mxu1 }
  0xf2   :  { %v299_v54 = vadd.f32 %v298_v50, %v1108_v8  ;;  %v300_v56 = vpop.f32.mrb[10].mxu0  ;;  %v352_v59 = vadd.f32 %v351_v55, %v1108_v8  ;;  %v353_v61 = vpop.f32.mrb[10].mxu1 }
  0xf3   :  { %v372_v58 = vmax.f32 %v297_v48, 0.0  ;;  %v301_v60 = vadd.f32 %v300_v56, %v1112_v18  ;;  %v302_v62 = vpop.f32.mrb[11].mxu0  ;;  %v374_v63 = vmax.f32 %v350_v53, 0.0  ;;  %v354_v1 = vadd.f32 %v353_v61, %v1112_v18  ;;  %v355_v4 = vpop.f32.mrb[11].mxu1 }
  0xf4   :  { %v373_v0 = vmax.f32 %v299_v54, 0.0  ;;  %v303_v2 = vadd.f32 %v302_v62, %v1112_v18  ;;  %v375_v6 = vmax.f32 %v352_v59, 0.0  ;;  %v356_v9 = vadd.f32 %v355_v4, %v1112_v18 }
  0xf5   :  { %v1150_v5 = vmax.f32 %v368_v35, %v372_v58  ;;  %v380_v7 = vmax.f32 %v301_v60, 0.0  ;;  %v1153_v10 = vmax.f32 %v370_v36, %v374_v63  ;;  %v382_v12 = vmax.f32 %v354_v1, 0.0 }
  0xf6   :  { %v1155_v11 = vmax.f32 %v369_v37, %v373_v0  ;;  %v381_v13 = vmax.f32 %v303_v2, 0.0  ;;  %v1158_v15 = vmax.f32 %v371_v38, %v375_v6  ;;  %v383_v3 = vmax.f32 %v356_v9, 0.0 }
  0xf7   :  { %v1160_v16 = vmax.f32 %v376_v40, %v380_v7  ;;  %v1164_v21 = vmax.f32 %v378_v41, %v382_v12  ;;  %v393_v38 = vmax.f32 %v207_v14, 0.0  ;;  %v395_v58 = vmax.f32 %v260_v31, 0.0 }
  0xf8   :  { %v1166_v22 = vmax.f32 %v377_v42, %v381_v13  ;;  %v306_v23 = vpop.f32.mrb[12].mxu0  ;;  %v1170_v26 = vmax.f32 %v379_v43, %v383_v3  ;;  %v359_v28 = vpop.f32.mrb[12].mxu1 }
  0xf9   :  { %v307_v27 = vadd.f32 %v306_v23, %v1110_v17  ;;  %v308_v29 = vpop.f32.mrb[13].mxu0  ;;  %v360_v32 = vadd.f32 %v359_v28, %v1110_v17  ;;  %v361_v36 = vpop.f32.mrb[13].mxu1 }
  0xfa   :  { %v309_v35 = vadd.f32 %v308_v29, %v1110_v17  ;;  %v310_v37 = vpop.f32.mrb[14].mxu0  ;;  %v362_v41 = vadd.f32 %v361_v36, %v1110_v17  ;;  %v363_v43 = vpop.f32.mrb[14].mxu1 }
  0xfb   :  { %v388_v40 = vmax.f32 %v307_v27, 0.0  ;;  %v311_v42 = vadd.f32 %v310_v37, %v1125_v39  ;;  %v312_v44 = vpop.f32.mrb[15].mxu0  ;;  %v390_v46 = vmax.f32 %v360_v32, 0.0  ;;  %v364_v48 = vadd.f32 %v363_v43, %v1125_v39  ;;  %v365_v49 = vpop.f32.mrb[15].mxu1 }
  0xfc   :  { %v389_v47 = vmax.f32 %v309_v35, 0.0  ;;  %v313_v33 = vadd.f32 %v312_v44, %v1125_v39  ;;  %v391_v51 = vmax.f32 %v362_v41, 0.0  ;;  %v366_v53 = vadd.f32 %v365_v49, %v1125_v39 }
  0xfd   :  { %v1183_v50 = vmax.f32 %v384_v45, %v388_v40  ;;  %v396_v52 = vmax.f32 %v311_v42, 0.0  ;;  %v1186_v54 = vmax.f32 %v386_v19, %v390_v46  ;;  %v398_v56 = vmax.f32 %v364_v48, 0.0 }
  0xfe   :  { %v1188_v55 = vmax.f32 %v385_v20, %v389_v47  ;;  %v397_v57 = vmax.f32 %v313_v33, 0.0  ;;  %v1190_v59 = vmax.f32 %v387_v24, %v391_v51  ;;  %v399_v61 = vmax.f32 %v366_v53, 0.0 }
  0xff   :  { %v1192_v60 = vmax.f32 %v392_v25, %v396_v52  ;;  %v1194_v62 = vmax.f32 %v394_v30, %v398_v56 }
 0x100   :  { %v1196_v34 = vmax.f32 %v393_v38, %v397_v57  ;;  %v546_v45 = vpop.f32.mrb[16].mxu0  ;;  %v1198_v63 = vmax.f32 %v395_v58, %v399_v61  ;;  %v599_v0 = vpop.f32.mrb[16].mxu1 }
 0x101   :  { %v548_v1 = vpop.f32.mrb[17].mxu0  ;;  %v601_v2 = vpop.f32.mrb[17].mxu1  ;;  %v547_v3 = vadd.f32 %v546_v45, %v1108_v8  ;;  %v600_v19 = vadd.f32 %v599_v0, %v1108_v8 }
 0x102   :  { %v550_v4 = vpop.f32.mrb[18].mxu0  ;;  %v603_v6 = vpop.f32.mrb[18].mxu1  ;;  %v549_v20 = vadd.f32 %v548_v1, %v1108_v8  ;;  %v602_v25 = vadd.f32 %v601_v2, %v1108_v8 }
 0x103   :  { %v552_v7 = vpop.f32.mrb[19].mxu0  ;;  %v605_v9 = vpop.f32.mrb[19].mxu1  ;;  %v551_v27 = vadd.f32 %v550_v4, %v1112_v18  ;;  %v604_v28 = vadd.f32 %v603_v6, %v1112_v18  ;;  %v724_v42 = vmax.f32 %v547_v3, 0.0  ;;  %v726_v43 = vmax.f32 %v600_v19, 0.0 }
 0x104   :  { %v553_v31 = vadd.f32 %v552_v7, %v1112_v18  ;;  %v1208_v32 = vadd.f32 %v605_v9, %v1112_v18  ;;  %v725_v44 = vmax.f32 %v549_v20, 0.0  ;;  %v727_v47 = vmax.f32 %v602_v25, 0.0 }
 0x105   :  { %v732_v48 = vmax.f32 %v551_v27, 0.0  ;;  %v734_v33 = vmax.f32 %v604_v28, 0.0 }
 0x106   :  { %v733_v51 = vmax.f32 %v553_v31, 0.0  ;;  %v735_v52 = vmax.f32 %v1208_v32, 0.0 }
 0x108   :  { %v556_v12 = vpop.f32.mrb[20].mxu0  ;;  %v609_v13 = vpop.f32.mrb[20].mxu1 }
 0x109   :  { %v558_v14 = vpop.f32.mrb[21].mxu0  ;;  %v611_v23 = vpop.f32.mrb[21].mxu1  ;;  %v1211_v35 = vadd.f32 %v556_v12, %v1110_v17  ;;  %v1214_v36 = vadd.f32 %v609_v13, %v1110_v17 }
 0x10a   :  { %v560_v24 = vpop.f32.mrb[22].mxu0  ;;  %v613_v29 = vpop.f32.mrb[22].mxu1  ;;  %v1217_v38 = vadd.f32 %v558_v14, %v1110_v17  ;;  %v1220_v40 = vadd.f32 %v611_v23, %v1110_v17 }
 0x10b   :  { %v562_v30 = vpop.f32.mrb[23].mxu0  ;;  %v615_v37 = vpop.f32.mrb[23].mxu1  ;;  %v1223_v41 = vadd.f32 %v560_v24, %v1125_v39  ;;  %v1226_v46 = vadd.f32 %v613_v29, %v1125_v39  ;;  %v740_v53 = vmax.f32 %v1211_v35, 0.0  ;;  %v742_v56 = vmax.f32 %v1214_v36, 0.0 }
 0x10c   :  { %v1229_v49 = vadd.f32 %v562_v30, %v1125_v39  ;;  %v741_v58 = vmax.f32 %v1217_v38, 0.0  ;;  %v743_v61 = vmax.f32 %v1220_v40, 0.0  ;;  %v1240_v6 = vadd.f32 %v615_v37, %v1125_v39 }
 0x10d   :  { %v748_v45 = vmax.f32 %v1223_v41, 0.0 }
 0x110   :  { %v652_v57 = vpop.f32.mrb[24].mxu0  ;;  %v705_v1 = vpop.f32.mrb[24].mxu1 }
 0x111   :  { %v653_v0 = vadd.f32 %v652_v57, %v1108_v8  ;;  %v654_v2 = vpop.f32.mrb[25].mxu0  ;;  %v706_v7 = vadd.f32 %v705_v1, %v1108_v8  ;;  %v707_v12 = vpop.f32.mrb[25].mxu1 }
 0x112   :  { %v655_v9 = vadd.f32 %v654_v2, %v1108_v8  ;;  %v656_v13 = vpop.f32.mrb[26].mxu0  ;;  %v708_v19 = vadd.f32 %v707_v12, %v1108_v8  ;;  %v709_v23 = vpop.f32.mrb[26].mxu1 }
 0x113   :  { %v728_v3 = vmax.f32 %v653_v0, 0.0  ;;  %v657_v20 = vadd.f32 %v656_v13, %v1112_v18  ;;  %v658_v24 = vpop.f32.mrb[27].mxu0  ;;  %v730_v25 = vmax.f32 %v706_v7, 0.0  ;;  %v710_v28 = vadd.f32 %v709_v23, %v1112_v18  ;;  %v711_v30 = vpop.f32.mrb[27].mxu1 }
 0x114   :  { %v729_v27 = vmax.f32 %v655_v9, 0.0  ;;  %v659_v29 = vadd.f32 %v658_v24, %v1112_v18  ;;  %v731_v32 = vmax.f32 %v708_v19, 0.0  ;;  %v712_v57 = vadd.f32 %v711_v30, %v1112_v18 }
 0x115   :  { %v756_v31 = vmax.f32 %v724_v42, %v728_v3  ;;  %v736_v37 = vmax.f32 %v657_v20, 0.0  ;;  %v758_v1 = vmax.f32 %v726_v43, %v730_v25  ;;  %v738_v2 = vmax.f32 %v710_v28, 0.0 }
 0x116   :  { %v757_v0 = vmax.f32 %v725_v44, %v729_v27  ;;  %v737_v8 = vmax.f32 %v659_v29, 0.0  ;;  %v759_v13 = vmax.f32 %v727_v47, %v731_v32  ;;  %v739_v7 = vmax.f32 %v712_v57, 0.0 }
 0x117   :  { %v772_v12 = vmax.f32 %v1150_v5, %v756_v31  ;;  %v760_v14 = vmax.f32 %v732_v48, %v736_v37  ;;  %v774_v9 = vmax.f32 %v1153_v10, %v758_v1  ;;  %v762_v24 = vmax.f32 %v734_v33, %v738_v2 }
 0x118   :  { %v773_v23 = vmax.f32 %v1155_v11, %v757_v0  ;;  %v761_v4 = vmax.f32 %v733_v51, %v737_v8  ;;  %v662_v42 = vpop.f32.mrb[28].mxu0  ;;  %v775_v3 = vmax.f32 %v1158_v15, %v759_v13  ;;  %v763_v43 = vmax.f32 %v735_v52, %v739_v7  ;;  %v715_v19 = vpop.f32.mrb[28].mxu1 }
 0x119   :  { %v776_v18 = vmax.f32 %v1160_v16, %v760_v14  ;;  %v663_v44 = vadd.f32 %v662_v42, %v1110_v17  ;;  %v664_v20 = vpop.f32.mrb[29].mxu0  ;;  %v778_v47 = vmax.f32 %v1164_v21, %v762_v24  ;;  %v716_v10 = vadd.f32 %v715_v19, %v1110_v17  ;;  %v717_v11 = vpop.f32.mrb[29].mxu1 }
 0x11a   :  { %v906_v5 = vpack.c.bf16 %v773_v23, %v772_v12  ;;  %v777_v48 = vmax.f32 %v1166_v22, %v761_v4  ;;  %v666_v33 = vpop.f32.mrb[30].mxu0  ;;  %v907_v51 = vpack.c.bf16 %v775_v3, %v774_v9  ;;  %v779_v25 = vmax.f32 %v1170_v26, %v763_v43  ;;  %v719_v52 = vpop.f32.mrb[30].mxu1 }
 0x11b   :  { %v744_v15 = vmax.f32 %v663_v44, 0.0  ;;  %v665_v16 = vadd.f32 %v664_v20, %v1110_v17  ;;  %v668_v14 = vpop.f32.mrb[31].mxu0  ;;  %v746_v21 = vmax.f32 %v716_v10, 0.0  ;;  %v718_v22 = vadd.f32 %v717_v11, %v1110_v17  ;;  %v721_v28 = vpop.f32.mrb[31].mxu1 }
 0x11c   :  { %836 = vst [vmem:[%s1316_s3] sm:$0xff] %v906_v5  ;;  %v908_v27 = vpack.c.bf16 %v777_v48, %v776_v18  ;;  %v667_v4 = vadd.f32 %v666_v33, %v1125_v39  ;;  %837 = vst [vmem:[%s1316_s3 + $0x8] sm:$0xff] %v907_v51  ;;  %v909_v26 = vpack.c.bf16 %v779_v25, %v778_v47  ;;  %v751_v12 = vmax.f32 %v1240_v6, 0.0 }
 0x11d   :  { %v764_v29 = vmax.f32 %v740_v53, %v744_v15  ;;  %v745_v30 = vmax.f32 %v665_v16, 0.0  ;;  %v720_v31 = vadd.f32 %v719_v52, %v1125_v39  ;;  %v766_v17 = vmax.f32 %v742_v56, %v746_v21 }
 0x11e   :  { %838 = vst [vmem:[%s1316_s3 + $0x10] sm:$0xff] %v908_v27  ;;  %v747_v32 = vmax.f32 %v718_v22, 0.0  ;;  %v752_v37 = vmax.f32 %v667_v4, 0.0  ;;  %v669_v57 = vadd.f32 %v668_v14, %v1125_v39  ;;  %839 = vst [vmem:[%s1316_s3 + $0x18] sm:$0xff] %v909_v26  ;;  %v722_v0 = vadd.f32 %v721_v28, %v1125_v39 }
 0x11f   :  { %v780_v35 = vmax.f32 %v1183_v50, %v764_v29  ;;  %v765_v53 = vmax.f32 %v741_v58, %v745_v30  ;;  %v754_v1 = vmax.f32 %v720_v31, 0.0  ;;  %v782_v2 = vmax.f32 %v1186_v54, %v766_v17 }
 0x120   :  { %v767_v36 = vmax.f32 %v743_v61, %v747_v32  ;;  %v768_v56 = vmax.f32 %v748_v45, %v752_v37  ;;  %v753_v8 = vmax.f32 %v669_v57, 0.0  ;;  %v1317_v50 = vmax.f32 %v1226_v46, 0.0 }
 0x121   :  { %v781_v13 = vmax.f32 %v1188_v55, %v765_v53  ;;  %v755_v58 = vmax.f32 %v722_v0, 0.0  ;;  %v1318_v54 = vmax.f32 %v1229_v49, 0.0 }
 0x122   :  { %v770_v38 = vmax.f32 %v1317_v50, %v754_v1  ;;  %v783_v7 = vmax.f32 %v1190_v59, %v767_v36  ;;  %v784_v39 = vmax.f32 %v1192_v60, %v768_v56 }
 0x123   :  { %v769_v40 = vmax.f32 %v1318_v54, %v753_v8  ;;  %v910_v61 = vpack.c.bf16 %v781_v13, %v780_v35  ;;  %v771_v45 = vmax.f32 %v751_v12, %v755_v58 }
 0x124   :  { %v786_v41 = vmax.f32 %v1194_v62, %v770_v38  ;;  %v911_v9 = vpack.c.bf16 %v783_v7, %v782_v2 }
 0x125   :  { %v785_v6 = vmax.f32 %v1196_v34, %v769_v40  ;;  %840 = vst [vmem:[%s1316_s3 + $0x20] sm:$0xff] %v910_v61  ;;  %v787_v55 = vmax.f32 %v1198_v63, %v771_v45 }
 0x126   :  { %841 = vst [vmem:[%s1316_s3 + $0x28] sm:$0xff] %v911_v9 }
 0x127   :  { %v912_v59 = vpack.c.bf16 %v785_v6, %v784_v39  ;;  %v913_v60 = vpack.c.bf16 %v787_v55, %v786_v41 }
 0x129   :  { %842 = vst [vmem:[%s1316_s3 + $0x30] sm:$0xff] %v912_v59  ;;  %843 = vst [vmem:[%s1316_s3 + $0x38] sm:$0xff] %v913_v60 }

// kernel: cnn_forward.4
= control target key start
LH: loop header
LB: loop body
LE: loop exit
PB: predicated region body
PF: predicated region fallthrough
CT: control target
= control target key end

     0   :  { %v1298_v1 = vmov 0   ;;  %vm355_vm0 = vcmask 261120   ;;  %s1625_s0 = inlined_call_operand.vmem [shape: bf16[288,512], index: 0, kind: input, shape index: {}]   ;;  %s1626_s1 = inlined_call_operand.vmem [shape: bf16[64,288], index: 1, kind: input, shape index: {}]   ;;  %s1627_s2 = inlined_call_operand.vmem [shape: f32[64,1], index: 2, kind: input, shape index: {}]   ;;  %s1628_s3 = inlined_call_operand.vmem [shape: bf16[64,128], index: 3, kind: output, shape index: {}]  }
   0x1   :  { %v1174_v0 = vld [vmem:[%s1625_s0 + $0x4] ss:$16 sps:$4 sm:$0xff]   ;;  %1172 = vset.pattern.permute.xlu0 %v1298_v1  ;;  %1173 = vset.pattern.permute.xlu1 %v1298_v1  ;;  %v1176_v2 = vld [vmem:[%s1625_s0 + $0xc] ss:$16 sps:$4 sm:$0xff]   ;;  %v1178_v3 = vld [vmem:[%s1625_s0] ss:$16 sps:$4 sm:$0xff]  }
   0x2   :  { %368 = vmatprep.subr.bf16.mxu0 %v1174_v0  ;;  %v1179_v4 = vld [vmem:[%s1625_s0 + $0x8] ss:$16 sps:$4 sm:$0xff]   ;;  %754 = vmatprep.subr.bf16.mxu1 %v1176_v2  ;;  %v1180_v5 = vld [vmem:[%s1625_s0 + $0x24] ss:$16 sps:$4 sm:$0xff]   ;;  %v1182_v6 = vld [vmem:[%s1625_s0 + $0x2c] ss:$16 sps:$4 sm:$0xff]  }
   0x3   :  { %369 = vmatpush1.bf16.msra.mxu0 %v1178_v3  ;;  %755 = vmatpush1.bf16.msra.mxu1 %v1179_v4  ;;  %v1184_v7 = vld [vmem:[%s1625_s0 + $0x20] ss:$16 sps:$4 sm:$0xff]   ;;  %v1185_v8 = vld [vmem:[%s1625_s0 + $0x28] ss:$16 sps:$4 sm:$0xff]   ;;  %v1186_v9 = vld [vmem:[%s1625_s0 + $0x44] ss:$16 sps:$4 sm:$0xff]  }
   0x4   :  { %370 = vmatprep.subr.bf16.mxu0 %v1180_v5  ;;  %756 = vmatprep.subr.bf16.mxu1 %v1182_v6  ;;  %v1188_v10 = vld [vmem:[%s1625_s0 + $0x4c] ss:$16 sps:$4 sm:$0xff]   ;;  %v1190_v11 = vld [vmem:[%s1625_s0 + $0x40] ss:$16 sps:$4 sm:$0xff]   ;;  %v1191_v12 = vld [vmem:[%s1625_s0 + $0x48] ss:$16 sps:$4 sm:$0xff]  }
   0x5   :  { %v1192_v13 = vld [vmem:[%s1625_s0 + $0x64] ss:$16 sps:$4 sm:$0xff]   ;;  %v1194_v14 = vld [vmem:[%s1625_s0 + $0x6c] ss:$16 sps:$4 sm:$0xff]   ;;  %v1196_v15 = vld [vmem:[%s1625_s0 + $0x60] ss:$16 sps:$4 sm:$0xff]  }
   0x6   :  { %v1197_v16 = vld [vmem:[%s1625_s0 + $0x68] ss:$16 sps:$4 sm:$0xff]   ;;  %v1198_v17 = vld [vmem:[%s1625_s0 + $0x84] ss:$16 sps:$4 sm:$0xff]   ;;  %v1200_v18 = vld [vmem:[%s1625_s0 + $0x8c] ss:$16 sps:$4 sm:$0xff]  }
   0x7   :  { %371 = vmatpush1.bf16.msra.mxu0 %v1184_v7  ;;  %757 = vmatpush1.bf16.msra.mxu1 %v1185_v8  ;;  %v1202_v19 = vld [vmem:[%s1625_s0 + $0x80] ss:$16 sps:$4 sm:$0xff]   ;;  %v1203_v20 = vld [vmem:[%s1625_s0 + $0x88] ss:$16 sps:$4 sm:$0xff]   ;;  %v1204_v21 = vld [vmem:[%s1625_s0 + $0xa4] ss:$16 sps:$4 sm:$0xff]  }
   0x8   :  { %372 = vmatprep.subr.bf16.mxu0 %v1186_v9  ;;  %758 = vmatprep.subr.bf16.mxu1 %v1188_v10  ;;  %v1206_v22 = vld [vmem:[%s1625_s0 + $0xac] ss:$16 sps:$4 sm:$0xff]   ;;  %v1208_v23 = vld [vmem:[%s1625_s0 + $0xa0] ss:$16 sps:$4 sm:$0xff]   ;;  %v1209_v24 = vld [vmem:[%s1625_s0 + $0xa8] ss:$16 sps:$4 sm:$0xff]  }
   0x9   :  { %v1210_v25 = vld [vmem:[%s1625_s0 + $0xc4] ss:$16 sps:$4 sm:$0xff]   ;;  %v1212_v26 = vld [vmem:[%s1625_s0 + $0xcc] ss:$16 sps:$4 sm:$0xff]   ;;  %v1214_v27 = vld [vmem:[%s1625_s0 + $0xc0] ss:$16 sps:$4 sm:$0xff]  }
   0xa   :  { %v1215_v28 = vld [vmem:[%s1625_s0 + $0xc8] ss:$16 sps:$4 sm:$0xff]   ;;  %v1216_v29 = vld [vmem:[%s1625_s0 + $0xe4] ss:$16 sps:$4 sm:$0xff]   ;;  %v1218_v30 = vld [vmem:[%s1625_s0 + $0xec] ss:$16 sps:$4 sm:$0xff]  }
   0xb   :  { %373 = vmatpush1.bf16.msra.mxu0 %v1190_v11  ;;  %759 = vmatpush1.bf16.msra.mxu1 %v1191_v12  ;;  %v1220_v31 = vld [vmem:[%s1625_s0 + $0xe0] ss:$16 sps:$4 sm:$0xff]   ;;  %v1221_v32 = vld [vmem:[%s1625_s0 + $0xe8] ss:$16 sps:$4 sm:$0xff]   ;;  %v1222_v33 = vld [vmem:[%s1625_s0 + $0x104] ss:$16 sps:$4 sm:$0xff]  }
   0xc   :  { %374 = vmatprep.subr.bf16.mxu0 %v1192_v13  ;;  %760 = vmatprep.subr.bf16.mxu1 %v1194_v14  ;;  %v1224_v34 = vld [vmem:[%s1625_s0 + $0x10c] ss:$16 sps:$4 sm:$0xff]   ;;  %v1226_v35 = vld [vmem:[%s1625_s0 + $0x100] ss:$16 sps:$4 sm:$0xff]   ;;  %v1227_v36 = vld [vmem:[%s1625_s0 + $0x108] ss:$16 sps:$4 sm:$0xff]  }
   0xd   :  { %v1228_v37 = vld [vmem:[%s1625_s0 + $0x124] ss:$16 sps:$4 sm:$0xff]   ;;  %v1230_v38 = vld [vmem:[%s1625_s0 + $0x12c] ss:$16 sps:$4 sm:$0xff]   ;;  %v1232_v39 = vld [vmem:[%s1625_s0 + $0x120] ss:$16 sps:$4 sm:$0xff]  }
   0xe   :  { %v1233_v40 = vld [vmem:[%s1625_s0 + $0x128] ss:$16 sps:$4 sm:$0xff]   ;;  %v1234_v41 = vld [vmem:[%s1625_s0 + $0x144] ss:$16 sps:$4 sm:$0xff]   ;;  %v1236_v42 = vld [vmem:[%s1625_s0 + $0x14c] ss:$16 sps:$4 sm:$0xff]  }
   0xf   :  { %375 = vmatpush1.bf16.msra.mxu0 %v1196_v15  ;;  %761 = vmatpush1.bf16.msra.mxu1 %v1197_v16  ;;  %v1238_v43 = vld [vmem:[%s1625_s0 + $0x140] ss:$16 sps:$4 sm:$0xff]   ;;  %v1239_v44 = vld [vmem:[%s1625_s0 + $0x148] ss:$16 sps:$4 sm:$0xff]   ;;  %v1240_v45 = vld [vmem:[%s1625_s0 + $0x164] ss:$16 sps:$4 sm:$0xff]  }
  0x10   :  { %376 = vmatprep.subr.bf16.mxu0 %v1198_v17  ;;  %762 = vmatprep.subr.bf16.mxu1 %v1200_v18  ;;  %v1242_v46 = vld [vmem:[%s1625_s0 + $0x16c] ss:$16 sps:$4 sm:$0xff]   ;;  %v1244_v47 = vld [vmem:[%s1625_s0 + $0x160] ss:$16 sps:$4 sm:$0xff]   ;;  %v1245_v48 = vld [vmem:[%s1625_s0 + $0x168] ss:$16 sps:$4 sm:$0xff]  }
  0x11   :  { %v1272_v49 = vld [vmem:[%s1626_s1 + $0x4] ss:$12 sps:$4 sm:$0xff]   ;;  %v1248_v51 = vld [vmem:[%s1625_s0 + $0x18c] ss:$16 sps:$4 sm:$0xff]   ;;  %v1251_v53 = vld [vmem:[%s1625_s0 + $0x188] ss:$16 sps:$4 sm:$0xff]  }
  0x12   :  { %v1246_v50 = vld [vmem:[%s1625_s0 + $0x184] ss:$16 sps:$4 sm:$0xff]   ;;  %400 = vmatprep.mubr.bf16.mxu0 %v1272_v49  ;;  %786 = vmatprep.mubr.bf16.mxu1 %v1272_v49  ;;  %v1250_v52 = vld [vmem:[%s1625_s0 + $0x180] ss:$16 sps:$4 sm:$0xff]   ;;  %v1254_v55 = vld [vmem:[%s1625_s0 + $0x1ac] ss:$16 sps:$4 sm:$0xff]  }
  0x13   :  { %377 = vmatpush1.bf16.msra.mxu0 %v1202_v19  ;;  %763 = vmatpush1.bf16.msra.mxu1 %v1203_v20  ;;  %v1252_v54 = vld [vmem:[%s1625_s0 + $0x1a4] ss:$16 sps:$4 sm:$0xff]   ;;  %v1256_v56 = vld [vmem:[%s1625_s0 + $0x1a0] ss:$16 sps:$4 sm:$0xff]   ;;  %v1257_v57 = vld [vmem:[%s1625_s0 + $0x1a8] ss:$16 sps:$4 sm:$0xff]  }
  0x14   :  { %378 = vmatprep.subr.bf16.mxu0 %v1204_v21  ;;  %764 = vmatprep.subr.bf16.mxu1 %v1206_v22  ;;  %v1258_v58 = vld [vmem:[%s1625_s0 + $0x1c4] ss:$16 sps:$4 sm:$0xff]   ;;  %v1260_v59 = vld [vmem:[%s1625_s0 + $0x1cc] ss:$16 sps:$4 sm:$0xff]   ;;  %v1262_v60 = vld [vmem:[%s1625_s0 + $0x1c0] ss:$16 sps:$4 sm:$0xff]  }
  0x15   :  { %v1263_v61 = vld [vmem:[%s1625_s0 + $0x1c8] ss:$16 sps:$4 sm:$0xff]   ;;  %v1264_v62 = vld [vmem:[%s1625_s0 + $0x1e4] ss:$16 sps:$4 sm:$0xff]   ;;  %v1266_v63 = vld [vmem:[%s1625_s0 + $0x1ec] ss:$16 sps:$4 sm:$0xff]  }
  0x16   :  { %v31_v0 = vld [vmem:[%s1627_s2] sm:$0xff]  ;;  %v33_v2 = vld [vmem:[%s1627_s2 + $0x10] sm:$0xff]  ;;  %v32_v3 = vld [vmem:[%s1627_s2 + $0x8] sm:$0xff] }
  0x17   :  { %379 = vmatpush1.bf16.msra.mxu0 %v1208_v23  ;;  %765 = vmatpush1.bf16.msra.mxu1 %v1209_v24  ;;  %v1268_v4 = vld [vmem:[%s1625_s0 + $0x1e0] ss:$16 sps:$4 sm:$0xff]   ;;  %v1269_v5 = vld [vmem:[%s1625_s0 + $0x1e8] ss:$16 sps:$4 sm:$0xff]   ;;  %v1275_v7 = vld [vmem:[%s1625_s0 + $0x204] ss:$16 sps:$4 sm:$0xff]  }
  0x18   :  { %380 = vmatprep.subr.bf16.mxu0 %v1210_v25  ;;  %766 = vmatprep.subr.bf16.mxu1 %v1212_v26  ;;  %v34_v6 = vld [vmem:[%s1627_s2 + $0x18] sm:$0xff]  ;;  %v1270_v9 = vld [vmem:[%s1626_s1] ss:$12 sps:$4 sm:$0xff]   ;;  %v1287_v14 = vld [vmem:[%s1625_s0 + $0x224] ss:$16 sps:$4 sm:$0xff]  }
  0x19   :  { %77 = vperm.xlu0 %1172, %v31_v0   ;;  %87 = vperm.xlu1 %1173, %v33_v2   ;;  %v1278_v8 = vld [vmem:[%s1625_s0 + $0x20c] ss:$16 sps:$4 sm:$0xff]   ;;  %v35_v10 = vld [vmem:[%s1627_s2 + $0x20] sm:$0xff]  ;;  %v1276_v12 = vld [vmem:[%s1625_s0 + $0x208] ss:$16 sps:$4 sm:$0xff]  }
  0x1a   :  { %v1273_v11 = vld [vmem:[%s1625_s0 + $0x200] ss:$16 sps:$4 sm:$0xff]   ;;  %v1279_v13 = vld [vmem:[%s1626_s1 + $0x1c] ss:$12 sps:$4 sm:$0xff]   ;;  %v1281_v20 = vld [vmem:[%s1626_s1 + $0x18] ss:$12 sps:$4 sm:$0xff]  }
  0x1b   :  { %381 = vmatpush1.bf16.msra.mxu0 %v1214_v27  ;;  %767 = vmatpush1.bf16.msra.mxu1 %v1215_v28  ;;  %v1290_v15 = vld [vmem:[%s1625_s0 + $0x22c] ss:$16 sps:$4 sm:$0xff]   ;;  %v1285_v16 = vld [vmem:[%s1625_s0 + $0x220] ss:$16 sps:$4 sm:$0xff]   ;;  %v1288_v17 = vld [vmem:[%s1625_s0 + $0x228] ss:$16 sps:$4 sm:$0xff]  }
  0x1c   :  { %382 = vmatprep.subr.bf16.mxu0 %v1216_v29  ;;  %768 = vmatprep.subr.bf16.mxu1 %v1218_v30  ;;  %v36_v18 = vld [vmem:[%s1627_s2 + $0x28] sm:$0xff]  ;;  %v37_v19 = vld [vmem:[%s1627_s2 + $0x30] sm:$0xff]  ;;  %v38_v22 = vld [vmem:[%s1627_s2 + $0x38] sm:$0xff] }
  0x1d   :  { %82 = vperm.xlu0 %1172, %v32_v3   ;;  %92 = vperm.xlu1 %1173, %v34_v6   ;;  %v1282_v21 = vld [vmem:[%s1626_s1 + $0x34] ss:$12 sps:$4 sm:$0xff]   ;;  %v1284_v23 = vld [vmem:[%s1626_s1 + $0x30] ss:$12 sps:$4 sm:$0xff]   ;;  %v1291_v24 = vld [vmem:[%s1626_s1 + $0x4c] ss:$12 sps:$4 sm:$0xff]  }
  0x1e   :  { %v1293_v25 = vld [vmem:[%s1626_s1 + $0x48] ss:$12 sps:$4 sm:$0xff]   ;;  %v1295_v27 = vld [vmem:[%s1626_s1 + $0x20] ss:$12 sps:$4 sm:$0xff]   ;;  %v1296_v28 = vld [vmem:[%s1626_s1 + $0x38] ss:$12 sps:$4 sm:$0xff]  }
  0x1f   :  { %383 = vmatpush1.bf16.msra.mxu0 %v1220_v31  ;;  %769 = vmatpush1.bf16.msra.mxu1 %v1221_v32  ;;  %v1294_v26 = vld [vmem:[%s1626_s1 + $0x8] ss:$12 sps:$4 sm:$0xff]   ;;  %v1297_v29 = vld [vmem:[%s1626_s1 + $0x50] ss:$12 sps:$4 sm:$0xff]  }
  0x20   :  { %384 = vmatprep.subr.bf16.mxu0 %v1222_v33  ;;  %770 = vmatprep.subr.bf16.mxu1 %v1224_v34 }
  0x21   :  { %97 = vperm.xlu0 %1172, %v35_v10   ;;  %102 = vperm.xlu1 %1173, %v36_v18  }
  0x23   :  { %385 = vmatpush1.bf16.msra.mxu0 %v1226_v35  ;;  %771 = vmatpush1.bf16.msra.mxu1 %v1227_v36 }
  0x24   :  { %386 = vmatprep.subr.bf16.mxu0 %v1228_v37  ;;  %772 = vmatprep.subr.bf16.mxu1 %v1230_v38 }
  0x25   :  { %107 = vperm.xlu0 %1172, %v37_v19   ;;  %112 = vperm.xlu1 %1173, %v38_v22  }
  0x27   :  { %387 = vmatpush1.bf16.msra.mxu0 %v1232_v39  ;;  %773 = vmatpush1.bf16.msra.mxu1 %v1233_v40 }
  0x28   :  { %388 = vmatprep.subr.bf16.mxu0 %v1234_v41  ;;  %774 = vmatprep.subr.bf16.mxu1 %v1236_v42 }
  0x2b   :  { %389 = vmatpush1.bf16.msra.mxu0 %v1238_v43  ;;  %775 = vmatpush1.bf16.msra.mxu1 %v1239_v44 }
  0x2c   :  { %390 = vmatprep.subr.bf16.mxu0 %v1240_v45  ;;  %776 = vmatprep.subr.bf16.mxu1 %v1242_v46 }
  0x2f   :  { %391 = vmatpush1.bf16.msra.mxu0 %v1244_v47  ;;  %777 = vmatpush1.bf16.msra.mxu1 %v1245_v48 }
  0x30   :  { %392 = vmatprep.subr.bf16.mxu0 %v1246_v50  ;;  %778 = vmatprep.subr.bf16.mxu1 %v1248_v51 }
  0x33   :  { %393 = vmatpush1.bf16.msra.mxu0 %v1250_v52  ;;  %779 = vmatpush1.bf16.msra.mxu1 %v1251_v53 }
  0x34   :  { %394 = vmatprep.subr.bf16.mxu0 %v1252_v54  ;;  %780 = vmatprep.subr.bf16.mxu1 %v1254_v55 }
  0x37   :  { %395 = vmatpush1.bf16.msra.mxu0 %v1256_v56  ;;  %781 = vmatpush1.bf16.msra.mxu1 %v1257_v57 }
  0x38   :  { %396 = vmatprep.subr.bf16.mxu0 %v1258_v58  ;;  %782 = vmatprep.subr.bf16.mxu1 %v1260_v59 }
  0x3b   :  { %397 = vmatpush1.bf16.msra.mxu0 %v1262_v60  ;;  %783 = vmatpush1.bf16.msra.mxu1 %v1263_v61 }
  0x3c   :  { %398 = vmatprep.subr.bf16.mxu0 %v1264_v62  ;;  %784 = vmatprep.subr.bf16.mxu1 %v1266_v63 }
  0x3f   :  { %399 = vmatpush1.bf16.msra.mxu0 %v1268_v4  ;;  %785 = vmatpush1.bf16.msra.mxu1 %v1269_v5 }
  0x40   :  { %441 = vmatprep.subr.bf16.mxu0 %v1275_v7  ;;  %827 = vmatprep.subr.bf16.mxu1 %v1278_v8 }
  0x42   :  { %401 = vmatmul.mubr.bf16.vlgmr.msra.gmra.mrb[0].mxu0 %v1270_v9  ;;  %787 = vmatmul.mubr.bf16.vlgmr.msra.gmra.mrb[0].mxu1 %v1270_v9 }
  0x43   :  { %442 = vmatpush1.bf16.msra.mxu0 %v1273_v11  ;;  %828 = vmatpush1.bf16.msra.mxu1 %v1276_v12 }
  0x44   :  { %410 = vmatprep.mubr.bf16.mxu0 %v1279_v13  ;;  %796 = vmatprep.mubr.bf16.mxu1 %v1279_v13 }
  0x45   :  { %443 = vmatprep.subr.bf16.mxu0 %v1287_v14  ;;  %829 = vmatprep.subr.bf16.mxu1 %v1290_v15 }
  0x47   :  { %444 = vmatpush1.bf16.msra.mxu0 %v1285_v16  ;;  %830 = vmatpush1.bf16.msra.mxu1 %v1288_v17 }
  0x4a   :  { %411 = vmatmul.mubr.bf16.gmra.mrb[4].mxu0 %v1281_v20  ;;  %797 = vmatmul.mubr.bf16.gmra.mrb[4].mxu1 %v1281_v20 }
  0x4b   :  { %420 = vmatprep.mubr.bf16.mxu0 %v1282_v21  ;;  %806 = vmatprep.mubr.bf16.mxu1 %v1282_v21 }
  0x52   :  { %421 = vmatmul.mubr.bf16.gmra.mrb[8].mxu0 %v1284_v23  ;;  %807 = vmatmul.mubr.bf16.gmra.mrb[8].mxu1 %v1284_v23 }
  0x53   :  { %430 = vmatprep.mubr.bf16.mxu0 %v1291_v24  ;;  %816 = vmatprep.mubr.bf16.mxu1 %v1291_v24 }
  0x5a   :  { %431 = vmatmul.mubr.bf16.gmra.mrb[12].mxu0 %v1293_v25  ;;  %817 = vmatmul.mubr.bf16.gmra.mrb[12].mxu1 %v1293_v25 }
  0x5b   :  { %473 = vmatprep.mubr.bf16.mxu0 %v1298_v1  ;;  %859 = vmatprep.mubr.bf16.mxu1 %v1298_v1 }
  0x62   :  { %1024 = vmatmul.mubr.msk.bf16.vlgmr.msra.gmra.mrb[0].mxu0 %vm355_vm0, %v1294_v26  ;;  %1064 = vmatmul.mubr.msk.bf16.vlgmr.msra.gmra.mrb[0].mxu1 %vm355_vm0, %v1294_v26 }
  0x63   :  { %483 = vmatprep.mubr.bf16.mxu0 %v1298_v1  ;;  %869 = vmatprep.mubr.bf16.mxu1 %v1298_v1 }
  0x6a   :  { %1025 = vmatmul.mubr.msk.bf16.gmra.mrb[4].mxu0 %vm355_vm0, %v1295_v27  ;;  %1065 = vmatmul.mubr.msk.bf16.gmra.mrb[4].mxu1 %vm355_vm0, %v1295_v27 }
  0x6b   :  { %493 = vmatprep.mubr.bf16.mxu0 %v1298_v1  ;;  %879 = vmatprep.mubr.bf16.mxu1 %v1298_v1 }
  0x72   :  { %1026 = vmatmul.mubr.msk.bf16.gmra.mrb[8].mxu0 %vm355_vm0, %v1296_v28  ;;  %1066 = vmatmul.mubr.msk.bf16.gmra.mrb[8].mxu1 %vm355_vm0, %v1296_v28 }
  0x73   :  { %503 = vmatprep.mubr.bf16.mxu0 %v1298_v1  ;;  %889 = vmatprep.mubr.bf16.mxu1 %v1298_v1 }
  0x7a   :  { %1027 = vmatmul.mubr.msk.bf16.gmra.mrb[12].mxu0 %vm355_vm0, %v1297_v29  ;;  %1067 = vmatmul.mubr.msk.bf16.gmra.mrb[12].mxu1 %vm355_vm0, %v1297_v29 }
  0x98   :  { %v78_v30 = vpop.permute.xlu0 %77  ;;  %v88_v32 = vpop.permute.xlu1 %87 }
  0x9c   :  { %v83_v31 = vpop.permute.xlu0 %82  ;;  %v93_v58 = vpop.permute.xlu1 %92 }
  0xa0   :  { %v103_v27 = vpop.permute.xlu1 %102  ;;  %v98_v28 = vpop.permute.xlu0 %97 }
 0x135   :  { %v475_v33 = vpop.f32.mrb[0].mxu0  ;;  %v861_v34 = vpop.f32.mrb[0].mxu1 }
 0x136   :  { %v1107_v35 = vadd.f32 %v475_v33, %v78_v30  ;;  %v1123_v36 = vadd.f32 %v861_v34, %v78_v30  ;;  %v477_v37 = vpop.f32.mrb[1].mxu0  ;;  %v863_v38 = vpop.f32.mrb[1].mxu1 }
 0x137   :  { %v1108_v39 = vadd.f32 %v477_v37, %v78_v30  ;;  %v1124_v40 = vadd.f32 %v863_v38, %v78_v30  ;;  %v479_v1 = vpop.f32.mrb[2].mxu0  ;;  %v865_v41 = vpop.f32.mrb[2].mxu1 }
 0x138   :  { %v514_v42 = vmax.f32 %v1107_v35, 0.0  ;;  %v900_v43 = vmax.f32 %v1123_v36, 0.0  ;;  %v1109_v44 = vadd.f32 %v479_v1, %v83_v31  ;;  %v1125_v45 = vadd.f32 %v865_v41, %v83_v31  ;;  %v481_v46 = vpop.f32.mrb[3].mxu0  ;;  %v867_v47 = vpop.f32.mrb[3].mxu1 }
 0x139   :  { %v515_v48 = vmax.f32 %v1108_v39, 0.0  ;;  %v901_v49 = vmax.f32 %v1124_v40, 0.0  ;;  %v1110_v50 = vadd.f32 %v481_v46, %v83_v31  ;;  %v1126_v51 = vadd.f32 %v867_v47, %v83_v31 }
 0x13a   :  { %v516_v52 = vmax.f32 %v1109_v44, 0.0  ;;  %v902_v53 = vmax.f32 %v1125_v45, 0.0 }
 0x13b   :  { %v530_v54 = vmax.f32 %v514_v42, %v515_v48  ;;  %v916_v55 = vmax.f32 %v900_v43, %v901_v49  ;;  %v517_v56 = vmax.f32 %v1110_v50, 0.0  ;;  %v903_v57 = vmax.f32 %v1126_v51, 0.0 }
 0x13d   :  { %v924_v59 = vmax.f32 %v530_v54, %v916_v55  ;;  %v531_v60 = vmax.f32 %v516_v52, %v517_v56  ;;  %v917_v61 = vmax.f32 %v902_v53, %v903_v57  ;;  %v485_v62 = vpop.f32.mrb[4].mxu0  ;;  %v871_v63 = vpop.f32.mrb[4].mxu1 }
 0x13e   :  { %v1111_v0 = vadd.f32 %v485_v62, %v88_v32  ;;  %v1127_v2 = vadd.f32 %v871_v63, %v88_v32  ;;  %v487_v3 = vpop.f32.mrb[5].mxu0  ;;  %v873_v4 = vpop.f32.mrb[5].mxu1 }
 0x13f   :  { %v925_v5 = vmax.f32 %v531_v60, %v917_v61  ;;  %v1112_v6 = vadd.f32 %v487_v3, %v88_v32  ;;  %v1128_v7 = vadd.f32 %v873_v4, %v88_v32  ;;  %v489_v8 = vpop.f32.mrb[6].mxu0  ;;  %v875_v9 = vpop.f32.mrb[6].mxu1 }
 0x140   :  { %v518_v10 = vmax.f32 %v1111_v0, 0.0  ;;  %v904_v11 = vmax.f32 %v1127_v2, 0.0  ;;  %v1113_v12 = vadd.f32 %v489_v8, %v93_v58  ;;  %v1129_v13 = vadd.f32 %v875_v9, %v93_v58  ;;  %v491_v14 = vpop.f32.mrb[7].mxu0  ;;  %v877_v15 = vpop.f32.mrb[7].mxu1 }
 0x141   :  { %v1087_v16 = vpack.c.bf16 %v925_v5, %v924_v59  ;;  %v519_v17 = vmax.f32 %v1112_v6, 0.0  ;;  %v905_v18 = vmax.f32 %v1128_v7, 0.0  ;;  %v1114_v19 = vadd.f32 %v491_v14, %v93_v58  ;;  %v108_v59 = vpop.permute.xlu0 %107 }
 0x142   :  { %v520_v20 = vmax.f32 %v1113_v12, 0.0  ;;  %v906_v21 = vmax.f32 %v1129_v13, 0.0  ;;  %v1130_v22 = vadd.f32 %v877_v15, %v93_v58  ;;  %v113_v58 = vpop.permute.xlu1 %112 }
 0x143   :  { %1088 = vst [vmem:[%s1628_s3] sm:$0xff] %v1087_v16   ;;  %v532_v23 = vmax.f32 %v518_v10, %v519_v17  ;;  %v918_v24 = vmax.f32 %v904_v11, %v905_v18  ;;  %v521_v25 = vmax.f32 %v1114_v19, 0.0 }
 0x144   :  { %v907_v26 = vmax.f32 %v1130_v22, 0.0 }
 0x145   :  { %v926_v29 = vmax.f32 %v532_v23, %v918_v24  ;;  %v533_v30 = vmax.f32 %v520_v20, %v521_v25  ;;  %v495_v31 = vpop.f32.mrb[8].mxu0  ;;  %v881_v32 = vpop.f32.mrb[8].mxu1 }
 0x146   :  { %v919_v33 = vmax.f32 %v906_v21, %v907_v26  ;;  %v1115_v34 = vadd.f32 %v495_v31, %v98_v28  ;;  %v1131_v35 = vadd.f32 %v881_v32, %v98_v28  ;;  %v497_v36 = vpop.f32.mrb[9].mxu0  ;;  %v883_v37 = vpop.f32.mrb[9].mxu1 }
 0x147   :  { %v1116_v38 = vadd.f32 %v497_v36, %v98_v28  ;;  %v1132_v39 = vadd.f32 %v883_v37, %v98_v28  ;;  %v499_v40 = vpop.f32.mrb[10].mxu0  ;;  %v885_v1 = vpop.f32.mrb[10].mxu1 }
 0x148   :  { %v927_v41 = vmax.f32 %v533_v30, %v919_v33  ;;  %v522_v42 = vmax.f32 %v1115_v34, 0.0  ;;  %v908_v43 = vmax.f32 %v1131_v35, 0.0  ;;  %v1117_v44 = vadd.f32 %v499_v40, %v103_v27  ;;  %v501_v45 = vpop.f32.mrb[11].mxu0  ;;  %v887_v46 = vpop.f32.mrb[11].mxu1 }
 0x149   :  { %v523_v47 = vmax.f32 %v1116_v38, 0.0  ;;  %v909_v48 = vmax.f32 %v1132_v39, 0.0  ;;  %v1133_v49 = vadd.f32 %v885_v1, %v103_v27  ;;  %v1118_v50 = vadd.f32 %v501_v45, %v103_v27 }
 0x14a   :  { %v1092_v51 = vpack.c.bf16 %v927_v41, %v926_v29  ;;  %v524_v52 = vmax.f32 %v1117_v44, 0.0  ;;  %v1134_v53 = vadd.f32 %v887_v46, %v103_v27 }
 0x14b   :  { %v534_v54 = vmax.f32 %v522_v42, %v523_v47  ;;  %v920_v55 = vmax.f32 %v908_v43, %v909_v48  ;;  %v910_v56 = vmax.f32 %v1133_v49, 0.0  ;;  %v525_v57 = vmax.f32 %v1118_v50, 0.0 }
 0x14c   :  { %1104 = vst [vmem:[%s1628_s3 + $0x8] sm:$0xff] %v1092_v51   ;;  %v911_v60 = vmax.f32 %v1134_v53, 0.0 }
 0x14d   :  { %v928_v61 = vmax.f32 %v534_v54, %v920_v55  ;;  %v535_v62 = vmax.f32 %v524_v52, %v525_v57  ;;  %v505_v63 = vpop.f32.mrb[12].mxu0  ;;  %v891_v0 = vpop.f32.mrb[12].mxu1 }
 0x14e   :  { %v921_v2 = vmax.f32 %v910_v56, %v911_v60  ;;  %v1119_v3 = vadd.f32 %v505_v63, %v108_v59  ;;  %v1135_v4 = vadd.f32 %v891_v0, %v108_v59  ;;  %v507_v5 = vpop.f32.mrb[13].mxu0  ;;  %v893_v6 = vpop.f32.mrb[13].mxu1 }
 0x14f   :  { %v1120_v7 = vadd.f32 %v507_v5, %v108_v59  ;;  %v1136_v8 = vadd.f32 %v893_v6, %v108_v59  ;;  %v509_v9 = vpop.f32.mrb[14].mxu0  ;;  %v895_v10 = vpop.f32.mrb[14].mxu1 }
 0x150   :  { %v929_v11 = vmax.f32 %v535_v62, %v921_v2  ;;  %v526_v12 = vmax.f32 %v1119_v3, 0.0  ;;  %v912_v13 = vmax.f32 %v1135_v4, 0.0  ;;  %v1121_v14 = vadd.f32 %v509_v9, %v113_v58  ;;  %v511_v15 = vpop.f32.mrb[15].mxu0  ;;  %v897_v16 = vpop.f32.mrb[15].mxu1 }
 0x151   :  { %v527_v17 = vmax.f32 %v1120_v7, 0.0  ;;  %v913_v18 = vmax.f32 %v1136_v8, 0.0  ;;  %v1137_v19 = vadd.f32 %v895_v10, %v113_v58  ;;  %v1122_v20 = vadd.f32 %v511_v15, %v113_v58 }
 0x152   :  { %v1097_v21 = vpack.c.bf16 %v929_v11, %v928_v61  ;;  %v528_v22 = vmax.f32 %v1121_v14, 0.0  ;;  %v1138_v23 = vadd.f32 %v897_v16, %v113_v58 }
 0x153   :  { %v536_v24 = vmax.f32 %v526_v12, %v527_v17  ;;  %v922_v25 = vmax.f32 %v912_v13, %v913_v18  ;;  %v914_v26 = vmax.f32 %v1137_v19, 0.0  ;;  %v529_v27 = vmax.f32 %v1122_v20, 0.0 }
 0x154   :  { %1105 = vst [vmem:[%s1628_s3 + $0x10] sm:$0xff] %v1097_v21   ;;  %v915_v28 = vmax.f32 %v1138_v23, 0.0 }
 0x155   :  { %v930_v29 = vmax.f32 %v536_v24, %v922_v25  ;;  %v537_v30 = vmax.f32 %v528_v22, %v529_v27 }
 0x156   :  { %v923_v31 = vmax.f32 %v914_v26, %v915_v28 }
 0x158   :  { %v931_v32 = vmax.f32 %v537_v30, %v923_v31 }
 0x15a   :  { %v1102_v33 = vpack.c.bf16 %v931_v32, %v930_v29 }
 0x15c   :  { %1106 = vst [vmem:[%s1628_s3 + $0x18] sm:$0xff] %v1102_v33  }

// kernel: cnn_forward.5
= control target key start
LH: loop header
LB: loop body
LE: loop exit
PB: predicated region body
PF: predicated region fallthrough
CT: control target
= control target key end

     0   :  { %12 = vsyncpa [#allocation5], 0  ;;  %s11310_s24 = smov 0   ;;  %s11312_s25 = smov 0   ;;  %s13316_s0 = inlined_call_operand.vmem [shape: bf16[2,4096], index: 0, kind: input, shape index: {}]   ;;  %s13317_s1 = inlined_call_operand.vmem [shape: bf16[4096,1024], index: 1, kind: input, shape index: {}]   ;;  %s13318_s2 = inlined_call_operand.vmem [shape: f32[1,1024], index: 2, kind: input, shape index: {}]   ;;  %s13319_s3 = inlined_call_operand.vmem [shape: bf16[1024,512], index: 3, kind: input, shape index: {}]   ;;  %s13320_s4 = inlined_call_operand.vmem [shape: f32[1,512], index: 4, kind: input, shape index: {}]   ;;  %s13321_s5 = inlined_call_operand.vmem [shape: bf16[512,128], index: 5, kind: input, shape index: {}]   ;;  %s13322_s6 = inlined_call_operand.vmem [shape: f32[1,128], index: 6, kind: input, shape index: {}]   ;;  %s13323_s7 = inlined_call_operand.hbm [shape: f32[2,128], index: 7, kind: output, shape index: {}]  }
   0x1   :  { %s11314_s26 = smov 0   ;;  %s11316_s27 = smov 0  }
   0x2   :  { %s11318_s28 = smov 0  }
   0x3 LB: > { %s9510_s29 = sadd.s32 4294967295, %s11264_s28   ;;  %s27_s30 = sadd.s32 1, %s11260_s27  ;;  %s11264_s28 = sphi %s11318_s28, %s18_s28   ;;  %s11260_s27 = sphi %s11316_s27, %s13328_s27   ;;  %s11256_s26 = sphi %s11314_s26, %s13327_s26   ;;  %s11252_s25 = sphi %s11312_s25, %s13326_s25   ;;  %s11248_s24 = sphi %s11310_s24, %s13325_s24  }
   0x4   : > { %p28_p0 = scmp.ge.s32.totalorder %s27_s30, 4  ;;  %p70_p1 = scmp.ne.s32.totalorder %s11252_s25, %s11248_s24 }
   0x5   : > { %p71_p2 = scmp.eq.s32.totalorder %s11264_s28, 0  ;;  %s63_s9 = sadd.s32 1, %s11252_s25 }
   0x6   : > { %s13330_s30 = smov (%p28_p0, %s27_s30), 0  ;;  %p9513_p5 = scmp.ge.s32.totalorder %s11264_s28, 4 }
   0x7   : > { %p72_p3 = por %p71_p2, %p70_p1  ;;  %s60_s8 = ssub.s32 %s11260_s27, %s13330_s30 }
   0x8   : > { %p61_p4 = scmp.eq.s32.totalorder %s60_s8, 0  ;;  %253 = sbr.rel (%p9513_p5) target bundleno = 531 (0x213), region = 32 }
   0xa   : > { %s11346_s10 = scalar_select %p61_p4, %s11252_s25, %s63_s9  }
   0xf   : > { %256 = sbr.rel (!%p72_p3) target bundleno = 531 (0x213), region = 36  ;;  %s258_s11 = sand.u32 (%p72_p3), 1, %s11252_s25  }
  0x10   : > { %s10138_s12 = sshll.u32 (%p72_p3), %s11260_s27, 3  ;;  %s9514_s13 = sshll.u32 (%p72_p3), %s258_s11, 12 }
  0x11   : > { %s11354_s16 = scalar_lea.vmem (%p72_p3), %s13317_s1, %s10138_s12  ;;  %s11359_s17 = scalar_lea.vmem (%p72_p3), [#allocation3], %s9514_s13 }
  0x12   : > { %v1316_v0 = vld [vmem:[%s11354_s16] sm:$0xff] (%p72_p3) }
  0x13   : > { %v1318_v1 = vld [vmem:[%s11354_s16 + $0x20] sm:$0xff] (%p72_p3)  ;;  %1317 = vst [vmem:[%s11359_s17] sm:$0xff] (%p72_p3), %v1316_v0 }
  0x14   : > { %v1320_v2 = vld [vmem:[%s11354_s16 + $0x40] sm:$0xff] (%p72_p3)  ;;  %1319 = vst [vmem:[%s11359_s17 + $0x8] sm:$0xff] (%p72_p3), %v1318_v1 }
  0x15   : > { %1321 = vst [vmem:[%s11359_s17 + $0x10] sm:$0xff] (%p72_p3), %v1320_v2  ;;  %v1322_v3 = vld [vmem:[%s11354_s16 + $0x60] sm:$0xff] (%p72_p3) }
  0x16   : > { %v1324_v4 = vld [vmem:[%s11354_s16 + $0x80] sm:$0xff]  ;;  %1323 = vst [vmem:[%s11359_s17 + $0x18] sm:$0xff] %v1322_v3 }
  0x17   : > { %v1326_v5 = vld [vmem:[%s11354_s16 + $0xa0] sm:$0xff]  ;;  %1325 = vst [vmem:[%s11359_s17 + $0x20] sm:$0xff] %v1324_v4 }
  0x18   : > { %1327 = vst [vmem:[%s11359_s17 + $0x28] sm:$0xff] %v1326_v5  ;;  %v1328_v6 = vld [vmem:[%s11354_s16 + $0xc0] sm:$0xff] }
  0x19   : > { %v1330_v7 = vld [vmem:[%s11354_s16 + $0xe0] sm:$0xff]  ;;  %1329 = vst [vmem:[%s11359_s17 + $0x30] sm:$0xff] %v1328_v6 }
  0x1a   : > { %v1332_v8 = vld [vmem:[%s11354_s16 + $0x100] sm:$0xff]  ;;  %1331 = vst [vmem:[%s11359_s17 + $0x38] sm:$0xff] %v1330_v7 }
  0x1b   : > { %1333 = vst [vmem:[%s11359_s17 + $0x40] sm:$0xff] %v1332_v8  ;;  %v1334_v9 = vld [vmem:[%s11354_s16 + $0x120] sm:$0xff] }
  0x1c   : > { %v1336_v10 = vld [vmem:[%s11354_s16 + $0x140] sm:$0xff]  ;;  %1335 = vst [vmem:[%s11359_s17 + $0x48] sm:$0xff] %v1334_v9 }
  0x1d   : > { %v1338_v11 = vld [vmem:[%s11354_s16 + $0x160] sm:$0xff]  ;;  %1337 = vst [vmem:[%s11359_s17 + $0x50] sm:$0xff] %v1336_v10 }
  0x1e   : > { %1339 = vst [vmem:[%s11359_s17 + $0x58] sm:$0xff] %v1338_v11  ;;  %v1340_v12 = vld [vmem:[%s11354_s16 + $0x180] sm:$0xff] }
  0x1f   : > { %v1342_v13 = vld [vmem:[%s11354_s16 + $0x1a0] sm:$0xff]  ;;  %1341 = vst [vmem:[%s11359_s17 + $0x60] sm:$0xff] %v1340_v12 }
  0x20   : > { %v1344_v14 = vld [vmem:[%s11354_s16 + $0x1c0] sm:$0xff]  ;;  %1343 = vst [vmem:[%s11359_s17 + $0x68] sm:$0xff] %v1342_v13 }
  0x21   : > { %1345 = vst [vmem:[%s11359_s17 + $0x70] sm:$0xff] %v1344_v14  ;;  %v1346_v15 = vld [vmem:[%s11354_s16 + $0x1e0] sm:$0xff] }
  0x22   : > { %v1348_v16 = vld [vmem:[%s11354_s16 + $0x200] sm:$0xff]  ;;  %1347 = vst [vmem:[%s11359_s17 + $0x78] sm:$0xff] %v1346_v15 }
  0x23   : > { %v1350_v17 = vld [vmem:[%s11354_s16 + $0x220] sm:$0xff]  ;;  %1349 = vst [vmem:[%s11359_s17 + $0x80] sm:$0xff] %v1348_v16 }
  0x24   : > { %1351 = vst [vmem:[%s11359_s17 + $0x88] sm:$0xff] %v1350_v17  ;;  %v1352_v18 = vld [vmem:[%s11354_s16 + $0x240] sm:$0xff] }
  0x25   : > { %v1354_v19 = vld [vmem:[%s11354_s16 + $0x260] sm:$0xff]  ;;  %1353 = vst [vmem:[%s11359_s17 + $0x90] sm:$0xff] %v1352_v18 }
  0x26   : > { %v1356_v20 = vld [vmem:[%s11354_s16 + $0x280] sm:$0xff]  ;;  %1355 = vst [vmem:[%s11359_s17 + $0x98] sm:$0xff] %v1354_v19 }
  0x27   : > { %1357 = vst [vmem:[%s11359_s17 + $0xa0] sm:$0xff] %v1356_v20  ;;  %v1358_v21 = vld [vmem:[%s11354_s16 + $0x2a0] sm:$0xff] }
  0x28   : > { %v1360_v22 = vld [vmem:[%s11354_s16 + $0x2c0] sm:$0xff]  ;;  %1359 = vst [vmem:[%s11359_s17 + $0xa8] sm:$0xff] %v1358_v21 }
  0x29   : > { %v1362_v23 = vld [vmem:[%s11354_s16 + $0x2e0] sm:$0xff]  ;;  %1361 = vst [vmem:[%s11359_s17 + $0xb0] sm:$0xff] %v1360_v22 }
  0x2a   : > { %1363 = vst [vmem:[%s11359_s17 + $0xb8] sm:$0xff] %v1362_v23  ;;  %v1364_v24 = vld [vmem:[%s11354_s16 + $0x300] sm:$0xff] }
  0x2b   : > { %v1366_v25 = vld [vmem:[%s11354_s16 + $0x320] sm:$0xff]  ;;  %1365 = vst [vmem:[%s11359_s17 + $0xc0] sm:$0xff] %v1364_v24 }
  0x2c   : > { %v1368_v26 = vld [vmem:[%s11354_s16 + $0x340] sm:$0xff]  ;;  %1367 = vst [vmem:[%s11359_s17 + $0xc8] sm:$0xff] %v1366_v25 }
  0x2d   : > { %1369 = vst [vmem:[%s11359_s17 + $0xd0] sm:$0xff] %v1368_v26  ;;  %v1370_v27 = vld [vmem:[%s11354_s16 + $0x360] sm:$0xff] }
  0x2e   : > { %v1372_v28 = vld [vmem:[%s11354_s16 + $0x380] sm:$0xff]  ;;  %1371 = vst [vmem:[%s11359_s17 + $0xd8] sm:$0xff] %v1370_v27 }
  0x2f   : > { %v1374_v29 = vld [vmem:[%s11354_s16 + $0x3a0] sm:$0xff]  ;;  %1373 = vst [vmem:[%s11359_s17 + $0xe0] sm:$0xff] %v1372_v28 }
  0x30   : > { %1375 = vst [vmem:[%s11359_s17 + $0xe8] sm:$0xff] %v1374_v29  ;;  %v1376_v30 = vld [vmem:[%s11354_s16 + $0x3c0] sm:$0xff] }
  0x31   : > { %v1378_v31 = vld [vmem:[%s11354_s16 + $0x3e0] sm:$0xff]  ;;  %1377 = vst [vmem:[%s11359_s17 + $0xf0] sm:$0xff] %v1376_v30 }
  0x32   : > { %v1380_v32 = vld [vmem:[%s11354_s16 + $0x400] sm:$0xff]  ;;  %1379 = vst [vmem:[%s11359_s17 + $0xf8] sm:$0xff] %v1378_v31 }
  0x33   : > { %1381 = vst [vmem:[%s11359_s17 + $0x100] sm:$0xff] %v1380_v32  ;;  %v1382_v33 = vld [vmem:[%s11354_s16 + $0x420] sm:$0xff] }
  0x34   : > { %v1384_v34 = vld [vmem:[%s11354_s16 + $0x440] sm:$0xff]  ;;  %1383 = vst [vmem:[%s11359_s17 + $0x108] sm:$0xff] %v1382_v33 }
  0x35   : > { %v1386_v35 = vld [vmem:[%s11354_s16 + $0x460] sm:$0xff]  ;;  %1385 = vst [vmem:[%s11359_s17 + $0x110] sm:$0xff] %v1384_v34 }
  0x36   : > { %1387 = vst [vmem:[%s11359_s17 + $0x118] sm:$0xff] %v1386_v35  ;;  %v1388_v36 = vld [vmem:[%s11354_s16 + $0x480] sm:$0xff] }
  0x37   : > { %v1390_v37 = vld [vmem:[%s11354_s16 + $0x4a0] sm:$0xff]  ;;  %1389 = vst [vmem:[%s11359_s17 + $0x120] sm:$0xff] %v1388_v36 }
  0x38   : > { %v1392_v38 = vld [vmem:[%s11354_s16 + $0x4c0] sm:$0xff]  ;;  %1391 = vst [vmem:[%s11359_s17 + $0x128] sm:$0xff] %v1390_v37 }
  0x39   : > { %1393 = vst [vmem:[%s11359_s17 + $0x130] sm:$0xff] %v1392_v38  ;;  %v1394_v39 = vld [vmem:[%s11354_s16 + $0x4e0] sm:$0xff] }
  0x3a   : > { %v1396_v40 = vld [vmem:[%s11354_s16 + $0x500] sm:$0xff]  ;;  %1395 = vst [vmem:[%s11359_s17 + $0x138] sm:$0xff] %v1394_v39 }
  0x3b   : > { %v1398_v41 = vld [vmem:[%s11354_s16 + $0x520] sm:$0xff]  ;;  %1397 = vst [vmem:[%s11359_s17 + $0x140] sm:$0xff] %v1396_v40 }
  0x3c   : > { %1399 = vst [vmem:[%s11359_s17 + $0x148] sm:$0xff] %v1398_v41  ;;  %v1400_v42 = vld [vmem:[%s11354_s16 + $0x540] sm:$0xff] }
  0x3d   : > { %v1402_v43 = vld [vmem:[%s11354_s16 + $0x560] sm:$0xff]  ;;  %1401 = vst [vmem:[%s11359_s17 + $0x150] sm:$0xff] %v1400_v42 }
  0x3e   : > { %v1404_v44 = vld [vmem:[%s11354_s16 + $0x580] sm:$0xff]  ;;  %1403 = vst [vmem:[%s11359_s17 + $0x158] sm:$0xff] %v1402_v43 }
  0x3f   : > { %1405 = vst [vmem:[%s11359_s17 + $0x160] sm:$0xff] %v1404_v44  ;;  %v1406_v45 = vld [vmem:[%s11354_s16 + $0x5a0] sm:$0xff] }
  0x40   : > { %v1408_v46 = vld [vmem:[%s11354_s16 + $0x5c0] sm:$0xff]  ;;  %1407 = vst [vmem:[%s11359_s17 + $0x168] sm:$0xff] %v1406_v45 }
  0x41   : > { %v1410_v47 = vld [vmem:[%s11354_s16 + $0x5e0] sm:$0xff]  ;;  %1409 = vst [vmem:[%s11359_s17 + $0x170] sm:$0xff] %v1408_v46 }
  0x42   : > { %1411 = vst [vmem:[%s11359_s17 + $0x178] sm:$0xff] %v1410_v47  ;;  %v1412_v48 = vld [vmem:[%s11354_s16 + $0x600] sm:$0xff] }
  0x43   : > { %v1414_v49 = vld [vmem:[%s11354_s16 + $0x620] sm:$0xff]  ;;  %1413 = vst [vmem:[%s11359_s17 + $0x180] sm:$0xff] %v1412_v48 }
  0x44   : > { %v1416_v50 = vld [vmem:[%s11354_s16 + $0x640] sm:$0xff]  ;;  %1415 = vst [vmem:[%s11359_s17 + $0x188] sm:$0xff] %v1414_v49 }
  0x45   : > { %1417 = vst [vmem:[%s11359_s17 + $0x190] sm:$0xff] %v1416_v50  ;;  %v1418_v51 = vld [vmem:[%s11354_s16 + $0x660] sm:$0xff] }
  0x46   : > { %v1420_v52 = vld [vmem:[%s11354_s16 + $0x680] sm:$0xff]  ;;  %1419 = vst [vmem:[%s11359_s17 + $0x198] sm:$0xff] %v1418_v51 }
  0x47   : > { %v1422_v53 = vld [vmem:[%s11354_s16 + $0x6a0] sm:$0xff]  ;;  %1421 = vst [vmem:[%s11359_s17 + $0x1a0] sm:$0xff] %v1420_v52 }
  0x48   : > { %1423 = vst [vmem:[%s11359_s17 + $0x1a8] sm:$0xff] %v1422_v53  ;;  %v1424_v54 = vld [vmem:[%s11354_s16 + $0x6c0] sm:$0xff] }
  0x49   : > { %v1426_v55 = vld [vmem:[%s11354_s16 + $0x6e0] sm:$0xff]  ;;  %1425 = vst [vmem:[%s11359_s17 + $0x1b0] sm:$0xff] %v1424_v54 }
  0x4a   : > { %v1428_v56 = vld [vmem:[%s11354_s16 + $0x700] sm:$0xff]  ;;  %1427 = vst [vmem:[%s11359_s17 + $0x1b8] sm:$0xff] %v1426_v55 }
  0x4b   : > { %1429 = vst [vmem:[%s11359_s17 + $0x1c0] sm:$0xff] %v1428_v56  ;;  %v1430_v57 = vld [vmem:[%s11354_s16 + $0x720] sm:$0xff] }
  0x4c   : > { %v1432_v58 = vld [vmem:[%s11354_s16 + $0x740] sm:$0xff]  ;;  %1431 = vst [vmem:[%s11359_s17 + $0x1c8] sm:$0xff] %v1430_v57 }
  0x4d   : > { %v1434_v59 = vld [vmem:[%s11354_s16 + $0x760] sm:$0xff]  ;;  %1433 = vst [vmem:[%s11359_s17 + $0x1d0] sm:$0xff] %v1432_v58 }
  0x4e   : > { %1435 = vst [vmem:[%s11359_s17 + $0x1d8] sm:$0xff] %v1434_v59  ;;  %v1436_v60 = vld [vmem:[%s11354_s16 + $0x780] sm:$0xff] }
  0x4f   : > { %v1438_v61 = vld [vmem:[%s11354_s16 + $0x7a0] sm:$0xff]  ;;  %1437 = vst [vmem:[%s11359_s17 + $0x1e0] sm:$0xff] %v1436_v60 }
  0x50   : > { %v1440_v62 = vld [vmem:[%s11354_s16 + $0x7c0] sm:$0xff]  ;;  %1439 = vst [vmem:[%s11359_s17 + $0x1e8] sm:$0xff] %v1438_v61 }
  0x51   : > { %1441 = vst [vmem:[%s11359_s17 + $0x1f0] sm:$0xff] %v1440_v62  ;;  %v1442_v63 = vld [vmem:[%s11354_s16 + $0x7e0] sm:$0xff] }
  0x52   : > { %v1444_v0 = vld [vmem:[%s11354_s16 + $0x800] sm:$0xff]  ;;  %1443 = vst [vmem:[%s11359_s17 + $0x1f8] sm:$0xff] %v1442_v63 }
  0x53   : > { %v1446_v1 = vld [vmem:[%s11354_s16 + $0x820] sm:$0xff]  ;;  %1445 = vst [vmem:[%s11359_s17 + $0x200] sm:$0xff] %v1444_v0 }
  0x54   : > { %1447 = vst [vmem:[%s11359_s17 + $0x208] sm:$0xff] %v1446_v1  ;;  %v1448_v2 = vld [vmem:[%s11354_s16 + $0x840] sm:$0xff] }
  0x55   : > { %v1450_v3 = vld [vmem:[%s11354_s16 + $0x860] sm:$0xff]  ;;  %1449 = vst [vmem:[%s11359_s17 + $0x210] sm:$0xff] %v1448_v2 }
  0x56   : > { %v1452_v4 = vld [vmem:[%s11354_s16 + $0x880] sm:$0xff]  ;;  %1451 = vst [vmem:[%s11359_s17 + $0x218] sm:$0xff] %v1450_v3 }
  0x57   : > { %1453 = vst [vmem:[%s11359_s17 + $0x220] sm:$0xff] %v1452_v4  ;;  %v1454_v5 = vld [vmem:[%s11354_s16 + $0x8a0] sm:$0xff] }
  0x58   : > { %v1456_v6 = vld [vmem:[%s11354_s16 + $0x8c0] sm:$0xff]  ;;  %1455 = vst [vmem:[%s11359_s17 + $0x228] sm:$0xff] %v1454_v5 }
  0x59   : > { %v1458_v7 = vld [vmem:[%s11354_s16 + $0x8e0] sm:$0xff]  ;;  %1457 = vst [vmem:[%s11359_s17 + $0x230] sm:$0xff] %v1456_v6 }
  0x5a   : > { %1459 = vst [vmem:[%s11359_s17 + $0x238] sm:$0xff] %v1458_v7  ;;  %v1460_v8 = vld [vmem:[%s11354_s16 + $0x900] sm:$0xff] }
  0x5b   : > { %v1462_v9 = vld [vmem:[%s11354_s16 + $0x920] sm:$0xff]  ;;  %1461 = vst [vmem:[%s11359_s17 + $0x240] sm:$0xff] %v1460_v8 }
  0x5c   : > { %v1464_v10 = vld [vmem:[%s11354_s16 + $0x940] sm:$0xff]  ;;  %1463 = vst [vmem:[%s11359_s17 + $0x248] sm:$0xff] %v1462_v9 }
  0x5d   : > { %1465 = vst [vmem:[%s11359_s17 + $0x250] sm:$0xff] %v1464_v10  ;;  %v1466_v11 = vld [vmem:[%s11354_s16 + $0x960] sm:$0xff] }
  0x5e   : > { %v1468_v12 = vld [vmem:[%s11354_s16 + $0x980] sm:$0xff]  ;;  %1467 = vst [vmem:[%s11359_s17 + $0x258] sm:$0xff] %v1466_v11 }
  0x5f   : > { %v1470_v13 = vld [vmem:[%s11354_s16 + $0x9a0] sm:$0xff]  ;;  %1469 = vst [vmem:[%s11359_s17 + $0x260] sm:$0xff] %v1468_v12 }
  0x60   : > { %1471 = vst [vmem:[%s11359_s17 + $0x268] sm:$0xff] %v1470_v13  ;;  %v1472_v14 = vld [vmem:[%s11354_s16 + $0x9c0] sm:$0xff] }
  0x61   : > { %v1474_v15 = vld [vmem:[%s11354_s16 + $0x9e0] sm:$0xff]  ;;  %1473 = vst [vmem:[%s11359_s17 + $0x270] sm:$0xff] %v1472_v14 }
  0x62   : > { %v1476_v16 = vld [vmem:[%s11354_s16 + $0xa00] sm:$0xff]  ;;  %1475 = vst [vmem:[%s11359_s17 + $0x278] sm:$0xff] %v1474_v15 }
  0x63   : > { %1477 = vst [vmem:[%s11359_s17 + $0x280] sm:$0xff] %v1476_v16  ;;  %v1478_v17 = vld [vmem:[%s11354_s16 + $0xa20] sm:$0xff] }
  0x64   : > { %v1480_v18 = vld [vmem:[%s11354_s16 + $0xa40] sm:$0xff]  ;;  %1479 = vst [vmem:[%s11359_s17 + $0x288] sm:$0xff] %v1478_v17 }
  0x65   : > { %v1482_v19 = vld [vmem:[%s11354_s16 + $0xa60] sm:$0xff]  ;;  %1481 = vst [vmem:[%s11359_s17 + $0x290] sm:$0xff] %v1480_v18 }
  0x66   : > { %1483 = vst [vmem:[%s11359_s17 + $0x298] sm:$0xff] %v1482_v19  ;;  %v1484_v20 = vld [vmem:[%s11354_s16 + $0xa80] sm:$0xff] }
  0x67   : > { %v1486_v21 = vld [vmem:[%s11354_s16 + $0xaa0] sm:$0xff]  ;;  %1485 = vst [vmem:[%s11359_s17 + $0x2a0] sm:$0xff] %v1484_v20 }
  0x68   : > { %v1488_v22 = vld [vmem:[%s11354_s16 + $0xac0] sm:$0xff]  ;;  %1487 = vst [vmem:[%s11359_s17 + $0x2a8] sm:$0xff] %v1486_v21 }
  0x69   : > { %1489 = vst [vmem:[%s11359_s17 + $0x2b0] sm:$0xff] %v1488_v22  ;;  %v1490_v23 = vld [vmem:[%s11354_s16 + $0xae0] sm:$0xff] }
  0x6a   : > { %v1492_v24 = vld [vmem:[%s11354_s16 + $0xb00] sm:$0xff]  ;;  %1491 = vst [vmem:[%s11359_s17 + $0x2b8] sm:$0xff] %v1490_v23 }
  0x6b   : > { %v1494_v25 = vld [vmem:[%s11354_s16 + $0xb20] sm:$0xff]  ;;  %1493 = vst [vmem:[%s11359_s17 + $0x2c0] sm:$0xff] %v1492_v24 }
  0x6c   : > { %1495 = vst [vmem:[%s11359_s17 + $0x2c8] sm:$0xff] %v1494_v25  ;;  %v1496_v26 = vld [vmem:[%s11354_s16 + $0xb40] sm:$0xff] }
  0x6d   : > { %v1498_v27 = vld [vmem:[%s11354_s16 + $0xb60] sm:$0xff]  ;;  %1497 = vst [vmem:[%s11359_s17 + $0x2d0] sm:$0xff] %v1496_v26 }
  0x6e   : > { %v1500_v28 = vld [vmem:[%s11354_s16 + $0xb80] sm:$0xff]  ;;  %1499 = vst [vmem:[%s11359_s17 + $0x2d8] sm:$0xff] %v1498_v27 }
  0x6f   : > { %1501 = vst [vmem:[%s11359_s17 + $0x2e0] sm:$0xff] %v1500_v28  ;;  %v1502_v29 = vld [vmem:[%s11354_s16 + $0xba0] sm:$0xff] }
  0x70   : > { %v1504_v30 = vld [vmem:[%s11354_s16 + $0xbc0] sm:$0xff]  ;;  %1503 = vst [vmem:[%s11359_s17 + $0x2e8] sm:$0xff] %v1502_v29 }
  0x71   : > { %v1506_v31 = vld [vmem:[%s11354_s16 + $0xbe0] sm:$0xff]  ;;  %1505 = vst [vmem:[%s11359_s17 + $0x2f0] sm:$0xff] %v1504_v30 }
  0x72   : > { %1507 = vst [vmem:[%s11359_s17 + $0x2f8] sm:$0xff] %v1506_v31  ;;  %v1508_v32 = vld [vmem:[%s11354_s16 + $0xc00] sm:$0xff] }
  0x73   : > { %v1510_v33 = vld [vmem:[%s11354_s16 + $0xc20] sm:$0xff]  ;;  %1509 = vst [vmem:[%s11359_s17 + $0x300] sm:$0xff] %v1508_v32 }
  0x74   : > { %v1512_v34 = vld [vmem:[%s11354_s16 + $0xc40] sm:$0xff]  ;;  %1511 = vst [vmem:[%s11359_s17 + $0x308] sm:$0xff] %v1510_v33 }
  0x75   : > { %1513 = vst [vmem:[%s11359_s17 + $0x310] sm:$0xff] %v1512_v34  ;;  %v1514_v35 = vld [vmem:[%s11354_s16 + $0xc60] sm:$0xff] }
  0x76   : > { %v1516_v36 = vld [vmem:[%s11354_s16 + $0xc80] sm:$0xff]  ;;  %1515 = vst [vmem:[%s11359_s17 + $0x318] sm:$0xff] %v1514_v35 }
  0x77   : > { %v1518_v37 = vld [vmem:[%s11354_s16 + $0xca0] sm:$0xff]  ;;  %1517 = vst [vmem:[%s11359_s17 + $0x320] sm:$0xff] %v1516_v36 }
  0x78   : > { %1519 = vst [vmem:[%s11359_s17 + $0x328] sm:$0xff] %v1518_v37  ;;  %v1520_v38 = vld [vmem:[%s11354_s16 + $0xcc0] sm:$0xff] }
  0x79   : > { %v1522_v39 = vld [vmem:[%s11354_s16 + $0xce0] sm:$0xff]  ;;  %1521 = vst [vmem:[%s11359_s17 + $0x330] sm:$0xff] %v1520_v38 }
  0x7a   : > { %v1524_v40 = vld [vmem:[%s11354_s16 + $0xd00] sm:$0xff]  ;;  %1523 = vst [vmem:[%s11359_s17 + $0x338] sm:$0xff] %v1522_v39 }
  0x7b   : > { %1525 = vst [vmem:[%s11359_s17 + $0x340] sm:$0xff] %v1524_v40  ;;  %v1526_v41 = vld [vmem:[%s11354_s16 + $0xd20] sm:$0xff] }
  0x7c   : > { %v1528_v42 = vld [vmem:[%s11354_s16 + $0xd40] sm:$0xff]  ;;  %1527 = vst [vmem:[%s11359_s17 + $0x348] sm:$0xff] %v1526_v41 }
  0x7d   : > { %v1530_v43 = vld [vmem:[%s11354_s16 + $0xd60] sm:$0xff]  ;;  %1529 = vst [vmem:[%s11359_s17 + $0x350] sm:$0xff] %v1528_v42 }
  0x7e   : > { %1531 = vst [vmem:[%s11359_s17 + $0x358] sm:$0xff] %v1530_v43  ;;  %v1532_v44 = vld [vmem:[%s11354_s16 + $0xd80] sm:$0xff] }
  0x7f   : > { %v1534_v45 = vld [vmem:[%s11354_s16 + $0xda0] sm:$0xff]  ;;  %1533 = vst [vmem:[%s11359_s17 + $0x360] sm:$0xff] %v1532_v44 }
  0x80   : > { %v1536_v46 = vld [vmem:[%s11354_s16 + $0xdc0] sm:$0xff]  ;;  %1535 = vst [vmem:[%s11359_s17 + $0x368] sm:$0xff] %v1534_v45 }
  0x81   : > { %1537 = vst [vmem:[%s11359_s17 + $0x370] sm:$0xff] %v1536_v46  ;;  %v1538_v47 = vld [vmem:[%s11354_s16 + $0xde0] sm:$0xff] }
  0x82   : > { %v1540_v48 = vld [vmem:[%s11354_s16 + $0xe00] sm:$0xff]  ;;  %1539 = vst [vmem:[%s11359_s17 + $0x378] sm:$0xff] %v1538_v47 }
  0x83   : > { %v1542_v49 = vld [vmem:[%s11354_s16 + $0xe20] sm:$0xff]  ;;  %1541 = vst [vmem:[%s11359_s17 + $0x380] sm:$0xff] %v1540_v48 }
  0x84   : > { %1543 = vst [vmem:[%s11359_s17 + $0x388] sm:$0xff] %v1542_v49  ;;  %v1544_v50 = vld [vmem:[%s11354_s16 + $0xe40] sm:$0xff] }
  0x85   : > { %v1546_v51 = vld [vmem:[%s11354_s16 + $0xe60] sm:$0xff]  ;;  %1545 = vst [vmem:[%s11359_s17 + $0x390] sm:$0xff] %v1544_v50 }
  0x86   : > { %v1548_v52 = vld [vmem:[%s11354_s16 + $0xe80] sm:$0xff]  ;;  %1547 = vst [vmem:[%s11359_s17 + $0x398] sm:$0xff] %v1546_v51 }
  0x87   : > { %1549 = vst [vmem:[%s11359_s17 + $0x3a0] sm:$0xff] %v1548_v52  ;;  %v1550_v53 = vld [vmem:[%s11354_s16 + $0xea0] sm:$0xff] }
  0x88   : > { %v1552_v54 = vld [vmem:[%s11354_s16 + $0xec0] sm:$0xff]  ;;  %1551 = vst [vmem:[%s11359_s17 + $0x3a8] sm:$0xff] %v1550_v53 }
  0x89   : > { %v1554_v55 = vld [vmem:[%s11354_s16 + $0xee0] sm:$0xff]  ;;  %1553 = vst [vmem:[%s11359_s17 + $0x3b0] sm:$0xff] %v1552_v54 }
  0x8a   : > { %1555 = vst [vmem:[%s11359_s17 + $0x3b8] sm:$0xff] %v1554_v55  ;;  %v1556_v56 = vld [vmem:[%s11354_s16 + $0xf00] sm:$0xff] }
  0x8b   : > { %v1558_v57 = vld [vmem:[%s11354_s16 + $0xf20] sm:$0xff]  ;;  %1557 = vst [vmem:[%s11359_s17 + $0x3c0] sm:$0xff] %v1556_v56 }
  0x8c   : > { %v1560_v58 = vld [vmem:[%s11354_s16 + $0xf40] sm:$0xff]  ;;  %1559 = vst [vmem:[%s11359_s17 + $0x3c8] sm:$0xff] %v1558_v57 }
  0x8d   : > { %1561 = vst [vmem:[%s11359_s17 + $0x3d0] sm:$0xff] %v1560_v58  ;;  %v1562_v59 = vld [vmem:[%s11354_s16 + $0xf60] sm:$0xff] }
  0x8e   : > { %v1564_v60 = vld [vmem:[%s11354_s16 + $0xf80] sm:$0xff]  ;;  %1563 = vst [vmem:[%s11359_s17 + $0x3d8] sm:$0xff] %v1562_v59 }
  0x8f   : > { %v1566_v61 = vld [vmem:[%s11354_s16 + $0xfa0] sm:$0xff]  ;;  %1565 = vst [vmem:[%s11359_s17 + $0x3e0] sm:$0xff] %v1564_v60 }
  0x90   : > { %1567 = vst [vmem:[%s11359_s17 + $0x3e8] sm:$0xff] %v1566_v61  ;;  %v1568_v62 = vld [vmem:[%s11354_s16 + $0xfc0] sm:$0xff] }
  0x91   : > { %v1570_v63 = vld [vmem:[%s11354_s16 + $0xfe0] sm:$0xff]  ;;  %1569 = vst [vmem:[%s11359_s17 + $0x3f0] sm:$0xff] %v1568_v62 }
  0x92   : > { %v1572_v0 = vld [vmem:[%s11354_s16 + $0x1000] sm:$0xff]  ;;  %1571 = vst [vmem:[%s11359_s17 + $0x3f8] sm:$0xff] %v1570_v63 }
  0x93   : > { %1573 = vst [vmem:[%s11359_s17 + $0x400] sm:$0xff] %v1572_v0  ;;  %v1574_v1 = vld [vmem:[%s11354_s16 + $0x1020] sm:$0xff] }
  0x94   : > { %v1576_v2 = vld [vmem:[%s11354_s16 + $0x1040] sm:$0xff]  ;;  %1575 = vst [vmem:[%s11359_s17 + $0x408] sm:$0xff] %v1574_v1 }
  0x95   : > { %v1578_v3 = vld [vmem:[%s11354_s16 + $0x1060] sm:$0xff]  ;;  %1577 = vst [vmem:[%s11359_s17 + $0x410] sm:$0xff] %v1576_v2 }
  0x96   : > { %1579 = vst [vmem:[%s11359_s17 + $0x418] sm:$0xff] %v1578_v3  ;;  %v1580_v4 = vld [vmem:[%s11354_s16 + $0x1080] sm:$0xff] }
  0x97   : > { %v1582_v5 = vld [vmem:[%s11354_s16 + $0x10a0] sm:$0xff]  ;;  %1581 = vst [vmem:[%s11359_s17 + $0x420] sm:$0xff] %v1580_v4 }
  0x98   : > { %v1584_v6 = vld [vmem:[%s11354_s16 + $0x10c0] sm:$0xff]  ;;  %1583 = vst [vmem:[%s11359_s17 + $0x428] sm:$0xff] %v1582_v5 }
  0x99   : > { %1585 = vst [vmem:[%s11359_s17 + $0x430] sm:$0xff] %v1584_v6  ;;  %v1586_v7 = vld [vmem:[%s11354_s16 + $0x10e0] sm:$0xff] }
  0x9a   : > { %v1588_v8 = vld [vmem:[%s11354_s16 + $0x1100] sm:$0xff]  ;;  %1587 = vst [vmem:[%s11359_s17 + $0x438] sm:$0xff] %v1586_v7 }
  0x9b   : > { %v1590_v9 = vld [vmem:[%s11354_s16 + $0x1120] sm:$0xff]  ;;  %1589 = vst [vmem:[%s11359_s17 + $0x440] sm:$0xff] %v1588_v8 }
  0x9c   : > { %1591 = vst [vmem:[%s11359_s17 + $0x448] sm:$0xff] %v1590_v9  ;;  %v1592_v10 = vld [vmem:[%s11354_s16 + $0x1140] sm:$0xff] }
  0x9d   : > { %v1594_v11 = vld [vmem:[%s11354_s16 + $0x1160] sm:$0xff]  ;;  %1593 = vst [vmem:[%s11359_s17 + $0x450] sm:$0xff] %v1592_v10 }
  0x9e   : > { %v1596_v12 = vld [vmem:[%s11354_s16 + $0x1180] sm:$0xff]  ;;  %1595 = vst [vmem:[%s11359_s17 + $0x458] sm:$0xff] %v1594_v11 }
  0x9f   : > { %1597 = vst [vmem:[%s11359_s17 + $0x460] sm:$0xff] %v1596_v12  ;;  %v1598_v13 = vld [vmem:[%s11354_s16 + $0x11a0] sm:$0xff] }
  0xa0   : > { %v1600_v14 = vld [vmem:[%s11354_s16 + $0x11c0] sm:$0xff]  ;;  %1599 = vst [vmem:[%s11359_s17 + $0x468] sm:$0xff] %v1598_v13 }
  0xa1   : > { %v1602_v15 = vld [vmem:[%s11354_s16 + $0x11e0] sm:$0xff]  ;;  %1601 = vst [vmem:[%s11359_s17 + $0x470] sm:$0xff] %v1600_v14 }
  0xa2   : > { %1603 = vst [vmem:[%s11359_s17 + $0x478] sm:$0xff] %v1602_v15  ;;  %v1604_v16 = vld [vmem:[%s11354_s16 + $0x1200] sm:$0xff] }
  0xa3   : > { %v1606_v17 = vld [vmem:[%s11354_s16 + $0x1220] sm:$0xff]  ;;  %1605 = vst [vmem:[%s11359_s17 + $0x480] sm:$0xff] %v1604_v16 }
  0xa4   : > { %v1608_v18 = vld [vmem:[%s11354_s16 + $0x1240] sm:$0xff]  ;;  %1607 = vst [vmem:[%s11359_s17 + $0x488] sm:$0xff] %v1606_v17 }
  0xa5   : > { %1609 = vst [vmem:[%s11359_s17 + $0x490] sm:$0xff] %v1608_v18  ;;  %v1610_v19 = vld [vmem:[%s11354_s16 + $0x1260] sm:$0xff] }
  0xa6   : > { %v1612_v20 = vld [vmem:[%s11354_s16 + $0x1280] sm:$0xff]  ;;  %1611 = vst [vmem:[%s11359_s17 + $0x498] sm:$0xff] %v1610_v19 }
  0xa7   : > { %v1614_v21 = vld [vmem:[%s11354_s16 + $0x12a0] sm:$0xff]  ;;  %1613 = vst [vmem:[%s11359_s17 + $0x4a0] sm:$0xff] %v1612_v20 }
  0xa8   : > { %1615 = vst [vmem:[%s11359_s17 + $0x4a8] sm:$0xff] %v1614_v21  ;;  %v1616_v22 = vld [vmem:[%s11354_s16 + $0x12c0] sm:$0xff] }
  0xa9   : > { %v1618_v23 = vld [vmem:[%s11354_s16 + $0x12e0] sm:$0xff]  ;;  %1617 = vst [vmem:[%s11359_s17 + $0x4b0] sm:$0xff] %v1616_v22 }
  0xaa   : > { %v1620_v24 = vld [vmem:[%s11354_s16 + $0x1300] sm:$0xff]  ;;  %1619 = vst [vmem:[%s11359_s17 + $0x4b8] sm:$0xff] %v1618_v23 }
  0xab   : > { %1621 = vst [vmem:[%s11359_s17 + $0x4c0] sm:$0xff] %v1620_v24  ;;  %v1622_v25 = vld [vmem:[%s11354_s16 + $0x1320] sm:$0xff] }
  0xac   : > { %v1624_v26 = vld [vmem:[%s11354_s16 + $0x1340] sm:$0xff]  ;;  %1623 = vst [vmem:[%s11359_s17 + $0x4c8] sm:$0xff] %v1622_v25 }
  0xad   : > { %v1626_v27 = vld [vmem:[%s11354_s16 + $0x1360] sm:$0xff]  ;;  %1625 = vst [vmem:[%s11359_s17 + $0x4d0] sm:$0xff] %v1624_v26 }
  0xae   : > { %1627 = vst [vmem:[%s11359_s17 + $0x4d8] sm:$0xff] %v1626_v27  ;;  %v1628_v28 = vld [vmem:[%s11354_s16 + $0x1380] sm:$0xff] }
  0xaf   : > { %v1630_v29 = vld [vmem:[%s11354_s16 + $0x13a0] sm:$0xff]  ;;  %1629 = vst [vmem:[%s11359_s17 + $0x4e0] sm:$0xff] %v1628_v28 }
  0xb0   : > { %v1632_v30 = vld [vmem:[%s11354_s16 + $0x13c0] sm:$0xff]  ;;  %1631 = vst [vmem:[%s11359_s17 + $0x4e8] sm:$0xff] %v1630_v29 }
  0xb1   : > { %1633 = vst [vmem:[%s11359_s17 + $0x4f0] sm:$0xff] %v1632_v30  ;;  %v1634_v31 = vld [vmem:[%s11354_s16 + $0x13e0] sm:$0xff] }
  0xb2   : > { %v1636_v32 = vld [vmem:[%s11354_s16 + $0x1400] sm:$0xff]  ;;  %1635 = vst [vmem:[%s11359_s17 + $0x4f8] sm:$0xff] %v1634_v31 }
  0xb3   : > { %v1638_v33 = vld [vmem:[%s11354_s16 + $0x1420] sm:$0xff]  ;;  %1637 = vst [vmem:[%s11359_s17 + $0x500] sm:$0xff] %v1636_v32 }
  0xb4   : > { %1639 = vst [vmem:[%s11359_s17 + $0x508] sm:$0xff] %v1638_v33  ;;  %v1640_v34 = vld [vmem:[%s11354_s16 + $0x1440] sm:$0xff] }
  0xb5   : > { %v1642_v35 = vld [vmem:[%s11354_s16 + $0x1460] sm:$0xff]  ;;  %1641 = vst [vmem:[%s11359_s17 + $0x510] sm:$0xff] %v1640_v34 }
  0xb6   : > { %v1644_v36 = vld [vmem:[%s11354_s16 + $0x1480] sm:$0xff]  ;;  %1643 = vst [vmem:[%s11359_s17 + $0x518] sm:$0xff] %v1642_v35 }
  0xb7   : > { %1645 = vst [vmem:[%s11359_s17 + $0x520] sm:$0xff] %v1644_v36  ;;  %v1646_v37 = vld [vmem:[%s11354_s16 + $0x14a0] sm:$0xff] }
  0xb8   : > { %v1648_v38 = vld [vmem:[%s11354_s16 + $0x14c0] sm:$0xff]  ;;  %1647 = vst [vmem:[%s11359_s17 + $0x528] sm:$0xff] %v1646_v37 }
  0xb9   : > { %v1650_v39 = vld [vmem:[%s11354_s16 + $0x14e0] sm:$0xff]  ;;  %1649 = vst [vmem:[%s11359_s17 + $0x530] sm:$0xff] %v1648_v38 }
  0xba   : > { %1651 = vst [vmem:[%s11359_s17 + $0x538] sm:$0xff] %v1650_v39  ;;  %v1652_v40 = vld [vmem:[%s11354_s16 + $0x1500] sm:$0xff] }
  0xbb   : > { %v1654_v41 = vld [vmem:[%s11354_s16 + $0x1520] sm:$0xff]  ;;  %1653 = vst [vmem:[%s11359_s17 + $0x540] sm:$0xff] %v1652_v40 }
  0xbc   : > { %v1656_v42 = vld [vmem:[%s11354_s16 + $0x1540] sm:$0xff]  ;;  %1655 = vst [vmem:[%s11359_s17 + $0x548] sm:$0xff] %v1654_v41 }
  0xbd   : > { %1657 = vst [vmem:[%s11359_s17 + $0x550] sm:$0xff] %v1656_v42  ;;  %v1658_v43 = vld [vmem:[%s11354_s16 + $0x1560] sm:$0xff] }
  0xbe   : > { %v1660_v44 = vld [vmem:[%s11354_s16 + $0x1580] sm:$0xff]  ;;  %1659 = vst [vmem:[%s11359_s17 + $0x558] sm:$0xff] %v1658_v43 }
  0xbf   : > { %v1662_v45 = vld [vmem:[%s11354_s16 + $0x15a0] sm:$0xff]  ;;  %1661 = vst [vmem:[%s11359_s17 + $0x560] sm:$0xff] %v1660_v44 }
  0xc0   : > { %1663 = vst [vmem:[%s11359_s17 + $0x568] sm:$0xff] %v1662_v45  ;;  %v1664_v46 = vld [vmem:[%s11354_s16 + $0x15c0] sm:$0xff] }
  0xc1   : > { %v1666_v47 = vld [vmem:[%s11354_s16 + $0x15e0] sm:$0xff]  ;;  %1665 = vst [vmem:[%s11359_s17 + $0x570] sm:$0xff] %v1664_v46 }
  0xc2   : > { %v1668_v48 = vld [vmem:[%s11354_s16 + $0x1600] sm:$0xff]  ;;  %1667 = vst [vmem:[%s11359_s17 + $0x578] sm:$0xff] %v1666_v47 }
  0xc3   : > { %1669 = vst [vmem:[%s11359_s17 + $0x580] sm:$0xff] %v1668_v48  ;;  %v1670_v49 = vld [vmem:[%s11354_s16 + $0x1620] sm:$0xff] }
  0xc4   : > { %v1672_v50 = vld [vmem:[%s11354_s16 + $0x1640] sm:$0xff]  ;;  %1671 = vst [vmem:[%s11359_s17 + $0x588] sm:$0xff] %v1670_v49 }
  0xc5   : > { %v1674_v51 = vld [vmem:[%s11354_s16 + $0x1660] sm:$0xff]  ;;  %1673 = vst [vmem:[%s11359_s17 + $0x590] sm:$0xff] %v1672_v50 }
  0xc6   : > { %1675 = vst [vmem:[%s11359_s17 + $0x598] sm:$0xff] %v1674_v51  ;;  %v1676_v52 = vld [vmem:[%s11354_s16 + $0x1680] sm:$0xff] }
  0xc7   : > { %v1678_v53 = vld [vmem:[%s11354_s16 + $0x16a0] sm:$0xff]  ;;  %1677 = vst [vmem:[%s11359_s17 + $0x5a0] sm:$0xff] %v1676_v52 }
  0xc8   : > { %v1680_v54 = vld [vmem:[%s11354_s16 + $0x16c0] sm:$0xff]  ;;  %1679 = vst [vmem:[%s11359_s17 + $0x5a8] sm:$0xff] %v1678_v53 }
  0xc9   : > { %1681 = vst [vmem:[%s11359_s17 + $0x5b0] sm:$0xff] %v1680_v54  ;;  %v1682_v55 = vld [vmem:[%s11354_s16 + $0x16e0] sm:$0xff] }
  0xca   : > { %v1684_v56 = vld [vmem:[%s11354_s16 + $0x1700] sm:$0xff]  ;;  %1683 = vst [vmem:[%s11359_s17 + $0x5b8] sm:$0xff] %v1682_v55 }
  0xcb   : > { %v1686_v57 = vld [vmem:[%s11354_s16 + $0x1720] sm:$0xff]  ;;  %1685 = vst [vmem:[%s11359_s17 + $0x5c0] sm:$0xff] %v1684_v56 }
  0xcc   : > { %1687 = vst [vmem:[%s11359_s17 + $0x5c8] sm:$0xff] %v1686_v57  ;;  %v1688_v58 = vld [vmem:[%s11354_s16 + $0x1740] sm:$0xff] }
  0xcd   : > { %v1690_v59 = vld [vmem:[%s11354_s16 + $0x1760] sm:$0xff]  ;;  %1689 = vst [vmem:[%s11359_s17 + $0x5d0] sm:$0xff] %v1688_v58 }
  0xce   : > { %v1692_v60 = vld [vmem:[%s11354_s16 + $0x1780] sm:$0xff]  ;;  %1691 = vst [vmem:[%s11359_s17 + $0x5d8] sm:$0xff] %v1690_v59 }
  0xcf   : > { %1693 = vst [vmem:[%s11359_s17 + $0x5e0] sm:$0xff] %v1692_v60  ;;  %v1694_v61 = vld [vmem:[%s11354_s16 + $0x17a0] sm:$0xff] }
  0xd0   : > { %v1696_v62 = vld [vmem:[%s11354_s16 + $0x17c0] sm:$0xff]  ;;  %1695 = vst [vmem:[%s11359_s17 + $0x5e8] sm:$0xff] %v1694_v61 }
  0xd1   : > { %v1698_v63 = vld [vmem:[%s11354_s16 + $0x17e0] sm:$0xff]  ;;  %1697 = vst [vmem:[%s11359_s17 + $0x5f0] sm:$0xff] %v1696_v62 }
  0xd2   : > { %1699 = vst [vmem:[%s11359_s17 + $0x5f8] sm:$0xff] %v1698_v63  ;;  %v1700_v0 = vld [vmem:[%s11354_s16 + $0x1800] sm:$0xff] }
  0xd3   : > { %v1702_v1 = vld [vmem:[%s11354_s16 + $0x1820] sm:$0xff]  ;;  %1701 = vst [vmem:[%s11359_s17 + $0x600] sm:$0xff] %v1700_v0 }
  0xd4   : > { %v1704_v2 = vld [vmem:[%s11354_s16 + $0x1840] sm:$0xff]  ;;  %1703 = vst [vmem:[%s11359_s17 + $0x608] sm:$0xff] %v1702_v1 }
  0xd5   : > { %1705 = vst [vmem:[%s11359_s17 + $0x610] sm:$0xff] %v1704_v2  ;;  %v1706_v3 = vld [vmem:[%s11354_s16 + $0x1860] sm:$0xff] }
  0xd6   : > { %v1708_v4 = vld [vmem:[%s11354_s16 + $0x1880] sm:$0xff]  ;;  %1707 = vst [vmem:[%s11359_s17 + $0x618] sm:$0xff] %v1706_v3 }
  0xd7   : > { %v1710_v5 = vld [vmem:[%s11354_s16 + $0x18a0] sm:$0xff]  ;;  %1709 = vst [vmem:[%s11359_s17 + $0x620] sm:$0xff] %v1708_v4 }
  0xd8   : > { %1711 = vst [vmem:[%s11359_s17 + $0x628] sm:$0xff] %v1710_v5  ;;  %v1712_v6 = vld [vmem:[%s11354_s16 + $0x18c0] sm:$0xff] }
  0xd9   : > { %v1714_v7 = vld [vmem:[%s11354_s16 + $0x18e0] sm:$0xff]  ;;  %1713 = vst [vmem:[%s11359_s17 + $0x630] sm:$0xff] %v1712_v6 }
  0xda   : > { %v1716_v8 = vld [vmem:[%s11354_s16 + $0x1900] sm:$0xff]  ;;  %1715 = vst [vmem:[%s11359_s17 + $0x638] sm:$0xff] %v1714_v7 }
  0xdb   : > { %1717 = vst [vmem:[%s11359_s17 + $0x640] sm:$0xff] %v1716_v8  ;;  %v1718_v9 = vld [vmem:[%s11354_s16 + $0x1920] sm:$0xff] }
  0xdc   : > { %v1720_v10 = vld [vmem:[%s11354_s16 + $0x1940] sm:$0xff]  ;;  %1719 = vst [vmem:[%s11359_s17 + $0x648] sm:$0xff] %v1718_v9 }
  0xdd   : > { %v1722_v11 = vld [vmem:[%s11354_s16 + $0x1960] sm:$0xff]  ;;  %1721 = vst [vmem:[%s11359_s17 + $0x650] sm:$0xff] %v1720_v10 }
  0xde   : > { %1723 = vst [vmem:[%s11359_s17 + $0x658] sm:$0xff] %v1722_v11  ;;  %v1724_v12 = vld [vmem:[%s11354_s16 + $0x1980] sm:$0xff] }
  0xdf   : > { %v1726_v13 = vld [vmem:[%s11354_s16 + $0x19a0] sm:$0xff]  ;;  %1725 = vst [vmem:[%s11359_s17 + $0x660] sm:$0xff] %v1724_v12 }
  0xe0   : > { %v1728_v14 = vld [vmem:[%s11354_s16 + $0x19c0] sm:$0xff]  ;;  %1727 = vst [vmem:[%s11359_s17 + $0x668] sm:$0xff] %v1726_v13 }
  0xe1   : > { %1729 = vst [vmem:[%s11359_s17 + $0x670] sm:$0xff] %v1728_v14  ;;  %v1730_v15 = vld [vmem:[%s11354_s16 + $0x19e0] sm:$0xff] }
  0xe2   : > { %v1732_v16 = vld [vmem:[%s11354_s16 + $0x1a00] sm:$0xff]  ;;  %1731 = vst [vmem:[%s11359_s17 + $0x678] sm:$0xff] %v1730_v15 }
  0xe3   : > { %v1734_v17 = vld [vmem:[%s11354_s16 + $0x1a20] sm:$0xff]  ;;  %1733 = vst [vmem:[%s11359_s17 + $0x680] sm:$0xff] %v1732_v16 }
  0xe4   : > { %1735 = vst [vmem:[%s11359_s17 + $0x688] sm:$0xff] %v1734_v17  ;;  %v1736_v18 = vld [vmem:[%s11354_s16 + $0x1a40] sm:$0xff] }
  0xe5   : > { %v1738_v19 = vld [vmem:[%s11354_s16 + $0x1a60] sm:$0xff]  ;;  %1737 = vst [vmem:[%s11359_s17 + $0x690] sm:$0xff] %v1736_v18 }
  0xe6   : > { %v1740_v20 = vld [vmem:[%s11354_s16 + $0x1a80] sm:$0xff]  ;;  %1739 = vst [vmem:[%s11359_s17 + $0x698] sm:$0xff] %v1738_v19 }
  0xe7   : > { %1741 = vst [vmem:[%s11359_s17 + $0x6a0] sm:$0xff] %v1740_v20  ;;  %v1742_v21 = vld [vmem:[%s11354_s16 + $0x1aa0] sm:$0xff] }
  0xe8   : > { %v1744_v22 = vld [vmem:[%s11354_s16 + $0x1ac0] sm:$0xff]  ;;  %1743 = vst [vmem:[%s11359_s17 + $0x6a8] sm:$0xff] %v1742_v21 }
  0xe9   : > { %v1746_v23 = vld [vmem:[%s11354_s16 + $0x1ae0] sm:$0xff]  ;;  %1745 = vst [vmem:[%s11359_s17 + $0x6b0] sm:$0xff] %v1744_v22 }
  0xea   : > { %1747 = vst [vmem:[%s11359_s17 + $0x6b8] sm:$0xff] %v1746_v23  ;;  %v1748_v24 = vld [vmem:[%s11354_s16 + $0x1b00] sm:$0xff] }
  0xeb   : > { %v1750_v25 = vld [vmem:[%s11354_s16 + $0x1b20] sm:$0xff]  ;;  %1749 = vst [vmem:[%s11359_s17 + $0x6c0] sm:$0xff] %v1748_v24 }
  0xec   : > { %v1752_v26 = vld [vmem:[%s11354_s16 + $0x1b40] sm:$0xff]  ;;  %1751 = vst [vmem:[%s11359_s17 + $0x6c8] sm:$0xff] %v1750_v25 }
  0xed   : > { %1753 = vst [vmem:[%s11359_s17 + $0x6d0] sm:$0xff] %v1752_v26  ;;  %v1754_v27 = vld [vmem:[%s11354_s16 + $0x1b60] sm:$0xff] }
  0xee   : > { %v1756_v28 = vld [vmem:[%s11354_s16 + $0x1b80] sm:$0xff]  ;;  %1755 = vst [vmem:[%s11359_s17 + $0x6d8] sm:$0xff] %v1754_v27 }
  0xef   : > { %v1758_v29 = vld [vmem:[%s11354_s16 + $0x1ba0] sm:$0xff]  ;;  %1757 = vst [vmem:[%s11359_s17 + $0x6e0] sm:$0xff] %v1756_v28 }
  0xf0   : > { %1759 = vst [vmem:[%s11359_s17 + $0x6e8] sm:$0xff] %v1758_v29  ;;  %v1760_v30 = vld [vmem:[%s11354_s16 + $0x1bc0] sm:$0xff] }
  0xf1   : > { %v1762_v31 = vld [vmem:[%s11354_s16 + $0x1be0] sm:$0xff]  ;;  %1761 = vst [vmem:[%s11359_s17 + $0x6f0] sm:$0xff] %v1760_v30 }
  0xf2   : > { %v1764_v32 = vld [vmem:[%s11354_s16 + $0x1c00] sm:$0xff]  ;;  %1763 = vst [vmem:[%s11359_s17 + $0x6f8] sm:$0xff] %v1762_v31 }
  0xf3   : > { %1765 = vst [vmem:[%s11359_s17 + $0x700] sm:$0xff] %v1764_v32  ;;  %v1766_v33 = vld [vmem:[%s11354_s16 + $0x1c20] sm:$0xff] }
  0xf4   : > { %v1768_v34 = vld [vmem:[%s11354_s16 + $0x1c40] sm:$0xff]  ;;  %1767 = vst [vmem:[%s11359_s17 + $0x708] sm:$0xff] %v1766_v33 }
  0xf5   : > { %v1770_v35 = vld [vmem:[%s11354_s16 + $0x1c60] sm:$0xff]  ;;  %1769 = vst [vmem:[%s11359_s17 + $0x710] sm:$0xff] %v1768_v34 }
  0xf6   : > { %1771 = vst [vmem:[%s11359_s17 + $0x718] sm:$0xff] %v1770_v35  ;;  %v1772_v36 = vld [vmem:[%s11354_s16 + $0x1c80] sm:$0xff] }
  0xf7   : > { %v1774_v37 = vld [vmem:[%s11354_s16 + $0x1ca0] sm:$0xff]  ;;  %1773 = vst [vmem:[%s11359_s17 + $0x720] sm:$0xff] %v1772_v36 }
  0xf8   : > { %v1776_v38 = vld [vmem:[%s11354_s16 + $0x1cc0] sm:$0xff]  ;;  %1775 = vst [vmem:[%s11359_s17 + $0x728] sm:$0xff] %v1774_v37 }
  0xf9   : > { %1777 = vst [vmem:[%s11359_s17 + $0x730] sm:$0xff] %v1776_v38  ;;  %v1778_v39 = vld [vmem:[%s11354_s16 + $0x1ce0] sm:$0xff] }
  0xfa   : > { %v1780_v40 = vld [vmem:[%s11354_s16 + $0x1d00] sm:$0xff]  ;;  %1779 = vst [vmem:[%s11359_s17 + $0x738] sm:$0xff] %v1778_v39 }
  0xfb   : > { %v1782_v41 = vld [vmem:[%s11354_s16 + $0x1d20] sm:$0xff]  ;;  %1781 = vst [vmem:[%s11359_s17 + $0x740] sm:$0xff] %v1780_v40 }
  0xfc   : > { %1783 = vst [vmem:[%s11359_s17 + $0x748] sm:$0xff] %v1782_v41  ;;  %v1784_v42 = vld [vmem:[%s11354_s16 + $0x1d40] sm:$0xff] }
  0xfd   : > { %v1786_v43 = vld [vmem:[%s11354_s16 + $0x1d60] sm:$0xff]  ;;  %1785 = vst [vmem:[%s11359_s17 + $0x750] sm:$0xff] %v1784_v42 }
  0xfe   : > { %v1788_v44 = vld [vmem:[%s11354_s16 + $0x1d80] sm:$0xff]  ;;  %1787 = vst [vmem:[%s11359_s17 + $0x758] sm:$0xff] %v1786_v43 }
  0xff   : > { %1789 = vst [vmem:[%s11359_s17 + $0x760] sm:$0xff] %v1788_v44  ;;  %v1790_v45 = vld [vmem:[%s11354_s16 + $0x1da0] sm:$0xff] }
 0x100   : > { %v1792_v46 = vld [vmem:[%s11354_s16 + $0x1dc0] sm:$0xff]  ;;  %1791 = vst [vmem:[%s11359_s17 + $0x768] sm:$0xff] %v1790_v45 }
 0x101   : > { %v1794_v47 = vld [vmem:[%s11354_s16 + $0x1de0] sm:$0xff]  ;;  %1793 = vst [vmem:[%s11359_s17 + $0x770] sm:$0xff] %v1792_v46 }
 0x102   : > { %1795 = vst [vmem:[%s11359_s17 + $0x778] sm:$0xff] %v1794_v47  ;;  %v1796_v48 = vld [vmem:[%s11354_s16 + $0x1e00] sm:$0xff] }
 0x103   : > { %v1798_v49 = vld [vmem:[%s11354_s16 + $0x1e20] sm:$0xff]  ;;  %1797 = vst [vmem:[%s11359_s17 + $0x780] sm:$0xff] %v1796_v48 }
 0x104   : > { %v1800_v50 = vld [vmem:[%s11354_s16 + $0x1e40] sm:$0xff]  ;;  %1799 = vst [vmem:[%s11359_s17 + $0x788] sm:$0xff] %v1798_v49 }
 0x105   : > { %1801 = vst [vmem:[%s11359_s17 + $0x790] sm:$0xff] %v1800_v50  ;;  %v1802_v51 = vld [vmem:[%s11354_s16 + $0x1e60] sm:$0xff] }
 0x106   : > { %v1804_v52 = vld [vmem:[%s11354_s16 + $0x1e80] sm:$0xff]  ;;  %1803 = vst [vmem:[%s11359_s17 + $0x798] sm:$0xff] %v1802_v51 }
 0x107   : > { %v1806_v53 = vld [vmem:[%s11354_s16 + $0x1ea0] sm:$0xff]  ;;  %1805 = vst [vmem:[%s11359_s17 + $0x7a0] sm:$0xff] %v1804_v52 }
 0x108   : > { %1807 = vst [vmem:[%s11359_s17 + $0x7a8] sm:$0xff] %v1806_v53  ;;  %v1808_v54 = vld [vmem:[%s11354_s16 + $0x1ec0] sm:$0xff] }
 0x109   : > { %v1810_v55 = vld [vmem:[%s11354_s16 + $0x1ee0] sm:$0xff]  ;;  %1809 = vst [vmem:[%s11359_s17 + $0x7b0] sm:$0xff] %v1808_v54 }
 0x10a   : > { %v1812_v56 = vld [vmem:[%s11354_s16 + $0x1f00] sm:$0xff]  ;;  %1811 = vst [vmem:[%s11359_s17 + $0x7b8] sm:$0xff] %v1810_v55 }
 0x10b   : > { %1813 = vst [vmem:[%s11359_s17 + $0x7c0] sm:$0xff] %v1812_v56  ;;  %v1814_v57 = vld [vmem:[%s11354_s16 + $0x1f20] sm:$0xff] }
 0x10c   : > { %v1816_v58 = vld [vmem:[%s11354_s16 + $0x1f40] sm:$0xff]  ;;  %1815 = vst [vmem:[%s11359_s17 + $0x7c8] sm:$0xff] %v1814_v57 }
 0x10d   : > { %v1818_v59 = vld [vmem:[%s11354_s16 + $0x1f60] sm:$0xff]  ;;  %1817 = vst [vmem:[%s11359_s17 + $0x7d0] sm:$0xff] %v1816_v58 }
 0x10e   : > { %1819 = vst [vmem:[%s11359_s17 + $0x7d8] sm:$0xff] %v1818_v59  ;;  %v1820_v60 = vld [vmem:[%s11354_s16 + $0x1f80] sm:$0xff] }
 0x10f   : > { %v1822_v61 = vld [vmem:[%s11354_s16 + $0x1fa0] sm:$0xff]  ;;  %1821 = vst [vmem:[%s11359_s17 + $0x7e0] sm:$0xff] %v1820_v60 }
 0x110   : > { %v1824_v62 = vld [vmem:[%s11354_s16 + $0x1fc0] sm:$0xff]  ;;  %1823 = vst [vmem:[%s11359_s17 + $0x7e8] sm:$0xff] %v1822_v61 }
 0x111   : > { %1825 = vst [vmem:[%s11359_s17 + $0x7f0] sm:$0xff] %v1824_v62  ;;  %v1826_v63 = vld [vmem:[%s11354_s16 + $0x1fe0] sm:$0xff] }
 0x112   : > { %v1828_v0 = vld [vmem:[%s11354_s16 + $0x2000] sm:$0xff]  ;;  %1827 = vst [vmem:[%s11359_s17 + $0x7f8] sm:$0xff] %v1826_v63 }
 0x113   : > { %v1830_v1 = vld [vmem:[%s11354_s16 + $0x2020] sm:$0xff]  ;;  %1829 = vst [vmem:[%s11359_s17 + $0x800] sm:$0xff] %v1828_v0 }
 0x114   : > { %1831 = vst [vmem:[%s11359_s17 + $0x808] sm:$0xff] %v1830_v1  ;;  %v1832_v2 = vld [vmem:[%s11354_s16 + $0x2040] sm:$0xff] }
 0x115   : > { %v1834_v3 = vld [vmem:[%s11354_s16 + $0x2060] sm:$0xff]  ;;  %1833 = vst [vmem:[%s11359_s17 + $0x810] sm:$0xff] %v1832_v2 }
 0x116   : > { %v1836_v4 = vld [vmem:[%s11354_s16 + $0x2080] sm:$0xff]  ;;  %1835 = vst [vmem:[%s11359_s17 + $0x818] sm:$0xff] %v1834_v3 }
 0x117   : > { %1837 = vst [vmem:[%s11359_s17 + $0x820] sm:$0xff] %v1836_v4  ;;  %v1838_v5 = vld [vmem:[%s11354_s16 + $0x20a0] sm:$0xff] }
 0x118   : > { %v1840_v6 = vld [vmem:[%s11354_s16 + $0x20c0] sm:$0xff]  ;;  %1839 = vst [vmem:[%s11359_s17 + $0x828] sm:$0xff] %v1838_v5 }
 0x119   : > { %v1842_v7 = vld [vmem:[%s11354_s16 + $0x20e0] sm:$0xff]  ;;  %1841 = vst [vmem:[%s11359_s17 + $0x830] sm:$0xff] %v1840_v6 }
 0x11a   : > { %1843 = vst [vmem:[%s11359_s17 + $0x838] sm:$0xff] %v1842_v7  ;;  %v1844_v8 = vld [vmem:[%s11354_s16 + $0x2100] sm:$0xff] }
 0x11b   : > { %v1846_v9 = vld [vmem:[%s11354_s16 + $0x2120] sm:$0xff]  ;;  %1845 = vst [vmem:[%s11359_s17 + $0x840] sm:$0xff] %v1844_v8 }
 0x11c   : > { %v1848_v10 = vld [vmem:[%s11354_s16 + $0x2140] sm:$0xff]  ;;  %1847 = vst [vmem:[%s11359_s17 + $0x848] sm:$0xff] %v1846_v9 }
 0x11d   : > { %1849 = vst [vmem:[%s11359_s17 + $0x850] sm:$0xff] %v1848_v10  ;;  %v1850_v11 = vld [vmem:[%s11354_s16 + $0x2160] sm:$0xff] }
 0x11e   : > { %v1852_v12 = vld [vmem:[%s11354_s16 + $0x2180] sm:$0xff]  ;;  %1851 = vst [vmem:[%s11359_s17 + $0x858] sm:$0xff] %v1850_v11 }
 0x11f   : > { %v1854_v13 = vld [vmem:[%s11354_s16 + $0x21a0] sm:$0xff]  ;;  %1853 = vst [vmem:[%s11359_s17 + $0x860] sm:$0xff] %v1852_v12 }
 0x120   : > { %1855 = vst [vmem:[%s11359_s17 + $0x868] sm:$0xff] %v1854_v13  ;;  %v1856_v14 = vld [vmem:[%s11354_s16 + $0x21c0] sm:$0xff] }
 0x121   : > { %v1858_v15 = vld [vmem:[%s11354_s16 + $0x21e0] sm:$0xff]  ;;  %1857 = vst [vmem:[%s11359_s17 + $0x870] sm:$0xff] %v1856_v14 }
 0x122   : > { %v1860_v16 = vld [vmem:[%s11354_s16 + $0x2200] sm:$0xff]  ;;  %1859 = vst [vmem:[%s11359_s17 + $0x878] sm:$0xff] %v1858_v15 }
 0x123   : > { %1861 = vst [vmem:[%s11359_s17 + $0x880] sm:$0xff] %v1860_v16  ;;  %v1862_v17 = vld [vmem:[%s11354_s16 + $0x2220] sm:$0xff] }
 0x124   : > { %v1864_v18 = vld [vmem:[%s11354_s16 + $0x2240] sm:$0xff]  ;;  %1863 = vst [vmem:[%s11359_s17 + $0x888] sm:$0xff] %v1862_v17 }
 0x125   : > { %v1866_v19 = vld [vmem:[%s11354_s16 + $0x2260] sm:$0xff]  ;;  %1865 = vst [vmem:[%s11359_s17 + $0x890] sm:$0xff] %v1864_v18 }
 0x126   : > { %1867 = vst [vmem:[%s11359_s17 + $0x898] sm:$0xff] %v1866_v19  ;;  %v1868_v20 = vld [vmem:[%s11354_s16 + $0x2280] sm:$0xff] }
 0x127   : > { %v1870_v21 = vld [vmem:[%s11354_s16 + $0x22a0] sm:$0xff]  ;;  %1869 = vst [vmem:[%s11359_s17 + $0x8a0] sm:$0xff] %v1868_v20 }
 0x128   : > { %v1872_v22 = vld [vmem:[%s11354_s16 + $0x22c0] sm:$0xff]  ;;  %1871 = vst [vmem:[%s11359_s17 + $0x8a8] sm:$0xff] %v1870_v21 }
 0x129   : > { %1873 = vst [vmem:[%s11359_s17 + $0x8b0] sm:$0xff] %v1872_v22  ;;  %v1874_v23 = vld [vmem:[%s11354_s16 + $0x22e0] sm:$0xff] }
 0x12a   : > { %v1876_v24 = vld [vmem:[%s11354_s16 + $0x2300] sm:$0xff]  ;;  %1875 = vst [vmem:[%s11359_s17 + $0x8b8] sm:$0xff] %v1874_v23 }
 0x12b   : > { %v1878_v25 = vld [vmem:[%s11354_s16 + $0x2320] sm:$0xff]  ;;  %1877 = vst [vmem:[%s11359_s17 + $0x8c0] sm:$0xff] %v1876_v24 }
 0x12c   : > { %1879 = vst [vmem:[%s11359_s17 + $0x8c8] sm:$0xff] %v1878_v25  ;;  %v1880_v26 = vld [vmem:[%s11354_s16 + $0x2340] sm:$0xff] }
 0x12d   : > { %v1882_v27 = vld [vmem:[%s11354_s16 + $0x2360] sm:$0xff]  ;;  %1881 = vst [vmem:[%s11359_s17 + $0x8d0] sm:$0xff] %v1880_v26 }
 0x12e   : > { %v1884_v28 = vld [vmem:[%s11354_s16 + $0x2380] sm:$0xff]  ;;  %1883 = vst [vmem:[%s11359_s17 + $0x8d8] sm:$0xff] %v1882_v27 }
 0x12f   : > { %1885 = vst [vmem:[%s11359_s17 + $0x8e0] sm:$0xff] %v1884_v28  ;;  %v1886_v29 = vld [vmem:[%s11354_s16 + $0x23a0] sm:$0xff] }
 0x130   : > { %v1888_v30 = vld [vmem:[%s11354_s16 + $0x23c0] sm:$0xff]  ;;  %1887 = vst [vmem:[%s11359_s17 + $0x8e8] sm:$0xff] %v1886_v29 }
 0x131   : > { %v1890_v31 = vld [vmem:[%s11354_s16 + $0x23e0] sm:$0xff]  ;;  %1889 = vst [vmem:[%s11359_s17 + $0x8f0] sm:$0xff] %v1888_v30 }
 0x132   : > { %1891 = vst [vmem:[%s11359_s17 + $0x8f8] sm:$0xff] %v1890_v31  ;;  %v1892_v32 = vld [vmem:[%s11354_s16 + $0x2400] sm:$0xff] }
 0x133   : > { %v1894_v33 = vld [vmem:[%s11354_s16 + $0x2420] sm:$0xff]  ;;  %1893 = vst [vmem:[%s11359_s17 + $0x900] sm:$0xff] %v1892_v32 }
 0x134   : > { %v1896_v34 = vld [vmem:[%s11354_s16 + $0x2440] sm:$0xff]  ;;  %1895 = vst [vmem:[%s11359_s17 + $0x908] sm:$0xff] %v1894_v33 }
 0x135   : > { %1897 = vst [vmem:[%s11359_s17 + $0x910] sm:$0xff] %v1896_v34  ;;  %v1898_v35 = vld [vmem:[%s11354_s16 + $0x2460] sm:$0xff] }
 0x136   : > { %v1900_v36 = vld [vmem:[%s11354_s16 + $0x2480] sm:$0xff]  ;;  %1899 = vst [vmem:[%s11359_s17 + $0x918] sm:$0xff] %v1898_v35 }
 0x137   : > { %v1902_v37 = vld [vmem:[%s11354_s16 + $0x24a0] sm:$0xff]  ;;  %1901 = vst [vmem:[%s11359_s17 + $0x920] sm:$0xff] %v1900_v36 }
 0x138   : > { %1903 = vst [vmem:[%s11359_s17 + $0x928] sm:$0xff] %v1902_v37  ;;  %v1904_v38 = vld [vmem:[%s11354_s16 + $0x24c0] sm:$0xff] }
 0x139   : > { %v1906_v39 = vld [vmem:[%s11354_s16 + $0x24e0] sm:$0xff]  ;;  %1905 = vst [vmem:[%s11359_s17 + $0x930] sm:$0xff] %v1904_v38 }
 0x13a   : > { %v1908_v40 = vld [vmem:[%s11354_s16 + $0x2500] sm:$0xff]  ;;  %1907 = vst [vmem:[%s11359_s17 + $0x938] sm:$0xff] %v1906_v39 }
 0x13b   : > { %1909 = vst [vmem:[%s11359_s17 + $0x940] sm:$0xff] %v1908_v40  ;;  %v1910_v41 = vld [vmem:[%s11354_s16 + $0x2520] sm:$0xff] }
 0x13c   : > { %v1912_v42 = vld [vmem:[%s11354_s16 + $0x2540] sm:$0xff]  ;;  %1911 = vst [vmem:[%s11359_s17 + $0x948] sm:$0xff] %v1910_v41 }
 0x13d   : > { %v1914_v43 = vld [vmem:[%s11354_s16 + $0x2560] sm:$0xff]  ;;  %1913 = vst [vmem:[%s11359_s17 + $0x950] sm:$0xff] %v1912_v42 }
 0x13e   : > { %1915 = vst [vmem:[%s11359_s17 + $0x958] sm:$0xff] %v1914_v43  ;;  %v1916_v44 = vld [vmem:[%s11354_s16 + $0x2580] sm:$0xff] }
 0x13f   : > { %v1918_v45 = vld [vmem:[%s11354_s16 + $0x25a0] sm:$0xff]  ;;  %1917 = vst [vmem:[%s11359_s17 + $0x960] sm:$0xff] %v1916_v44 }
 0x140   : > { %v1920_v46 = vld [vmem:[%s11354_s16 + $0x25c0] sm:$0xff]  ;;  %1919 = vst [vmem:[%s11359_s17 + $0x968] sm:$0xff] %v1918_v45 }
 0x141   : > { %1921 = vst [vmem:[%s11359_s17 + $0x970] sm:$0xff] %v1920_v46  ;;  %v1922_v47 = vld [vmem:[%s11354_s16 + $0x25e0] sm:$0xff] }
 0x142   : > { %v1924_v48 = vld [vmem:[%s11354_s16 + $0x2600] sm:$0xff]  ;;  %1923 = vst [vmem:[%s11359_s17 + $0x978] sm:$0xff] %v1922_v47 }
 0x143   : > { %v1926_v49 = vld [vmem:[%s11354_s16 + $0x2620] sm:$0xff]  ;;  %1925 = vst [vmem:[%s11359_s17 + $0x980] sm:$0xff] %v1924_v48 }
 0x144   : > { %1927 = vst [vmem:[%s11359_s17 + $0x988] sm:$0xff] %v1926_v49  ;;  %v1928_v50 = vld [vmem:[%s11354_s16 + $0x2640] sm:$0xff] }
 0x145   : > { %v1930_v51 = vld [vmem:[%s11354_s16 + $0x2660] sm:$0xff]  ;;  %1929 = vst [vmem:[%s11359_s17 + $0x990] sm:$0xff] %v1928_v50 }
 0x146   : > { %v1932_v52 = vld [vmem:[%s11354_s16 + $0x2680] sm:$0xff]  ;;  %1931 = vst [vmem:[%s11359_s17 + $0x998] sm:$0xff] %v1930_v51 }
 0x147   : > { %1933 = vst [vmem:[%s11359_s17 + $0x9a0] sm:$0xff] %v1932_v52  ;;  %v1934_v53 = vld [vmem:[%s11354_s16 + $0x26a0] sm:$0xff] }
 0x148   : > { %v1936_v54 = vld [vmem:[%s11354_s16 + $0x26c0] sm:$0xff]  ;;  %1935 = vst [vmem:[%s11359_s17 + $0x9a8] sm:$0xff] %v1934_v53 }
 0x149   : > { %v1938_v55 = vld [vmem:[%s11354_s16 + $0x26e0] sm:$0xff]  ;;  %1937 = vst [vmem:[%s11359_s17 + $0x9b0] sm:$0xff] %v1936_v54 }
 0x14a   : > { %1939 = vst [vmem:[%s11359_s17 + $0x9b8] sm:$0xff] %v1938_v55  ;;  %v1940_v56 = vld [vmem:[%s11354_s16 + $0x2700] sm:$0xff] }
 0x14b   : > { %v1942_v57 = vld [vmem:[%s11354_s16 + $0x2720] sm:$0xff]  ;;  %1941 = vst [vmem:[%s11359_s17 + $0x9c0] sm:$0xff] %v1940_v56 }
 0x14c   : > { %v1944_v58 = vld [vmem:[%s11354_s16 + $0x2740] sm:$0xff]  ;;  %1943 = vst [vmem:[%s11359_s17 + $0x9c8] sm:$0xff] %v1942_v57 }
 0x14d   : > { %1945 = vst [vmem:[%s11359_s17 + $0x9d0] sm:$0xff] %v1944_v58  ;;  %v1946_v59 = vld [vmem:[%s11354_s16 + $0x2760] sm:$0xff] }
 0x14e   : > { %v1948_v60 = vld [vmem:[%s11354_s16 + $0x2780] sm:$0xff]  ;;  %1947 = vst [vmem:[%s11359_s17 + $0x9d8] sm:$0xff] %v1946_v59 }
 0x14f   : > { %v1950_v61 = vld [vmem:[%s11354_s16 + $0x27a0] sm:$0xff]  ;;  %1949 = vst [vmem:[%s11359_s17 + $0x9e0] sm:$0xff] %v1948_v60 }
 0x150   : > { %1951 = vst [vmem:[%s11359_s17 + $0x9e8] sm:$0xff] %v1950_v61  ;;  %v1952_v62 = vld [vmem:[%s11354_s16 + $0x27c0] sm:$0xff] }
 0x151   : > { %v1954_v63 = vld [vmem:[%s11354_s16 + $0x27e0] sm:$0xff]  ;;  %1953 = vst [vmem:[%s11359_s17 + $0x9f0] sm:$0xff] %v1952_v62 }
 0x152   : > { %v1956_v0 = vld [vmem:[%s11354_s16 + $0x2800] sm:$0xff]  ;;  %1955 = vst [vmem:[%s11359_s17 + $0x9f8] sm:$0xff] %v1954_v63 }
 0x153   : > { %1957 = vst [vmem:[%s11359_s17 + $0xa00] sm:$0xff] %v1956_v0  ;;  %v1958_v1 = vld [vmem:[%s11354_s16 + $0x2820] sm:$0xff] }
 0x154   : > { %v1960_v2 = vld [vmem:[%s11354_s16 + $0x2840] sm:$0xff]  ;;  %1959 = vst [vmem:[%s11359_s17 + $0xa08] sm:$0xff] %v1958_v1 }
 0x155   : > { %v1962_v3 = vld [vmem:[%s11354_s16 + $0x2860] sm:$0xff]  ;;  %1961 = vst [vmem:[%s11359_s17 + $0xa10] sm:$0xff] %v1960_v2 }
 0x156   : > { %1963 = vst [vmem:[%s11359_s17 + $0xa18] sm:$0xff] %v1962_v3  ;;  %v1964_v4 = vld [vmem:[%s11354_s16 + $0x2880] sm:$0xff] }
 0x157   : > { %v1966_v5 = vld [vmem:[%s11354_s16 + $0x28a0] sm:$0xff]  ;;  %1965 = vst [vmem:[%s11359_s17 + $0xa20] sm:$0xff] %v1964_v4 }
 0x158   : > { %v1968_v6 = vld [vmem:[%s11354_s16 + $0x28c0] sm:$0xff]  ;;  %1967 = vst [vmem:[%s11359_s17 + $0xa28] sm:$0xff] %v1966_v5 }
 0x159   : > { %1969 = vst [vmem:[%s11359_s17 + $0xa30] sm:$0xff] %v1968_v6  ;;  %v1970_v7 = vld [vmem:[%s11354_s16 + $0x28e0] sm:$0xff] }
 0x15a   : > { %v1972_v8 = vld [vmem:[%s11354_s16 + $0x2900] sm:$0xff]  ;;  %1971 = vst [vmem:[%s11359_s17 + $0xa38] sm:$0xff] %v1970_v7 }
 0x15b   : > { %v1974_v9 = vld [vmem:[%s11354_s16 + $0x2920] sm:$0xff]  ;;  %1973 = vst [vmem:[%s11359_s17 + $0xa40] sm:$0xff] %v1972_v8 }
 0x15c   : > { %1975 = vst [vmem:[%s11359_s17 + $0xa48] sm:$0xff] %v1974_v9  ;;  %v1976_v10 = vld [vmem:[%s11354_s16 + $0x2940] sm:$0xff] }
 0x15d   : > { %v1978_v11 = vld [vmem:[%s11354_s16 + $0x2960] sm:$0xff]  ;;  %1977 = vst [vmem:[%s11359_s17 + $0xa50] sm:$0xff] %v1976_v10 }
 0x15e   : > { %v1980_v12 = vld [vmem:[%s11354_s16 + $0x2980] sm:$0xff]  ;;  %1979 = vst [vmem:[%s11359_s17 + $0xa58] sm:$0xff] %v1978_v11 }
 0x15f   : > { %1981 = vst [vmem:[%s11359_s17 + $0xa60] sm:$0xff] %v1980_v12  ;;  %v1982_v13 = vld [vmem:[%s11354_s16 + $0x29a0] sm:$0xff] }
 0x160   : > { %v1984_v14 = vld [vmem:[%s11354_s16 + $0x29c0] sm:$0xff]  ;;  %1983 = vst [vmem:[%s11359_s17 + $0xa68] sm:$0xff] %v1982_v13 }
 0x161   : > { %v1986_v15 = vld [vmem:[%s11354_s16 + $0x29e0] sm:$0xff]  ;;  %1985 = vst [vmem:[%s11359_s17 + $0xa70] sm:$0xff] %v1984_v14 }
 0x162   : > { %1987 = vst [vmem:[%s11359_s17 + $0xa78] sm:$0xff] %v1986_v15  ;;  %v1988_v16 = vld [vmem:[%s11354_s16 + $0x2a00] sm:$0xff] }
 0x163   : > { %v1990_v17 = vld [vmem:[%s11354_s16 + $0x2a20] sm:$0xff]  ;;  %1989 = vst [vmem:[%s11359_s17 + $0xa80] sm:$0xff] %v1988_v16 }
 0x164   : > { %v1992_v18 = vld [vmem:[%s11354_s16 + $0x2a40] sm:$0xff]  ;;  %1991 = vst [vmem:[%s11359_s17 + $0xa88] sm:$0xff] %v1990_v17 }
 0x165   : > { %1993 = vst [vmem:[%s11359_s17 + $0xa90] sm:$0xff] %v1992_v18  ;;  %v1994_v19 = vld [vmem:[%s11354_s16 + $0x2a60] sm:$0xff] }
 0x166   : > { %v1996_v20 = vld [vmem:[%s11354_s16 + $0x2a80] sm:$0xff]  ;;  %1995 = vst [vmem:[%s11359_s17 + $0xa98] sm:$0xff] %v1994_v19 }
 0x167   : > { %v1998_v21 = vld [vmem:[%s11354_s16 + $0x2aa0] sm:$0xff]  ;;  %1997 = vst [vmem:[%s11359_s17 + $0xaa0] sm:$0xff] %v1996_v20 }
 0x168   : > { %1999 = vst [vmem:[%s11359_s17 + $0xaa8] sm:$0xff] %v1998_v21  ;;  %v2000_v22 = vld [vmem:[%s11354_s16 + $0x2ac0] sm:$0xff] }
 0x169   : > { %v2002_v23 = vld [vmem:[%s11354_s16 + $0x2ae0] sm:$0xff]  ;;  %2001 = vst [vmem:[%s11359_s17 + $0xab0] sm:$0xff] %v2000_v22 }
 0x16a   : > { %v2004_v24 = vld [vmem:[%s11354_s16 + $0x2b00] sm:$0xff]  ;;  %2003 = vst [vmem:[%s11359_s17 + $0xab8] sm:$0xff] %v2002_v23 }
 0x16b   : > { %2005 = vst [vmem:[%s11359_s17 + $0xac0] sm:$0xff] %v2004_v24  ;;  %v2006_v25 = vld [vmem:[%s11354_s16 + $0x2b20] sm:$0xff] }
 0x16c   : > { %v2008_v26 = vld [vmem:[%s11354_s16 + $0x2b40] sm:$0xff]  ;;  %2007 = vst [vmem:[%s11359_s17 + $0xac8] sm:$0xff] %v2006_v25 }
 0x16d   : > { %v2010_v27 = vld [vmem:[%s11354_s16 + $0x2b60] sm:$0xff]  ;;  %2009 = vst [vmem:[%s11359_s17 + $0xad0] sm:$0xff] %v2008_v26 }
 0x16e   : > { %2011 = vst [vmem:[%s11359_s17 + $0xad8] sm:$0xff] %v2010_v27  ;;  %v2012_v28 = vld [vmem:[%s11354_s16 + $0x2b80] sm:$0xff] }
 0x16f   : > { %v2014_v29 = vld [vmem:[%s11354_s16 + $0x2ba0] sm:$0xff]  ;;  %2013 = vst [vmem:[%s11359_s17 + $0xae0] sm:$0xff] %v2012_v28 }
 0x170   : > { %v2016_v30 = vld [vmem:[%s11354_s16 + $0x2bc0] sm:$0xff]  ;;  %2015 = vst [vmem:[%s11359_s17 + $0xae8] sm:$0xff] %v2014_v29 }
 0x171   : > { %2017 = vst [vmem:[%s11359_s17 + $0xaf0] sm:$0xff] %v2016_v30  ;;  %v2018_v31 = vld [vmem:[%s11354_s16 + $0x2be0] sm:$0xff] }
 0x172   : > { %v2020_v32 = vld [vmem:[%s11354_s16 + $0x2c00] sm:$0xff]  ;;  %2019 = vst [vmem:[%s11359_s17 + $0xaf8] sm:$0xff] %v2018_v31 }
 0x173   : > { %v2022_v33 = vld [vmem:[%s11354_s16 + $0x2c20] sm:$0xff]  ;;  %2021 = vst [vmem:[%s11359_s17 + $0xb00] sm:$0xff] %v2020_v32 }
 0x174   : > { %2023 = vst [vmem:[%s11359_s17 + $0xb08] sm:$0xff] %v2022_v33  ;;  %v2024_v34 = vld [vmem:[%s11354_s16 + $0x2c40] sm:$0xff] }
 0x175   : > { %v2026_v35 = vld [vmem:[%s11354_s16 + $0x2c60] sm:$0xff]  ;;  %2025 = vst [vmem:[%s11359_s17 + $0xb10] sm:$0xff] %v2024_v34 }
 0x176   : > { %v2028_v36 = vld [vmem:[%s11354_s16 + $0x2c80] sm:$0xff]  ;;  %2027 = vst [vmem:[%s11359_s17 + $0xb18] sm:$0xff] %v2026_v35 }
 0x177   : > { %2029 = vst [vmem:[%s11359_s17 + $0xb20] sm:$0xff] %v2028_v36  ;;  %v2030_v37 = vld [vmem:[%s11354_s16 + $0x2ca0] sm:$0xff] }
 0x178   : > { %v2032_v38 = vld [vmem:[%s11354_s16 + $0x2cc0] sm:$0xff]  ;;  %2031 = vst [vmem:[%s11359_s17 + $0xb28] sm:$0xff] %v2030_v37 }
 0x179   : > { %v2034_v39 = vld [vmem:[%s11354_s16 + $0x2ce0] sm:$0xff]  ;;  %2033 = vst [vmem:[%s11359_s17 + $0xb30] sm:$0xff] %v2032_v38 }
 0x17a   : > { %2035 = vst [vmem:[%s11359_s17 + $0xb38] sm:$0xff] %v2034_v39  ;;  %v2036_v40 = vld [vmem:[%s11354_s16 + $0x2d00] sm:$0xff] }
 0x17b   : > { %v2038_v41 = vld [vmem:[%s11354_s16 + $0x2d20] sm:$0xff]  ;;  %2037 = vst [vmem:[%s11359_s17 + $0xb40] sm:$0xff] %v2036_v40 }
 0x17c   : > { %v2040_v42 = vld [vmem:[%s11354_s16 + $0x2d40] sm:$0xff]  ;;  %2039 = vst [vmem:[%s11359_s17 + $0xb48] sm:$0xff] %v2038_v41 }
 0x17d   : > { %2041 = vst [vmem:[%s11359_s17 + $0xb50] sm:$0xff] %v2040_v42  ;;  %v2042_v43 = vld [vmem:[%s11354_s16 + $0x2d60] sm:$0xff] }
 0x17e   : > { %v2044_v44 = vld [vmem:[%s11354_s16 + $0x2d80] sm:$0xff]  ;;  %2043 = vst [vmem:[%s11359_s17 + $0xb58] sm:$0xff] %v2042_v43 }
 0x17f   : > { %v2046_v45 = vld [vmem:[%s11354_s16 + $0x2da0] sm:$0xff]  ;;  %2045 = vst [vmem:[%s11359_s17 + $0xb60] sm:$0xff] %v2044_v44 }
 0x180   : > { %2047 = vst [vmem:[%s11359_s17 + $0xb68] sm:$0xff] %v2046_v45  ;;  %v2048_v46 = vld [vmem:[%s11354_s16 + $0x2dc0] sm:$0xff] }
 0x181   : > { %v2050_v47 = vld [vmem:[%s11354_s16 + $0x2de0] sm:$0xff]  ;;  %2049 = vst [vmem:[%s11359_s17 + $0xb70] sm:$0xff] %v2048_v46 }
 0x182   : > { %v2052_v48 = vld [vmem:[%s11354_s16 + $0x2e00] sm:$0xff]  ;;  %2051 = vst [vmem:[%s11359_s17 + $0xb78] sm:$0xff] %v2050_v47 }
 0x183   : > { %2053 = vst [vmem:[%s11359_s17 + $0xb80] sm:$0xff] %v2052_v48  ;;  %v2054_v49 = vld [vmem:[%s11354_s16 + $0x2e20] sm:$0xff] }
 0x184   : > { %v2056_v50 = vld [vmem:[%s11354_s16 + $0x2e40] sm:$0xff]  ;;  %2055 = vst [vmem:[%s11359_s17 + $0xb88] sm:$0xff] %v2054_v49 }
 0x185   : > { %v2058_v51 = vld [vmem:[%s11354_s16 + $0x2e60] sm:$0xff]  ;;  %2057 = vst [vmem:[%s11359_s17 + $0xb90] sm:$0xff] %v2056_v50 }
 0x186   : > { %2059 = vst [vmem:[%s11359_s17 + $0xb98] sm:$0xff] %v2058_v51  ;;  %v2060_v52 = vld [vmem:[%s11354_s16 + $0x2e80] sm:$0xff] }
 0x187   : > { %v2062_v53 = vld [vmem:[%s11354_s16 + $0x2ea0] sm:$0xff]  ;;  %2061 = vst [vmem:[%s11359_s17 + $0xba0] sm:$0xff] %v2060_v52 }
 0x188   : > { %v2064_v54 = vld [vmem:[%s11354_s16 + $0x2ec0] sm:$0xff]  ;;  %2063 = vst [vmem:[%s11359_s17 + $0xba8] sm:$0xff] %v2062_v53 }
 0x189   : > { %2065 = vst [vmem:[%s11359_s17 + $0xbb0] sm:$0xff] %v2064_v54  ;;  %v2066_v55 = vld [vmem:[%s11354_s16 + $0x2ee0] sm:$0xff] }
 0x18a   : > { %v2068_v56 = vld [vmem:[%s11354_s16 + $0x2f00] sm:$0xff]  ;;  %2067 = vst [vmem:[%s11359_s17 + $0xbb8] sm:$0xff] %v2066_v55 }
 0x18b   : > { %v2070_v57 = vld [vmem:[%s11354_s16 + $0x2f20] sm:$0xff]  ;;  %2069 = vst [vmem:[%s11359_s17 + $0xbc0] sm:$0xff] %v2068_v56 }
 0x18c   : > { %2071 = vst [vmem:[%s11359_s17 + $0xbc8] sm:$0xff] %v2070_v57  ;;  %v2072_v58 = vld [vmem:[%s11354_s16 + $0x2f40] sm:$0xff] }
 0x18d   : > { %v2074_v59 = vld [vmem:[%s11354_s16 + $0x2f60] sm:$0xff]  ;;  %2073 = vst [vmem:[%s11359_s17 + $0xbd0] sm:$0xff] %v2072_v58 }
 0x18e   : > { %v2076_v60 = vld [vmem:[%s11354_s16 + $0x2f80] sm:$0xff]  ;;  %2075 = vst [vmem:[%s11359_s17 + $0xbd8] sm:$0xff] %v2074_v59 }
 0x18f   : > { %2077 = vst [vmem:[%s11359_s17 + $0xbe0] sm:$0xff] %v2076_v60  ;;  %v2078_v61 = vld [vmem:[%s11354_s16 + $0x2fa0] sm:$0xff] }
 0x190   : > { %v2080_v62 = vld [vmem:[%s11354_s16 + $0x2fc0] sm:$0xff]  ;;  %2079 = vst [vmem:[%s11359_s17 + $0xbe8] sm:$0xff] %v2078_v61 }
 0x191   : > { %v2082_v63 = vld [vmem:[%s11354_s16 + $0x2fe0] sm:$0xff]  ;;  %2081 = vst [vmem:[%s11359_s17 + $0xbf0] sm:$0xff] %v2080_v62 }
 0x192   : > { %2083 = vst [vmem:[%s11359_s17 + $0xbf8] sm:$0xff] %v2082_v63  ;;  %v2084_v0 = vld [vmem:[%s11354_s16 + $0x3000] sm:$0xff] }
 0x193   : > { %v2086_v1 = vld [vmem:[%s11354_s16 + $0x3020] sm:$0xff]  ;;  %2085 = vst [vmem:[%s11359_s17 + $0xc00] sm:$0xff] %v2084_v0 }
 0x194   : > { %v2088_v2 = vld [vmem:[%s11354_s16 + $0x3040] sm:$0xff]  ;;  %2087 = vst [vmem:[%s11359_s17 + $0xc08] sm:$0xff] %v2086_v1 }
 0x195   : > { %2089 = vst [vmem:[%s11359_s17 + $0xc10] sm:$0xff] %v2088_v2  ;;  %v2090_v3 = vld [vmem:[%s11354_s16 + $0x3060] sm:$0xff] }
 0x196   : > { %v2092_v4 = vld [vmem:[%s11354_s16 + $0x3080] sm:$0xff]  ;;  %2091 = vst [vmem:[%s11359_s17 + $0xc18] sm:$0xff] %v2090_v3 }
 0x197   : > { %v2094_v5 = vld [vmem:[%s11354_s16 + $0x30a0] sm:$0xff]  ;;  %2093 = vst [vmem:[%s11359_s17 + $0xc20] sm:$0xff] %v2092_v4 }
 0x198   : > { %2095 = vst [vmem:[%s11359_s17 + $0xc28] sm:$0xff] %v2094_v5  ;;  %v2096_v6 = vld [vmem:[%s11354_s16 + $0x30c0] sm:$0xff] }
 0x199   : > { %v2098_v7 = vld [vmem:[%s11354_s16 + $0x30e0] sm:$0xff]  ;;  %2097 = vst [vmem:[%s11359_s17 + $0xc30] sm:$0xff] %v2096_v6 }
 0x19a   : > { %v2100_v8 = vld [vmem:[%s11354_s16 + $0x3100] sm:$0xff]  ;;  %2099 = vst [vmem:[%s11359_s17 + $0xc38] sm:$0xff] %v2098_v7 }
 0x19b   : > { %2101 = vst [vmem:[%s11359_s17 + $0xc40] sm:$0xff] %v2100_v8  ;;  %v2102_v9 = vld [vmem:[%s11354_s16 + $0x3120] sm:$0xff] }
 0x19c   : > { %v2104_v10 = vld [vmem:[%s11354_s16 + $0x3140] sm:$0xff]  ;;  %2103 = vst [vmem:[%s11359_s17 + $0xc48] sm:$0xff] %v2102_v9 }
 0x19d   : > { %v2106_v11 = vld [vmem:[%s11354_s16 + $0x3160] sm:$0xff]  ;;  %2105 = vst [vmem:[%s11359_s17 + $0xc50] sm:$0xff] %v2104_v10 }
 0x19e   : > { %2107 = vst [vmem:[%s11359_s17 + $0xc58] sm:$0xff] %v2106_v11  ;;  %v2108_v12 = vld [vmem:[%s11354_s16 + $0x3180] sm:$0xff] }
 0x19f   : > { %v2110_v13 = vld [vmem:[%s11354_s16 + $0x31a0] sm:$0xff]  ;;  %2109 = vst [vmem:[%s11359_s17 + $0xc60] sm:$0xff] %v2108_v12 }
 0x1a0   : > { %v2112_v14 = vld [vmem:[%s11354_s16 + $0x31c0] sm:$0xff]  ;;  %2111 = vst [vmem:[%s11359_s17 + $0xc68] sm:$0xff] %v2110_v13 }
 0x1a1   : > { %2113 = vst [vmem:[%s11359_s17 + $0xc70] sm:$0xff] %v2112_v14  ;;  %v2114_v15 = vld [vmem:[%s11354_s16 + $0x31e0] sm:$0xff] }
 0x1a2   : > { %v2116_v16 = vld [vmem:[%s11354_s16 + $0x3200] sm:$0xff]  ;;  %2115 = vst [vmem:[%s11359_s17 + $0xc78] sm:$0xff] %v2114_v15 }
 0x1a3   : > { %v2118_v17 = vld [vmem:[%s11354_s16 + $0x3220] sm:$0xff]  ;;  %2117 = vst [vmem:[%s11359_s17 + $0xc80] sm:$0xff] %v2116_v16 }
 0x1a4   : > { %2119 = vst [vmem:[%s11359_s17 + $0xc88] sm:$0xff] %v2118_v17  ;;  %v2120_v18 = vld [vmem:[%s11354_s16 + $0x3240] sm:$0xff] }
 0x1a5   : > { %v2122_v19 = vld [vmem:[%s11354_s16 + $0x3260] sm:$0xff]  ;;  %2121 = vst [vmem:[%s11359_s17 + $0xc90] sm:$0xff] %v2120_v18 }
 0x1a6   : > { %v2124_v20 = vld [vmem:[%s11354_s16 + $0x3280] sm:$0xff]  ;;  %2123 = vst [vmem:[%s11359_s17 + $0xc98] sm:$0xff] %v2122_v19 }
 0x1a7   : > { %2125 = vst [vmem:[%s11359_s17 + $0xca0] sm:$0xff] %v2124_v20  ;;  %v2126_v21 = vld [vmem:[%s11354_s16 + $0x32a0] sm:$0xff] }
 0x1a8   : > { %v2128_v22 = vld [vmem:[%s11354_s16 + $0x32c0] sm:$0xff]  ;;  %2127 = vst [vmem:[%s11359_s17 + $0xca8] sm:$0xff] %v2126_v21 }
 0x1a9   : > { %v2130_v23 = vld [vmem:[%s11354_s16 + $0x32e0] sm:$0xff]  ;;  %2129 = vst [vmem:[%s11359_s17 + $0xcb0] sm:$0xff] %v2128_v22 }
 0x1aa   : > { %2131 = vst [vmem:[%s11359_s17 + $0xcb8] sm:$0xff] %v2130_v23  ;;  %v2132_v24 = vld [vmem:[%s11354_s16 + $0x3300] sm:$0xff] }
 0x1ab   : > { %v2134_v25 = vld [vmem:[%s11354_s16 + $0x3320] sm:$0xff]  ;;  %2133 = vst [vmem:[%s11359_s17 + $0xcc0] sm:$0xff] %v2132_v24 }
 0x1ac   : > { %v2136_v26 = vld [vmem:[%s11354_s16 + $0x3340] sm:$0xff]  ;;  %2135 = vst [vmem:[%s11359_s17 + $0xcc8] sm:$0xff] %v2134_v25 }
 0x1ad   : > { %2137 = vst [vmem:[%s11359_s17 + $0xcd0] sm:$0xff] %v2136_v26  ;;  %v2138_v27 = vld [vmem:[%s11354_s16 + $0x3360] sm:$0xff] }
 0x1ae   : > { %v2140_v28 = vld [vmem:[%s11354_s16 + $0x3380] sm:$0xff]  ;;  %2139 = vst [vmem:[%s11359_s17 + $0xcd8] sm:$0xff] %v2138_v27 }
 0x1af   : > { %v2142_v29 = vld [vmem:[%s11354_s16 + $0x33a0] sm:$0xff]  ;;  %2141 = vst [vmem:[%s11359_s17 + $0xce0] sm:$0xff] %v2140_v28 }
 0x1b0   : > { %2143 = vst [vmem:[%s11359_s17 + $0xce8] sm:$0xff] %v2142_v29  ;;  %v2144_v30 = vld [vmem:[%s11354_s16 + $0x33c0] sm:$0xff] }
 0x1b1   : > { %v2146_v31 = vld [vmem:[%s11354_s16 + $0x33e0] sm:$0xff]  ;;  %2145 = vst [vmem:[%s11359_s17 + $0xcf0] sm:$0xff] %v2144_v30 }
 0x1b2   : > { %v2148_v32 = vld [vmem:[%s11354_s16 + $0x3400] sm:$0xff]  ;;  %2147 = vst [vmem:[%s11359_s17 + $0xcf8] sm:$0xff] %v2146_v31 }
 0x1b3   : > { %2149 = vst [vmem:[%s11359_s17 + $0xd00] sm:$0xff] %v2148_v32  ;;  %v2150_v33 = vld [vmem:[%s11354_s16 + $0x3420] sm:$0xff] }
 0x1b4   : > { %v2152_v34 = vld [vmem:[%s11354_s16 + $0x3440] sm:$0xff]  ;;  %2151 = vst [vmem:[%s11359_s17 + $0xd08] sm:$0xff] %v2150_v33 }
 0x1b5   : > { %v2154_v35 = vld [vmem:[%s11354_s16 + $0x3460] sm:$0xff]  ;;  %2153 = vst [vmem:[%s11359_s17 + $0xd10] sm:$0xff] %v2152_v34 }
 0x1b6   : > { %2155 = vst [vmem:[%s11359_s17 + $0xd18] sm:$0xff] %v2154_v35  ;;  %v2156_v36 = vld [vmem:[%s11354_s16 + $0x3480] sm:$0xff] }
 0x1b7   : > { %v2158_v37 = vld [vmem:[%s11354_s16 + $0x34a0] sm:$0xff]  ;;  %2157 = vst [vmem:[%s11359_s17 + $0xd20] sm:$0xff] %v2156_v36 }
 0x1b8   : > { %v2160_v38 = vld [vmem:[%s11354_s16 + $0x34c0] sm:$0xff]  ;;  %2159 = vst [vmem:[%s11359_s17 + $0xd28] sm:$0xff] %v2158_v37 }
 0x1b9   : > { %2161 = vst [vmem:[%s11359_s17 + $0xd30] sm:$0xff] %v2160_v38  ;;  %v2162_v39 = vld [vmem:[%s11354_s16 + $0x34e0] sm:$0xff] }
 0x1ba   : > { %v2164_v40 = vld [vmem:[%s11354_s16 + $0x3500] sm:$0xff]  ;;  %2163 = vst [vmem:[%s11359_s17 + $0xd38] sm:$0xff] %v2162_v39 }
 0x1bb   : > { %v2166_v41 = vld [vmem:[%s11354_s16 + $0x3520] sm:$0xff]  ;;  %2165 = vst [vmem:[%s11359_s17 + $0xd40] sm:$0xff] %v2164_v40 }
 0x1bc   : > { %2167 = vst [vmem:[%s11359_s17 + $0xd48] sm:$0xff] %v2166_v41  ;;  %v2168_v42 = vld [vmem:[%s11354_s16 + $0x3540] sm:$0xff] }
 0x1bd   : > { %v2170_v43 = vld [vmem:[%s11354_s16 + $0x3560] sm:$0xff]  ;;  %2169 = vst [vmem:[%s11359_s17 + $0xd50] sm:$0xff] %v2168_v42 }
 0x1be   : > { %v2172_v44 = vld [vmem:[%s11354_s16 + $0x3580] sm:$0xff]  ;;  %2171 = vst [vmem:[%s11359_s17 + $0xd58] sm:$0xff] %v2170_v43 }
 0x1bf   : > { %2173 = vst [vmem:[%s11359_s17 + $0xd60] sm:$0xff] %v2172_v44  ;;  %v2174_v45 = vld [vmem:[%s11354_s16 + $0x35a0] sm:$0xff] }
 0x1c0   : > { %v2176_v46 = vld [vmem:[%s11354_s16 + $0x35c0] sm:$0xff]  ;;  %2175 = vst [vmem:[%s11359_s17 + $0xd68] sm:$0xff] %v2174_v45 }
 0x1c1   : > { %v2178_v47 = vld [vmem:[%s11354_s16 + $0x35e0] sm:$0xff]  ;;  %2177 = vst [vmem:[%s11359_s17 + $0xd70] sm:$0xff] %v2176_v46 }
 0x1c2   : > { %2179 = vst [vmem:[%s11359_s17 + $0xd78] sm:$0xff] %v2178_v47  ;;  %v2180_v48 = vld [vmem:[%s11354_s16 + $0x3600] sm:$0xff] }
 0x1c3   : > { %v2182_v49 = vld [vmem:[%s11354_s16 + $0x3620] sm:$0xff]  ;;  %2181 = vst [vmem:[%s11359_s17 + $0xd80] sm:$0xff] %v2180_v48 }
 0x1c4   : > { %v2184_v50 = vld [vmem:[%s11354_s16 + $0x3640] sm:$0xff]  ;;  %2183 = vst [vmem:[%s11359_s17 + $0xd88] sm:$0xff] %v2182_v49 }
 0x1c5   : > { %2185 = vst [vmem:[%s11359_s17 + $0xd90] sm:$0xff] %v2184_v50  ;;  %v2186_v51 = vld [vmem:[%s11354_s16 + $0x3660] sm:$0xff] }
 0x1c6   : > { %v2188_v52 = vld [vmem:[%s11354_s16 + $0x3680] sm:$0xff]  ;;  %2187 = vst [vmem:[%s11359_s17 + $0xd98] sm:$0xff] %v2186_v51 }
 0x1c7   : > { %v2190_v53 = vld [vmem:[%s11354_s16 + $0x36a0] sm:$0xff]  ;;  %2189 = vst [vmem:[%s11359_s17 + $0xda0] sm:$0xff] %v2188_v52 }
 0x1c8   : > { %2191 = vst [vmem:[%s11359_s17 + $0xda8] sm:$0xff] %v2190_v53  ;;  %v2192_v54 = vld [vmem:[%s11354_s16 + $0x36c0] sm:$0xff] }
 0x1c9   : > { %v2194_v55 = vld [vmem:[%s11354_s16 + $0x36e0] sm:$0xff]  ;;  %2193 = vst [vmem:[%s11359_s17 + $0xdb0] sm:$0xff] %v2192_v54 }
 0x1ca   : > { %v2196_v56 = vld [vmem:[%s11354_s16 + $0x3700] sm:$0xff]  ;;  %2195 = vst [vmem:[%s11359_s17 + $0xdb8] sm:$0xff] %v2194_v55 }
 0x1cb   : > { %2197 = vst [vmem:[%s11359_s17 + $0xdc0] sm:$0xff] %v2196_v56  ;;  %v2198_v57 = vld [vmem:[%s11354_s16 + $0x3720] sm:$0xff] }
 0x1cc   : > { %v2200_v58 = vld [vmem:[%s11354_s16 + $0x3740] sm:$0xff]  ;;  %2199 = vst [vmem:[%s11359_s17 + $0xdc8] sm:$0xff] %v2198_v57 }
 0x1cd   : > { %v2202_v59 = vld [vmem:[%s11354_s16 + $0x3760] sm:$0xff]  ;;  %2201 = vst [vmem:[%s11359_s17 + $0xdd0] sm:$0xff] %v2200_v58 }
 0x1ce   : > { %2203 = vst [vmem:[%s11359_s17 + $0xdd8] sm:$0xff] %v2202_v59  ;;  %v2204_v60 = vld [vmem:[%s11354_s16 + $0x3780] sm:$0xff] }
 0x1cf   : > { %v2206_v61 = vld [vmem:[%s11354_s16 + $0x37a0] sm:$0xff]  ;;  %2205 = vst [vmem:[%s11359_s17 + $0xde0] sm:$0xff] %v2204_v60 }
 0x1d0   : > { %v2208_v62 = vld [vmem:[%s11354_s16 + $0x37c0] sm:$0xff]  ;;  %2207 = vst [vmem:[%s11359_s17 + $0xde8] sm:$0xff] %v2206_v61 }
 0x1d1   : > { %2209 = vst [vmem:[%s11359_s17 + $0xdf0] sm:$0xff] %v2208_v62  ;;  %v2210_v63 = vld [vmem:[%s11354_s16 + $0x37e0] sm:$0xff] }
 0x1d2   : > { %v2212_v0 = vld [vmem:[%s11354_s16 + $0x3800] sm:$0xff]  ;;  %2211 = vst [vmem:[%s11359_s17 + $0xdf8] sm:$0xff] %v2210_v63 }
 0x1d3   : > { %v2214_v1 = vld [vmem:[%s11354_s16 + $0x3820] sm:$0xff]  ;;  %2213 = vst [vmem:[%s11359_s17 + $0xe00] sm:$0xff] %v2212_v0 }
 0x1d4   : > { %2215 = vst [vmem:[%s11359_s17 + $0xe08] sm:$0xff] %v2214_v1  ;;  %v2216_v2 = vld [vmem:[%s11354_s16 + $0x3840] sm:$0xff] }
 0x1d5   : > { %v2218_v3 = vld [vmem:[%s11354_s16 + $0x3860] sm:$0xff]  ;;  %2217 = vst [vmem:[%s11359_s17 + $0xe10] sm:$0xff] %v2216_v2 }
 0x1d6   : > { %v2220_v4 = vld [vmem:[%s11354_s16 + $0x3880] sm:$0xff]  ;;  %2219 = vst [vmem:[%s11359_s17 + $0xe18] sm:$0xff] %v2218_v3 }
 0x1d7   : > { %2221 = vst [vmem:[%s11359_s17 + $0xe20] sm:$0xff] %v2220_v4  ;;  %v2222_v5 = vld [vmem:[%s11354_s16 + $0x38a0] sm:$0xff] }
 0x1d8   : > { %v2224_v6 = vld [vmem:[%s11354_s16 + $0x38c0] sm:$0xff]  ;;  %2223 = vst [vmem:[%s11359_s17 + $0xe28] sm:$0xff] %v2222_v5 }
 0x1d9   : > { %v2226_v7 = vld [vmem:[%s11354_s16 + $0x38e0] sm:$0xff]  ;;  %2225 = vst [vmem:[%s11359_s17 + $0xe30] sm:$0xff] %v2224_v6 }
 0x1da   : > { %2227 = vst [vmem:[%s11359_s17 + $0xe38] sm:$0xff] %v2226_v7  ;;  %v2228_v8 = vld [vmem:[%s11354_s16 + $0x3900] sm:$0xff] }
 0x1db   : > { %v2230_v9 = vld [vmem:[%s11354_s16 + $0x3920] sm:$0xff]  ;;  %2229 = vst [vmem:[%s11359_s17 + $0xe40] sm:$0xff] %v2228_v8 }
 0x1dc   : > { %v2232_v10 = vld [vmem:[%s11354_s16 + $0x3940] sm:$0xff]  ;;  %2231 = vst [vmem:[%s11359_s17 + $0xe48] sm:$0xff] %v2230_v9 }
 0x1dd   : > { %2233 = vst [vmem:[%s11359_s17 + $0xe50] sm:$0xff] %v2232_v10  ;;  %v2234_v11 = vld [vmem:[%s11354_s16 + $0x3960] sm:$0xff] }
 0x1de   : > { %v2236_v12 = vld [vmem:[%s11354_s16 + $0x3980] sm:$0xff]  ;;  %2235 = vst [vmem:[%s11359_s17 + $0xe58] sm:$0xff] %v2234_v11 }
 0x1df   : > { %v2238_v13 = vld [vmem:[%s11354_s16 + $0x39a0] sm:$0xff]  ;;  %2237 = vst [vmem:[%s11359_s17 + $0xe60] sm:$0xff] %v2236_v12 }
 0x1e0   : > { %2239 = vst [vmem:[%s11359_s17 + $0xe68] sm:$0xff] %v2238_v13  ;;  %v2240_v14 = vld [vmem:[%s11354_s16 + $0x39c0] sm:$0xff] }
 0x1e1   : > { %v2242_v15 = vld [vmem:[%s11354_s16 + $0x39e0] sm:$0xff]  ;;  %2241 = vst [vmem:[%s11359_s17 + $0xe70] sm:$0xff] %v2240_v14 }
 0x1e2   : > { %v2244_v16 = vld [vmem:[%s11354_s16 + $0x3a00] sm:$0xff]  ;;  %2243 = vst [vmem:[%s11359_s17 + $0xe78] sm:$0xff] %v2242_v15 }
 0x1e3   : > { %2245 = vst [vmem:[%s11359_s17 + $0xe80] sm:$0xff] %v2244_v16  ;;  %v2246_v17 = vld [vmem:[%s11354_s16 + $0x3a20] sm:$0xff] }
 0x1e4   : > { %v2248_v18 = vld [vmem:[%s11354_s16 + $0x3a40] sm:$0xff]  ;;  %2247 = vst [vmem:[%s11359_s17 + $0xe88] sm:$0xff] %v2246_v17 }
 0x1e5   : > { %v2250_v19 = vld [vmem:[%s11354_s16 + $0x3a60] sm:$0xff]  ;;  %2249 = vst [vmem:[%s11359_s17 + $0xe90] sm:$0xff] %v2248_v18 }
 0x1e6   : > { %2251 = vst [vmem:[%s11359_s17 + $0xe98] sm:$0xff] %v2250_v19  ;;  %v2252_v20 = vld [vmem:[%s11354_s16 + $0x3a80] sm:$0xff] }
 0x1e7   : > { %v2254_v21 = vld [vmem:[%s11354_s16 + $0x3aa0] sm:$0xff]  ;;  %2253 = vst [vmem:[%s11359_s17 + $0xea0] sm:$0xff] %v2252_v20 }
 0x1e8   : > { %v2256_v22 = vld [vmem:[%s11354_s16 + $0x3ac0] sm:$0xff]  ;;  %2255 = vst [vmem:[%s11359_s17 + $0xea8] sm:$0xff] %v2254_v21 }
 0x1e9   : > { %2257 = vst [vmem:[%s11359_s17 + $0xeb0] sm:$0xff] %v2256_v22  ;;  %v2258_v23 = vld [vmem:[%s11354_s16 + $0x3ae0] sm:$0xff] }
 0x1ea   : > { %v2260_v24 = vld [vmem:[%s11354_s16 + $0x3b00] sm:$0xff]  ;;  %2259 = vst [vmem:[%s11359_s17 + $0xeb8] sm:$0xff] %v2258_v23 }
 0x1eb   : > { %v2262_v25 = vld [vmem:[%s11354_s16 + $0x3b20] sm:$0xff]  ;;  %2261 = vst [vmem:[%s11359_s17 + $0xec0] sm:$0xff] %v2260_v24 }
 0x1ec   : > { %2263 = vst [vmem:[%s11359_s17 + $0xec8] sm:$0xff] %v2262_v25  ;;  %v2264_v26 = vld [vmem:[%s11354_s16 + $0x3b40] sm:$0xff] }
 0x1ed   : > { %v2266_v27 = vld [vmem:[%s11354_s16 + $0x3b60] sm:$0xff]  ;;  %2265 = vst [vmem:[%s11359_s17 + $0xed0] sm:$0xff] %v2264_v26 }
 0x1ee   : > { %v2268_v28 = vld [vmem:[%s11354_s16 + $0x3b80] sm:$0xff]  ;;  %2267 = vst [vmem:[%s11359_s17 + $0xed8] sm:$0xff] %v2266_v27 }
 0x1ef   : > { %2269 = vst [vmem:[%s11359_s17 + $0xee0] sm:$0xff] %v2268_v28  ;;  %v2270_v29 = vld [vmem:[%s11354_s16 + $0x3ba0] sm:$0xff] }
 0x1f0   : > { %v2272_v30 = vld [vmem:[%s11354_s16 + $0x3bc0] sm:$0xff]  ;;  %2271 = vst [vmem:[%s11359_s17 + $0xee8] sm:$0xff] %v2270_v29 }
 0x1f1   : > { %v2274_v31 = vld [vmem:[%s11354_s16 + $0x3be0] sm:$0xff]  ;;  %2273 = vst [vmem:[%s11359_s17 + $0xef0] sm:$0xff] %v2272_v30 }
 0x1f2   : > { %2275 = vst [vmem:[%s11359_s17 + $0xef8] sm:$0xff] %v2274_v31  ;;  %v2276_v32 = vld [vmem:[%s11354_s16 + $0x3c00] sm:$0xff] }
 0x1f3   : > { %v2278_v33 = vld [vmem:[%s11354_s16 + $0x3c20] sm:$0xff]  ;;  %2277 = vst [vmem:[%s11359_s17 + $0xf00] sm:$0xff] %v2276_v32 }
 0x1f4   : > { %v2280_v34 = vld [vmem:[%s11354_s16 + $0x3c40] sm:$0xff]  ;;  %2279 = vst [vmem:[%s11359_s17 + $0xf08] sm:$0xff] %v2278_v33 }
 0x1f5   : > { %2281 = vst [vmem:[%s11359_s17 + $0xf10] sm:$0xff] %v2280_v34  ;;  %v2282_v35 = vld [vmem:[%s11354_s16 + $0x3c60] sm:$0xff] }
 0x1f6   : > { %v2284_v36 = vld [vmem:[%s11354_s16 + $0x3c80] sm:$0xff]  ;;  %2283 = vst [vmem:[%s11359_s17 + $0xf18] sm:$0xff] %v2282_v35 }
 0x1f7   : > { %v2286_v37 = vld [vmem:[%s11354_s16 + $0x3ca0] sm:$0xff]  ;;  %2285 = vst [vmem:[%s11359_s17 + $0xf20] sm:$0xff] %v2284_v36 }
 0x1f8   : > { %2287 = vst [vmem:[%s11359_s17 + $0xf28] sm:$0xff] %v2286_v37  ;;  %v2288_v38 = vld [vmem:[%s11354_s16 + $0x3cc0] sm:$0xff] }
 0x1f9   : > { %v2290_v39 = vld [vmem:[%s11354_s16 + $0x3ce0] sm:$0xff]  ;;  %2289 = vst [vmem:[%s11359_s17 + $0xf30] sm:$0xff] %v2288_v38 }
 0x1fa   : > { %v2292_v40 = vld [vmem:[%s11354_s16 + $0x3d00] sm:$0xff]  ;;  %2291 = vst [vmem:[%s11359_s17 + $0xf38] sm:$0xff] %v2290_v39 }
 0x1fb   : > { %2293 = vst [vmem:[%s11359_s17 + $0xf40] sm:$0xff] %v2292_v40  ;;  %v2294_v41 = vld [vmem:[%s11354_s16 + $0x3d20] sm:$0xff] }
 0x1fc   : > { %v2296_v42 = vld [vmem:[%s11354_s16 + $0x3d40] sm:$0xff]  ;;  %2295 = vst [vmem:[%s11359_s17 + $0xf48] sm:$0xff] %v2294_v41 }
 0x1fd   : > { %v2298_v43 = vld [vmem:[%s11354_s16 + $0x3d60] sm:$0xff]  ;;  %2297 = vst [vmem:[%s11359_s17 + $0xf50] sm:$0xff] %v2296_v42 }
 0x1fe   : > { %2299 = vst [vmem:[%s11359_s17 + $0xf58] sm:$0xff] %v2298_v43  ;;  %v2300_v44 = vld [vmem:[%s11354_s16 + $0x3d80] sm:$0xff] }
 0x1ff   : > { %v2302_v45 = vld [vmem:[%s11354_s16 + $0x3da0] sm:$0xff]  ;;  %2301 = vst [vmem:[%s11359_s17 + $0xf60] sm:$0xff] %v2300_v44 }
 0x200   : > { %v2304_v46 = vld [vmem:[%s11354_s16 + $0x3dc0] sm:$0xff]  ;;  %2303 = vst [vmem:[%s11359_s17 + $0xf68] sm:$0xff] %v2302_v45 }
 0x201   : > { %2305 = vst [vmem:[%s11359_s17 + $0xf70] sm:$0xff] %v2304_v46  ;;  %v2306_v47 = vld [vmem:[%s11354_s16 + $0x3de0] sm:$0xff] }
 0x202   : > { %v2308_v48 = vld [vmem:[%s11354_s16 + $0x3e00] sm:$0xff]  ;;  %2307 = vst [vmem:[%s11359_s17 + $0xf78] sm:$0xff] %v2306_v47 }
 0x203   : > { %v2310_v49 = vld [vmem:[%s11354_s16 + $0x3e20] sm:$0xff]  ;;  %2309 = vst [vmem:[%s11359_s17 + $0xf80] sm:$0xff] %v2308_v48 }
 0x204   : > { %2311 = vst [vmem:[%s11359_s17 + $0xf88] sm:$0xff] %v2310_v49  ;;  %v2312_v50 = vld [vmem:[%s11354_s16 + $0x3e40] sm:$0xff] }
 0x205   : > { %v2314_v51 = vld [vmem:[%s11354_s16 + $0x3e60] sm:$0xff]  ;;  %2313 = vst [vmem:[%s11359_s17 + $0xf90] sm:$0xff] %v2312_v50 }
 0x206   : > { %v2316_v52 = vld [vmem:[%s11354_s16 + $0x3e80] sm:$0xff]  ;;  %2315 = vst [vmem:[%s11359_s17 + $0xf98] sm:$0xff] %v2314_v51 }
 0x207   : > { %2317 = vst [vmem:[%s11359_s17 + $0xfa0] sm:$0xff] %v2316_v52  ;;  %v2318_v53 = vld [vmem:[%s11354_s16 + $0x3ea0] sm:$0xff] }
 0x208   : > { %v2320_v54 = vld [vmem:[%s11354_s16 + $0x3ec0] sm:$0xff]  ;;  %2319 = vst [vmem:[%s11359_s17 + $0xfa8] sm:$0xff] %v2318_v53 }
 0x209   : > { %v2322_v55 = vld [vmem:[%s11354_s16 + $0x3ee0] sm:$0xff]  ;;  %2321 = vst [vmem:[%s11359_s17 + $0xfb0] sm:$0xff] %v2320_v54 }
 0x20a   : > { %2323 = vst [vmem:[%s11359_s17 + $0xfb8] sm:$0xff] %v2322_v55  ;;  %v2324_v56 = vld [vmem:[%s11354_s16 + $0x3f00] sm:$0xff] }
 0x20b   : > { %v2326_v57 = vld [vmem:[%s11354_s16 + $0x3f20] sm:$0xff]  ;;  %2325 = vst [vmem:[%s11359_s17 + $0xfc0] sm:$0xff] %v2324_v56 }
 0x20c   : > { %v2328_v58 = vld [vmem:[%s11354_s16 + $0x3f40] sm:$0xff]  ;;  %2327 = vst [vmem:[%s11359_s17 + $0xfc8] sm:$0xff] %v2326_v57 }
 0x20d   : > { %2329 = vst [vmem:[%s11359_s17 + $0xfd0] sm:$0xff] %v2328_v58  ;;  %v2330_v59 = vld [vmem:[%s11354_s16 + $0x3f60] sm:$0xff] }
 0x20e   : > { %v2332_v60 = vld [vmem:[%s11354_s16 + $0x3f80] sm:$0xff]  ;;  %2331 = vst [vmem:[%s11359_s17 + $0xfd8] sm:$0xff] %v2330_v59 }
 0x20f   : > { %v2334_v61 = vld [vmem:[%s11354_s16 + $0x3fa0] sm:$0xff]  ;;  %2333 = vst [vmem:[%s11359_s17 + $0xfe0] sm:$0xff] %v2332_v60 }
 0x210   : > { %2335 = vst [vmem:[%s11359_s17 + $0xfe8] sm:$0xff] %v2334_v61  ;;  %v2336_v62 = vld [vmem:[%s11354_s16 + $0x3fc0] sm:$0xff] }
 0x211   : > { %v2338_v63 = vld [vmem:[%s11354_s16 + $0x3fe0] sm:$0xff]  ;;  %2337 = vst [vmem:[%s11359_s17 + $0xff0] sm:$0xff] %v2336_v62 }
 0x212   : > { %2339 = vst [vmem:[%s11359_s17 + $0xff8] sm:$0xff] %v2338_v63 }
 0x213 PF: > { %p9517_p6 = scmp.ge.s32.totalorder %s11264_s28, 1  ;;  %p4446_p7 = scmp.lt.s32.totalorder %s11264_s28, 5 }
 0x215   : > { %p4447_p8 = pnand %p9517_p6, %p4446_p7 }
 0x216   : > { %s4453_s18 = sand.u32 (!%p4447_p8), 1, %s11248_s24   ;;  %s9519_s19 = sshll.u32 (!%p4447_p8), %s11256_s26, 1 }
 0x217   : > { %4450 = sbr.rel (%p4447_p8) target bundleno = 1898 (0x76a), region = 96  ;;  %s9518_s20 = sshll.u32 (!%p4447_p8), %s4453_s18, 12 }
 0x218   : > { %p4499_p9 = scmp.lt.s32.totalorder (!%p4447_p8), %s9519_s19, 7  ;;  %s9520_s21 = sshll.u32 (!%p4447_p8), %s11256_s26, 5 }
 0x219   : > { %p4504_p10 = scmp.lt.s32.totalorder (!%p4447_p8), %s9520_s21, 127  ;;  %s12398_s24 = scalar_lea.vmem (!%p4447_p8), [#allocation3], %s9518_s20 }
 0x21a   : > { %p9523_p11 = scmp.ne.s32.totalorder (!%p4447_p8), %s11256_s26, 0 }
 0x21e   : > { %s13332_s19 = smov (!%p4499_p9, %s9519_s19), 7  ;;  %s13334_s21 = smov (!%p4504_p10, %s9520_s21), 127 }
 0x21f   : > { %s4501_s8 = scalar_lea.vmem %s13318_s2, %s13332_s19  ;;  %s10139_s9 = sshll.u32 %s13334_s21, 4  ;;  %v11266_v0 = vmov (!%p9523_p11), 0.0  }
 0x220   : > { %s12396_s13 = scalar_lea.vmem %s13319_s3, %s10139_s9  ;;  %4514 = sbr.rel (%p9523_p11) target bundleno = 551 (0x227), region = 104  ;;  %4515 = vst [vmem:[#allocation2] sm:$0xff] (!%p9523_p11), %v11266_v0 }
 0x227 PF: > { %v10294_v1 = vld [vmem:[%s12398_s24 + $0x4] ss:$8 sps:$4 sm:$0xff]   ;;  %v10298_v3 = vld [vmem:[%s12398_s24] ss:$8 sps:$4 sm:$0xff]   ;;  %v10300_v5 = vld [vmem:[%s12398_s24 + $0x14] ss:$8 sps:$4 sm:$0xff]   ;;  %v5034_v39 = vlaneseq }
 0x228   : > { %v10296_v2 = vld [vmem:[%s12398_s24 + $0x704] ss:$8 sps:$4 sm:$0xff]   ;;  %7836 = vmatprep.subr.bf16.mxu1 %v10294_v1  ;;  %v10299_v4 = vld [vmem:[%s12398_s24 + $0x700] ss:$8 sps:$4 sm:$0xff]   ;;  %v10302_v6 = vld [vmem:[%s12398_s24 + $0x714] ss:$8 sps:$4 sm:$0xff]  }
 0x229   : > { %8123 = vmatprep.subr.bf16.mxu0 %v10296_v2  ;;  %7837 = vmatpush1.bf16.msra.mxu1 %v10298_v3  ;;  %v10304_v7 = vld [vmem:[%s12398_s24 + $0x10] ss:$8 sps:$4 sm:$0xff]   ;;  %v10306_v9 = vld [vmem:[%s12398_s24 + $0x24] ss:$8 sps:$4 sm:$0xff]   ;;  %v10310_v11 = vld [vmem:[%s12398_s24 + $0x20] ss:$8 sps:$4 sm:$0xff]  }
 0x22a   : > { %8124 = vmatpush1.bf16.msra.mxu0 %v10299_v4  ;;  %7838 = vmatprep.subr.bf16.mxu1 %v10300_v5  ;;  %v10305_v8 = vld [vmem:[%s12398_s24 + $0x710] ss:$8 sps:$4 sm:$0xff]   ;;  %v10308_v10 = vld [vmem:[%s12398_s24 + $0x724] ss:$8 sps:$4 sm:$0xff]   ;;  %v10311_v12 = vld [vmem:[%s12398_s24 + $0x720] ss:$8 sps:$4 sm:$0xff]  }
 0x22b   : > { %8125 = vmatprep.subr.bf16.mxu0 %v10302_v6  ;;  %v10312_v13 = vld [vmem:[%s12398_s24 + $0x34] ss:$8 sps:$4 sm:$0xff]   ;;  %v10316_v15 = vld [vmem:[%s12398_s24 + $0x30] ss:$8 sps:$4 sm:$0xff]   ;;  %v10318_v17 = vld [vmem:[%s12398_s24 + $0x44] ss:$8 sps:$4 sm:$0xff]  }
 0x22c   : > { %v10314_v14 = vld [vmem:[%s12398_s24 + $0x734] ss:$8 sps:$4 sm:$0xff]   ;;  %v10317_v16 = vld [vmem:[%s12398_s24 + $0x730] ss:$8 sps:$4 sm:$0xff]   ;;  %v10320_v18 = vld [vmem:[%s12398_s24 + $0x744] ss:$8 sps:$4 sm:$0xff]  }
 0x22d   : > { %7839 = vmatpush1.bf16.msra.mxu1 %v10304_v7  ;;  %v10322_v19 = vld [vmem:[%s12398_s24 + $0x40] ss:$8 sps:$4 sm:$0xff]   ;;  %v10324_v21 = vld [vmem:[%s12398_s24 + $0x54] ss:$8 sps:$4 sm:$0xff]   ;;  %v10328_v23 = vld [vmem:[%s12398_s24 + $0x50] ss:$8 sps:$4 sm:$0xff]  }
 0x22e   : > { %8126 = vmatpush1.bf16.msra.mxu0 %v10305_v8  ;;  %7840 = vmatprep.subr.bf16.mxu1 %v10306_v9  ;;  %v10323_v20 = vld [vmem:[%s12398_s24 + $0x740] ss:$8 sps:$4 sm:$0xff]   ;;  %v10326_v22 = vld [vmem:[%s12398_s24 + $0x754] ss:$8 sps:$4 sm:$0xff]   ;;  %v10329_v24 = vld [vmem:[%s12398_s24 + $0x750] ss:$8 sps:$4 sm:$0xff]  }
 0x22f   : > { %8127 = vmatprep.subr.bf16.mxu0 %v10308_v10  ;;  %v10330_v25 = vld [vmem:[%s12398_s24 + $0x64] ss:$8 sps:$4 sm:$0xff]   ;;  %v10334_v27 = vld [vmem:[%s12398_s24 + $0x60] ss:$8 sps:$4 sm:$0xff]   ;;  %v10336_v29 = vld [vmem:[%s12398_s24 + $0x74] ss:$8 sps:$4 sm:$0xff]  }
 0x230   : > { %v10332_v26 = vld [vmem:[%s12398_s24 + $0x764] ss:$8 sps:$4 sm:$0xff]   ;;  %v10335_v28 = vld [vmem:[%s12398_s24 + $0x760] ss:$8 sps:$4 sm:$0xff]   ;;  %v10338_v30 = vld [vmem:[%s12398_s24 + $0x774] ss:$8 sps:$4 sm:$0xff]  }
 0x231   : > { %7841 = vmatpush1.bf16.msra.mxu1 %v10310_v11  ;;  %v10340_v31 = vld [vmem:[%s12398_s24 + $0x70] ss:$8 sps:$4 sm:$0xff]   ;;  %v10342_v33 = vld [vmem:[%s12398_s24 + $0x84] ss:$8 sps:$4 sm:$0xff]   ;;  %v10346_v35 = vld [vmem:[%s12398_s24 + $0x80] ss:$8 sps:$4 sm:$0xff]  }
 0x232   : > { %8128 = vmatpush1.bf16.msra.mxu0 %v10311_v12  ;;  %7842 = vmatprep.subr.bf16.mxu1 %v10312_v13  ;;  %v10341_v32 = vld [vmem:[%s12398_s24 + $0x770] ss:$8 sps:$4 sm:$0xff]   ;;  %v10344_v34 = vld [vmem:[%s12398_s24 + $0x784] ss:$8 sps:$4 sm:$0xff]   ;;  %v10347_v36 = vld [vmem:[%s12398_s24 + $0x780] ss:$8 sps:$4 sm:$0xff]  }
 0x233   : > { %8129 = vmatprep.subr.bf16.mxu0 %v10314_v14  ;;  %v10348_v37 = vld [vmem:[%s12398_s24 + $0x94] ss:$8 sps:$4 sm:$0xff]   ;;  %v11267_v40 = vmov 1966171168   ;;  %v10352_v42 = vld [vmem:[%s12398_s24 + $0x90] ss:$8 sps:$4 sm:$0xff]  }
 0x234   : > { %v10350_v38 = vld [vmem:[%s12398_s24 + $0x794] ss:$8 sps:$4 sm:$0xff]   ;;  %v5050_v41 = vunpack.c.l.s4 %v11267_v40  ;;  %v10353_v43 = vld [vmem:[%s12398_s24 + $0x790] ss:$8 sps:$4 sm:$0xff]   ;;  %v10354_v44 = vld [vmem:[%s12398_s24 + $0xa4] ss:$8 sps:$4 sm:$0xff]  }
 0x235   : > { %7843 = vmatpush1.bf16.msra.mxu1 %v10316_v15  ;;  %v10356_v45 = vld [vmem:[%s12398_s24 + $0x7a4] ss:$8 sps:$4 sm:$0xff]   ;;  %v12443_v46 = vshrl.u32 %v5034_v39, 7  ;;  %v10358_v48 = vld [vmem:[%s12398_s24 + $0xa0] ss:$8 sps:$4 sm:$0xff]   ;;  %v12455_v53 = vld [vmem:[%s13316_s0] sm:$0xff] }
 0x236   : > { %8130 = vmatpush1.bf16.msra.mxu0 %v10317_v16  ;;  %7844 = vmatprep.subr.bf16.mxu1 %v10318_v17  ;;  %v5051_v47 = vunpack.c.0.s8 %v5050_v41  ;;  %v10359_v49 = vld [vmem:[%s12398_s24 + $0x7a0] ss:$8 sps:$4 sm:$0xff]   ;;  %v10360_v50 = vld [vmem:[%s12398_s24 + $0xb4] ss:$8 sps:$4 sm:$0xff]   ;;  %v10364_v54 = vld [vmem:[%s12398_s24 + $0xb0] ss:$8 sps:$4 sm:$0xff]  }
 0x237   : > { %8131 = vmatprep.subr.bf16.mxu0 %v10320_v18  ;;  %v10362_v51 = vld [vmem:[%s12398_s24 + $0x7b4] ss:$8 sps:$4 sm:$0xff]   ;;  %v10365_v56 = vld [vmem:[%s12398_s24 + $0x7b0] ss:$8 sps:$4 sm:$0xff]   ;;  %v4517_v57 = vld [vmem:[%s13316_s0 + $0x8] sm:$0xff]  ;;  %p10100_p12 = scmp.ne.s32.totalorder %s11256_s26, 3 }
 0x238   : > { %v12450_v52 = vsub.s32 %v5051_v47, %v12443_v46  ;;  %v10366_v58 = vld [vmem:[%s12398_s24 + $0xc4] ss:$8 sps:$4 sm:$0xff]   ;;  %v5097_v61 = vcombine.high %v4517_v57, %v4517_v57  ;;  %v10370_v0 = vld [vmem:[%s12398_s24 + $0xc0] ss:$8 sps:$4 sm:$0xff]   ;;  %v10372_v2 = vld [vmem:[%s12398_s24 + $0xd4] ss:$8 sps:$4 sm:$0xff]  }
 0x239   : > { %7845 = vmatpush1.bf16.msra.mxu1 %v10322_v19  ;;  %v10368_v59 = vld [vmem:[%s12398_s24 + $0x7c4] ss:$8 sps:$4 sm:$0xff]   ;;  %v10371_v1 = vld [vmem:[%s12398_s24 + $0x7c0] ss:$8 sps:$4 sm:$0xff]   ;;  %v10374_v3 = vld [vmem:[%s12398_s24 + $0x7d4] ss:$8 sps:$4 sm:$0xff]  }
 0x23a   : > { %8132 = vmatpush1.bf16.msra.mxu0 %v10323_v20  ;;  %7846 = vmatprep.subr.bf16.mxu1 %v10324_v21  ;;  %v5055_v55 = vrot.slane %v12455_v53, %v12450_v52  ;;  %v5111_v63 = vrot.slane %v5097_v61, %v12450_v52  ;;  %v10376_v6 = vld [vmem:[%s12398_s24 + $0xd0] ss:$8 sps:$4 sm:$0xff]   ;;  %v10378_v8 = vld [vmem:[%s12398_s24 + $0xe4] ss:$8 sps:$4 sm:$0xff]   ;;  %v10382_v11 = vld [vmem:[%s12398_s24 + $0xe0] ss:$8 sps:$4 sm:$0xff]  }
 0x23b   : > { %8133 = vmatprep.subr.bf16.mxu0 %v10326_v22  ;;  %v10377_v7 = vld [vmem:[%s12398_s24 + $0x7d0] ss:$8 sps:$4 sm:$0xff]   ;;  %v10380_v9 = vld [vmem:[%s12398_s24 + $0x7e4] ss:$8 sps:$4 sm:$0xff]   ;;  %v10383_v12 = vld [vmem:[%s12398_s24 + $0x7e0] ss:$8 sps:$4 sm:$0xff]  }
 0x23c   : > { %v5063_v60 = vcombine.high %v5055_v55, %v5055_v55  ;;  %v5113_v4 = vcombine.high %v5111_v63, %v5111_v63  ;;  %v10384_v13 = vld [vmem:[%s12398_s24 + $0xf4] ss:$8 sps:$4 sm:$0xff]   ;;  %v12486_v15 = vrot.slane %v5111_v63, %v12450_v52  ;;  %v10388_v16 = vld [vmem:[%s12398_s24 + $0xf0] ss:$8 sps:$4 sm:$0xff]   ;;  %v10393_v18 = vld [vmem:[%s12398_s24 + $0x104] ss:$8 sps:$4 sm:$0xff]   ;;  %v12493_v20 = vrot.slane %v5055_v55, %v12450_v52 }
 0x23d   : > { %7847 = vmatpush1.bf16.msra.mxu1 %v10328_v23  ;;  %v10386_v14 = vld [vmem:[%s12398_s24 + $0x7f4] ss:$8 sps:$4 sm:$0xff]   ;;  %v10389_v17 = vld [vmem:[%s12398_s24 + $0x7f0] ss:$8 sps:$4 sm:$0xff]   ;;  %v10397_v19 = vld [vmem:[%s12398_s24 + $0x804] ss:$8 sps:$4 sm:$0xff]  }
 0x23e   : > { %8134 = vmatpush1.bf16.msra.mxu0 %v10329_v24  ;;  %7848 = vmatprep.subr.bf16.mxu1 %v10330_v25  ;;  %v5085_v62 = vrot.slane %v5063_v60, %v12450_v52  ;;  %v12473_v5 = vrot.slane %v5113_v4, %v12450_v52  ;;  %v5143_v21 = vcombine.high %v12486_v15, %v12486_v15  ;;  %v10391_v22 = vld [vmem:[%s12398_s24 + $0x100] ss:$8 sps:$4 sm:$0xff]   ;;  %v10400_v24 = vld [vmem:[%s12398_s24 + $0x114] ss:$8 sps:$4 sm:$0xff]   ;;  %v10433_v47 = vld [vmem:[%s12398_s24 + $0x864] ss:$8 sps:$4 sm:$0xff]  }
 0x23f   : > { %8135 = vmatprep.subr.bf16.mxu0 %v10332_v26  ;;  %v10395_v23 = vld [vmem:[%s12398_s24 + $0x800] ss:$8 sps:$4 sm:$0xff]   ;;  %v10403_v25 = vld [vmem:[%s12398_s24 + $0x814] ss:$8 sps:$4 sm:$0xff]   ;;  %v10434_v57 = vld [vmem:[%s12398_s24 + $0x170] ss:$8 sps:$4 sm:$0xff]  }
 0x240   : > { %7868 = vmatprep.mubr.bf16.mxu1 %v5085_v62  ;;  %v5145_v10 = vcombine.high %v12473_v5, %v12473_v5  ;;  %v5095_v26 = vcombine.high %v5085_v62, %v5085_v62  ;;  %v10416_v39 = vld [vmem:[%s12398_s24 + $0x140] ss:$8 sps:$4 sm:$0xff]   ;;  %v10424_v41 = vld [vmem:[%s12398_s24 + $0x154] ss:$8 sps:$4 sm:$0xff]   ;;  %v10445_v61 = vld [vmem:[%s12398_s24 + $0x884] ss:$8 sps:$4 sm:$0xff]  }
 0x241   : > { %7849 = vmatpush1.bf16.msra.mxu1 %v10334_v27  ;;  %v10398_v27 = vld [vmem:[%s12398_s24 + $0x110] ss:$8 sps:$4 sm:$0xff]   ;;  %v10419_v40 = vld [vmem:[%s12398_s24 + $0x840] ss:$8 sps:$4 sm:$0xff]   ;;  %v10439_v55 = vld [vmem:[%s12398_s24 + $0x874] ss:$8 sps:$4 sm:$0xff]  }
 0x242   : > { %8136 = vmatpush1.bf16.msra.mxu0 %v10335_v28  ;;  %7850 = vmatprep.subr.bf16.mxu1 %v10336_v29  ;;  %v10401_v28 = vld [vmem:[%s12398_s24 + $0x810] ss:$8 sps:$4 sm:$0xff]   ;;  %v10406_v29 = vld [vmem:[%s12398_s24 + $0x124] ss:$8 sps:$4 sm:$0xff]   ;;  %v10440_v62 = vld [vmem:[%s12398_s24 + $0x180] ss:$8 sps:$4 sm:$0xff]  }
 0x243   : > { %8137 = vmatprep.subr.bf16.mxu0 %v10338_v30  ;;  %8155 = vmatprep.mubr.bf16.mxu0 %v5145_v10  ;;  %v10409_v30 = vld [vmem:[%s12398_s24 + $0x824] ss:$8 sps:$4 sm:$0xff]   ;;  %v10443_v63 = vld [vmem:[%s12398_s24 + $0x880] ss:$8 sps:$4 sm:$0xff]   ;;  %v10463_v10 = vld [vmem:[%s12398_s24 + $0x8b4] ss:$8 sps:$4 sm:$0xff]  }
 0x244   : > { %v10454_v4 = vld [vmem:[%s12398_s24 + $0x1a4] ss:$8 sps:$4 sm:$0xff]  }
 0x245   : > { %7851 = vmatpush1.bf16.msra.mxu1 %v10340_v31  ;;  %v10404_v31 = vld [vmem:[%s12398_s24 + $0x120] ss:$8 sps:$4 sm:$0xff]  }
 0x246   : > { %8138 = vmatpush1.bf16.msra.mxu0 %v10341_v32  ;;  %7852 = vmatprep.subr.bf16.mxu1 %v10342_v33  ;;  %v10407_v32 = vld [vmem:[%s12398_s24 + $0x820] ss:$8 sps:$4 sm:$0xff]   ;;  %v10412_v33 = vld [vmem:[%s12398_s24 + $0x134] ss:$8 sps:$4 sm:$0xff]  }
 0x247   : > { %8139 = vmatprep.subr.bf16.mxu0 %v10344_v34  ;;  %v10415_v34 = vld [vmem:[%s12398_s24 + $0x834] ss:$8 sps:$4 sm:$0xff]  }
 0x249   : > { %7853 = vmatpush1.bf16.msra.mxu1 %v10346_v35  ;;  %v10410_v35 = vld [vmem:[%s12398_s24 + $0x130] ss:$8 sps:$4 sm:$0xff]  }
 0x24a   : > { %8140 = vmatpush1.bf16.msra.mxu0 %v10347_v36  ;;  %7854 = vmatprep.subr.bf16.mxu1 %v10348_v37  ;;  %v10413_v36 = vld [vmem:[%s12398_s24 + $0x830] ss:$8 sps:$4 sm:$0xff]   ;;  %v10418_v37 = vld [vmem:[%s12398_s24 + $0x144] ss:$8 sps:$4 sm:$0xff]  }
 0x24b   : > { %8141 = vmatprep.subr.bf16.mxu0 %v10350_v38  ;;  %v10421_v38 = vld [vmem:[%s12398_s24 + $0x844] ss:$8 sps:$4 sm:$0xff]  }
 0x24d   : > { %7855 = vmatpush1.bf16.msra.mxu1 %v10352_v42  ;;  %v10427_v42 = vld [vmem:[%s12398_s24 + $0x854] ss:$8 sps:$4 sm:$0xff]  }
 0x24e   : > { %8142 = vmatpush1.bf16.msra.mxu0 %v10353_v43  ;;  %7856 = vmatprep.subr.bf16.mxu1 %v10354_v44  ;;  %v10422_v43 = vld [vmem:[%s12398_s24 + $0x150] ss:$8 sps:$4 sm:$0xff]  }
 0x24f   : > { %8143 = vmatprep.subr.bf16.mxu0 %v10356_v45  ;;  %v10425_v44 = vld [vmem:[%s12398_s24 + $0x850] ss:$8 sps:$4 sm:$0xff]   ;;  %v10430_v45 = vld [vmem:[%s12398_s24 + $0x164] ss:$8 sps:$4 sm:$0xff]  }
 0x251   : > { %7857 = vmatpush1.bf16.msra.mxu1 %v10358_v48  ;;  %v10428_v48 = vld [vmem:[%s12398_s24 + $0x160] ss:$8 sps:$4 sm:$0xff]  }
 0x252   : > { %8144 = vmatpush1.bf16.msra.mxu0 %v10359_v49  ;;  %7858 = vmatprep.subr.bf16.mxu1 %v10360_v50  ;;  %v12526_v49 = vld [vmem:[%s13316_s0 + $0x10] sm:$0xff] }
 0x253   : > { %8145 = vmatprep.subr.bf16.mxu0 %v10362_v51  ;;  %v10431_v50 = vld [vmem:[%s12398_s24 + $0x860] ss:$8 sps:$4 sm:$0xff]   ;;  %v10436_v51 = vld [vmem:[%s12398_s24 + $0x174] ss:$8 sps:$4 sm:$0xff]  }
 0x255   : > { %7859 = vmatpush1.bf16.msra.mxu1 %v10364_v54  ;;  %v12532_v54 = vrot.slane %v12526_v49, %v12450_v52 }
 0x256   : > { %8146 = vmatpush1.bf16.msra.mxu0 %v10365_v56  ;;  %7860 = vmatprep.subr.bf16.mxu1 %v10366_v58  ;;  %v10437_v58 = vld [vmem:[%s12398_s24 + $0x870] ss:$8 sps:$4 sm:$0xff]  }
 0x257   : > { %8147 = vmatprep.subr.bf16.mxu0 %v10368_v59  ;;  %v5161_v56 = vcombine.high %v12532_v54, %v12532_v54  ;;  %v10442_v59 = vld [vmem:[%s12398_s24 + $0x184] ss:$8 sps:$4 sm:$0xff]  }
 0x259   : > { %7861 = vmatpush1.bf16.msra.mxu1 %v10370_v0  ;;  %v12541_v60 = vrot.slane %v5161_v56, %v12450_v52  ;;  %v10448_v0 = vld [vmem:[%s12398_s24 + $0x194] ss:$8 sps:$4 sm:$0xff]   ;;  %v10514_v56 = vld [vmem:[%s12398_s24 + $0x244] ss:$8 sps:$4 sm:$0xff]  }
 0x25a   : > { %8148 = vmatpush1.bf16.msra.mxu0 %v10371_v1  ;;  %7862 = vmatprep.subr.bf16.mxu1 %v10372_v2  ;;  %v10451_v1 = vld [vmem:[%s12398_s24 + $0x894] ss:$8 sps:$4 sm:$0xff]   ;;  %v10446_v2 = vld [vmem:[%s12398_s24 + $0x190] ss:$8 sps:$4 sm:$0xff]  }
 0x25b   : > { %8149 = vmatprep.subr.bf16.mxu0 %v10374_v3  ;;  %v10449_v3 = vld [vmem:[%s12398_s24 + $0x890] ss:$8 sps:$4 sm:$0xff]  }
 0x25d   : > { %7863 = vmatpush1.bf16.msra.mxu1 %v10376_v6  ;;  %v10457_v6 = vld [vmem:[%s12398_s24 + $0x8a4] ss:$8 sps:$4 sm:$0xff]  }
 0x25e   : > { %8150 = vmatpush1.bf16.msra.mxu0 %v10377_v7  ;;  %7864 = vmatprep.subr.bf16.mxu1 %v10378_v8  ;;  %v10452_v7 = vld [vmem:[%s12398_s24 + $0x1a0] ss:$8 sps:$4 sm:$0xff]  }
 0x25f   : > { %8151 = vmatprep.subr.bf16.mxu0 %v10380_v9  ;;  %v10455_v8 = vld [vmem:[%s12398_s24 + $0x8a0] ss:$8 sps:$4 sm:$0xff]   ;;  %v10460_v9 = vld [vmem:[%s12398_s24 + $0x1b4] ss:$8 sps:$4 sm:$0xff]  }
 0x261   : > { %7865 = vmatpush1.bf16.msra.mxu1 %v10382_v11  ;;  %v10458_v11 = vld [vmem:[%s12398_s24 + $0x1b0] ss:$8 sps:$4 sm:$0xff]  }
 0x262   : > { %8152 = vmatpush1.bf16.msra.mxu0 %v10383_v12  ;;  %7866 = vmatprep.subr.bf16.mxu1 %v10384_v13  ;;  %v10461_v12 = vld [vmem:[%s12398_s24 + $0x8b0] ss:$8 sps:$4 sm:$0xff]   ;;  %v10466_v13 = vld [vmem:[%s12398_s24 + $0x1c4] ss:$8 sps:$4 sm:$0xff]  }
 0x263   : > { %8153 = vmatprep.subr.bf16.mxu0 %v10386_v14  ;;  %v10469_v14 = vld [vmem:[%s12398_s24 + $0x8c4] ss:$8 sps:$4 sm:$0xff]  }
 0x265   : > { %7867 = vmatpush1.bf16.msra.mxu1 %v10388_v16  ;;  %v10464_v16 = vld [vmem:[%s12398_s24 + $0x1c0] ss:$8 sps:$4 sm:$0xff]  }
 0x266   : > { %8154 = vmatpush1.bf16.msra.mxu0 %v10389_v17  ;;  %7877 = vmatprep.subr.bf16.mxu1 %v10393_v18  ;;  %v10467_v17 = vld [vmem:[%s12398_s24 + $0x8c0] ss:$8 sps:$4 sm:$0xff]   ;;  %v10472_v18 = vld [vmem:[%s12398_s24 + $0x1d4] ss:$8 sps:$4 sm:$0xff]  }
 0x267   : > { %8164 = vmatprep.subr.bf16.mxu0 %v10397_v19  ;;  %v10475_v19 = vld [vmem:[%s12398_s24 + $0x8d4] ss:$8 sps:$4 sm:$0xff]  }
 0x268   : > { %7869 = vmatmul.mubr.bf16.vlgmr.msra.gmra.mrb[0].mxu1 %v12493_v20 }
 0x269   : > { %8156 = vmatmul.mubr.bf16.vlgmr.msra.gmra.mrb[0].mxu0 %v5143_v21  ;;  %7878 = vmatpush1.bf16.msra.mxu1 %v10391_v22  ;;  %v10470_v21 = vld [vmem:[%s12398_s24 + $0x1d0] ss:$8 sps:$4 sm:$0xff]  }
 0x26a   : > { %8165 = vmatpush1.bf16.msra.mxu0 %v10395_v23  ;;  %7879 = vmatprep.subr.bf16.mxu1 %v10400_v24  ;;  %v10473_v22 = vld [vmem:[%s12398_s24 + $0x8d0] ss:$8 sps:$4 sm:$0xff]   ;;  %v10478_v23 = vld [vmem:[%s12398_s24 + $0x1e4] ss:$8 sps:$4 sm:$0xff]  }
 0x26b   : > { %8166 = vmatprep.subr.bf16.mxu0 %v10403_v25  ;;  %7909 = vmatprep.mubr.bf16.mxu1 %v5095_v26  ;;  %v10481_v24 = vld [vmem:[%s12398_s24 + $0x8e4] ss:$8 sps:$4 sm:$0xff]   ;;  %v5048_v25 = vcombine.high %v12455_v53, %v12455_v53  ;;  %v10476_v26 = vld [vmem:[%s12398_s24 + $0x1e0] ss:$8 sps:$4 sm:$0xff]   ;;  %v10485_v53 = vld [vmem:[%s12398_s24 + $0x8f0] ss:$8 sps:$4 sm:$0xff]  }
 0x26c   : > { %8196 = vmatprep.mubr.bf16.mxu0 %v12541_v60 }
 0x26d   : > { %7880 = vmatpush1.bf16.msra.mxu1 %v10398_v27  ;;  %v10479_v27 = vld [vmem:[%s12398_s24 + $0x8e0] ss:$8 sps:$4 sm:$0xff]  }
 0x26e   : > { %8167 = vmatpush1.bf16.msra.mxu0 %v10401_v28  ;;  %7881 = vmatprep.subr.bf16.mxu1 %v10406_v29  ;;  %v10484_v28 = vld [vmem:[%s12398_s24 + $0x1f4] ss:$8 sps:$4 sm:$0xff]  }
 0x26f   : > { %8168 = vmatprep.subr.bf16.mxu0 %v10409_v30  ;;  %v10487_v29 = vld [vmem:[%s12398_s24 + $0x8f4] ss:$8 sps:$4 sm:$0xff]   ;;  %v12576_v30 = vrot.slane %v5048_v25, %v12450_v52  ;;  %v10554_v25 = vld [vmem:[%s12398_s24 + $0x2b0] ss:$8 sps:$4 sm:$0xff]  }
 0x271   : > { %7882 = vmatpush1.bf16.msra.mxu1 %v10404_v31  ;;  %v10482_v31 = vld [vmem:[%s12398_s24 + $0x1f0] ss:$8 sps:$4 sm:$0xff]  }
 0x272   : > { %8169 = vmatpush1.bf16.msra.mxu0 %v10407_v32  ;;  %7883 = vmatprep.subr.bf16.mxu1 %v10412_v33  ;;  %v10490_v32 = vld [vmem:[%s12398_s24 + $0x204] ss:$8 sps:$4 sm:$0xff]  }
 0x273   : > { %8170 = vmatprep.subr.bf16.mxu0 %v10415_v34  ;;  %v10493_v33 = vld [vmem:[%s12398_s24 + $0x904] ss:$8 sps:$4 sm:$0xff]   ;;  %v5064_v34 = vcombine.high %v12576_v30, %v12576_v30 }
 0x275   : > { %7884 = vmatpush1.bf16.msra.mxu1 %v10410_v35  ;;  %v5093_v35 = vcombine.high %v12493_v20, %v12493_v20  ;;  %v5193_v20 = vcombine.high %v12541_v60, %v12541_v60  ;;  %v10520_v60 = vld [vmem:[%s12398_s24 + $0x254] ss:$8 sps:$4 sm:$0xff]  }
 0x276   : > { %8171 = vmatpush1.bf16.msra.mxu0 %v10413_v36  ;;  %7885 = vmatprep.subr.bf16.mxu1 %v10418_v37  ;;  %v10488_v36 = vld [vmem:[%s12398_s24 + $0x200] ss:$8 sps:$4 sm:$0xff]   ;;  %v12589_v37 = vrot.slane %v12532_v54, %v12450_v52  ;;  %v10506_v54 = vld [vmem:[%s12398_s24 + $0x230] ss:$8 sps:$4 sm:$0xff]  }
 0x277   : > { %8172 = vmatprep.subr.bf16.mxu0 %v10421_v38  ;;  %v10491_v38 = vld [vmem:[%s12398_s24 + $0x900] ss:$8 sps:$4 sm:$0xff]  }
 0x279   : > { %7886 = vmatpush1.bf16.msra.mxu1 %v10416_v39  ;;  %v10496_v39 = vld [vmem:[%s12398_s24 + $0x214] ss:$8 sps:$4 sm:$0xff]  }
 0x27a   : > { %8173 = vmatpush1.bf16.msra.mxu0 %v10419_v40  ;;  %7887 = vmatprep.subr.bf16.mxu1 %v10424_v41  ;;  %v10499_v40 = vld [vmem:[%s12398_s24 + $0x914] ss:$8 sps:$4 sm:$0xff]   ;;  %v12595_v41 = vrot.slane %v5064_v34, %v12450_v52  ;;  %v10569_v34 = vld [vmem:[%s12398_s24 + $0x9d0] ss:$8 sps:$4 sm:$0xff]  }
 0x27b   : > { %8174 = vmatprep.subr.bf16.mxu0 %v10427_v42  ;;  %v10494_v42 = vld [vmem:[%s12398_s24 + $0x210] ss:$8 sps:$4 sm:$0xff]  }
 0x27d   : > { %7888 = vmatpush1.bf16.msra.mxu1 %v10422_v43  ;;  %v10497_v43 = vld [vmem:[%s12398_s24 + $0x910] ss:$8 sps:$4 sm:$0xff]  }
 0x27e   : > { %8175 = vmatpush1.bf16.msra.mxu0 %v10425_v44  ;;  %7889 = vmatprep.subr.bf16.mxu1 %v10430_v45  ;;  %v10502_v44 = vld [vmem:[%s12398_s24 + $0x224] ss:$8 sps:$4 sm:$0xff]  }
 0x27f   : > { %8176 = vmatprep.subr.bf16.mxu0 %v10433_v47  ;;  %v10505_v45 = vld [vmem:[%s12398_s24 + $0x924] ss:$8 sps:$4 sm:$0xff]   ;;  %v10500_v47 = vld [vmem:[%s12398_s24 + $0x220] ss:$8 sps:$4 sm:$0xff]  }
 0x281   : > { %7890 = vmatpush1.bf16.msra.mxu1 %v10428_v48  ;;  %v10503_v48 = vld [vmem:[%s12398_s24 + $0x920] ss:$8 sps:$4 sm:$0xff]  }
 0x282   : > { %8177 = vmatpush1.bf16.msra.mxu0 %v10431_v50  ;;  %7891 = vmatprep.subr.bf16.mxu1 %v10436_v51  ;;  %v10508_v50 = vld [vmem:[%s12398_s24 + $0x234] ss:$8 sps:$4 sm:$0xff]  }
 0x283   : > { %8178 = vmatprep.subr.bf16.mxu0 %v10439_v55  ;;  %v10511_v51 = vld [vmem:[%s12398_s24 + $0x934] ss:$8 sps:$4 sm:$0xff]   ;;  %v10509_v55 = vld [vmem:[%s12398_s24 + $0x930] ss:$8 sps:$4 sm:$0xff]  }
 0x285   : > { %7892 = vmatpush1.bf16.msra.mxu1 %v10434_v57  ;;  %v10517_v57 = vld [vmem:[%s12398_s24 + $0x944] ss:$8 sps:$4 sm:$0xff]  }
 0x286   : > { %8179 = vmatpush1.bf16.msra.mxu0 %v10437_v58  ;;  %7893 = vmatprep.subr.bf16.mxu1 %v10442_v59  ;;  %v10512_v58 = vld [vmem:[%s12398_s24 + $0x240] ss:$8 sps:$4 sm:$0xff]  }
 0x287   : > { %8180 = vmatprep.subr.bf16.mxu0 %v10445_v61  ;;  %v10515_v59 = vld [vmem:[%s12398_s24 + $0x940] ss:$8 sps:$4 sm:$0xff]   ;;  %v10523_v61 = vld [vmem:[%s12398_s24 + $0x954] ss:$8 sps:$4 sm:$0xff]  }
 0x289   : > { %7894 = vmatpush1.bf16.msra.mxu1 %v10440_v62  ;;  %v10518_v62 = vld [vmem:[%s12398_s24 + $0x250] ss:$8 sps:$4 sm:$0xff]  }
 0x28a   : > { %8181 = vmatpush1.bf16.msra.mxu0 %v10443_v63  ;;  %7895 = vmatprep.subr.bf16.mxu1 %v10448_v0  ;;  %v10521_v63 = vld [vmem:[%s12398_s24 + $0x950] ss:$8 sps:$4 sm:$0xff]   ;;  %v10526_v0 = vld [vmem:[%s12398_s24 + $0x264] ss:$8 sps:$4 sm:$0xff]  }
 0x28b   : > { %8182 = vmatprep.subr.bf16.mxu0 %v10451_v1  ;;  %v10529_v1 = vld [vmem:[%s12398_s24 + $0x964] ss:$8 sps:$4 sm:$0xff]  }
 0x28d   : > { %7896 = vmatpush1.bf16.msra.mxu1 %v10446_v2  ;;  %v10524_v2 = vld [vmem:[%s12398_s24 + $0x260] ss:$8 sps:$4 sm:$0xff]  }
 0x28e   : > { %8183 = vmatpush1.bf16.msra.mxu0 %v10449_v3  ;;  %7897 = vmatprep.subr.bf16.mxu1 %v10454_v4  ;;  %v10527_v3 = vld [vmem:[%s12398_s24 + $0x960] ss:$8 sps:$4 sm:$0xff]   ;;  %v10532_v4 = vld [vmem:[%s12398_s24 + $0x274] ss:$8 sps:$4 sm:$0xff]  }
 0x28f   : > { %8184 = vmatprep.subr.bf16.mxu0 %v10457_v6  ;;  %v10535_v6 = vld [vmem:[%s12398_s24 + $0x974] ss:$8 sps:$4 sm:$0xff]  }
 0x291   : > { %7898 = vmatpush1.bf16.msra.mxu1 %v10452_v7  ;;  %v10530_v7 = vld [vmem:[%s12398_s24 + $0x270] ss:$8 sps:$4 sm:$0xff]  }
 0x292   : > { %8185 = vmatpush1.bf16.msra.mxu0 %v10455_v8  ;;  %7899 = vmatprep.subr.bf16.mxu1 %v10460_v9  ;;  %v10533_v8 = vld [vmem:[%s12398_s24 + $0x970] ss:$8 sps:$4 sm:$0xff]   ;;  %v10538_v9 = vld [vmem:[%s12398_s24 + $0x284] ss:$8 sps:$4 sm:$0xff]  }
 0x293   : > { %8186 = vmatprep.subr.bf16.mxu0 %v10463_v10  ;;  %v10541_v10 = vld [vmem:[%s12398_s24 + $0x984] ss:$8 sps:$4 sm:$0xff]  }
 0x295   : > { %7900 = vmatpush1.bf16.msra.mxu1 %v10458_v11  ;;  %v10536_v11 = vld [vmem:[%s12398_s24 + $0x280] ss:$8 sps:$4 sm:$0xff]  }
 0x296   : > { %8187 = vmatpush1.bf16.msra.mxu0 %v10461_v12  ;;  %7901 = vmatprep.subr.bf16.mxu1 %v10466_v13  ;;  %v10539_v12 = vld [vmem:[%s12398_s24 + $0x980] ss:$8 sps:$4 sm:$0xff]   ;;  %v10544_v13 = vld [vmem:[%s12398_s24 + $0x294] ss:$8 sps:$4 sm:$0xff]  }
 0x297   : > { %8188 = vmatprep.subr.bf16.mxu0 %v10469_v14  ;;  %v10547_v14 = vld [vmem:[%s12398_s24 + $0x994] ss:$8 sps:$4 sm:$0xff]  }
 0x299   : > { %7902 = vmatpush1.bf16.msra.mxu1 %v10464_v16  ;;  %v10542_v16 = vld [vmem:[%s12398_s24 + $0x290] ss:$8 sps:$4 sm:$0xff]  }
 0x29a   : > { %8189 = vmatpush1.bf16.msra.mxu0 %v10467_v17  ;;  %7903 = vmatprep.subr.bf16.mxu1 %v10472_v18  ;;  %v10545_v17 = vld [vmem:[%s12398_s24 + $0x990] ss:$8 sps:$4 sm:$0xff]   ;;  %v10550_v18 = vld [vmem:[%s12398_s24 + $0x2a4] ss:$8 sps:$4 sm:$0xff]  }
 0x29b   : > { %8190 = vmatprep.subr.bf16.mxu0 %v10475_v19  ;;  %v10553_v19 = vld [vmem:[%s12398_s24 + $0x9a4] ss:$8 sps:$4 sm:$0xff]  }
 0x29d   : > { %7904 = vmatpush1.bf16.msra.mxu1 %v10470_v21  ;;  %v10548_v21 = vld [vmem:[%s12398_s24 + $0x2a0] ss:$8 sps:$4 sm:$0xff]  }
 0x29e   : > { %8191 = vmatpush1.bf16.msra.mxu0 %v10473_v22  ;;  %7905 = vmatprep.subr.bf16.mxu1 %v10478_v23  ;;  %v10551_v22 = vld [vmem:[%s12398_s24 + $0x9a0] ss:$8 sps:$4 sm:$0xff]   ;;  %v10556_v23 = vld [vmem:[%s12398_s24 + $0x2b4] ss:$8 sps:$4 sm:$0xff]  }
 0x29f   : > { %8192 = vmatprep.subr.bf16.mxu0 %v10481_v24  ;;  %v10559_v24 = vld [vmem:[%s12398_s24 + $0x9b4] ss:$8 sps:$4 sm:$0xff]  }
 0x2a1   : > { %7906 = vmatpush1.bf16.msra.mxu1 %v10476_v26  ;;  %v10557_v26 = vld [vmem:[%s12398_s24 + $0x9b0] ss:$8 sps:$4 sm:$0xff]  }
 0x2a2   : > { %8193 = vmatpush1.bf16.msra.mxu0 %v10479_v27  ;;  %7907 = vmatprep.subr.bf16.mxu1 %v10484_v28  ;;  %v10562_v27 = vld [vmem:[%s12398_s24 + $0x2c4] ss:$8 sps:$4 sm:$0xff]  }
 0x2a3   : > { %8194 = vmatprep.subr.bf16.mxu0 %v10487_v29  ;;  %v10565_v28 = vld [vmem:[%s12398_s24 + $0x9c4] ss:$8 sps:$4 sm:$0xff]   ;;  %v10560_v29 = vld [vmem:[%s12398_s24 + $0x2c0] ss:$8 sps:$4 sm:$0xff]  }
 0x2a5   : > { %7908 = vmatpush1.bf16.msra.mxu1 %v10482_v31  ;;  %v10563_v31 = vld [vmem:[%s12398_s24 + $0x9c0] ss:$8 sps:$4 sm:$0xff]  }
 0x2a6   : > { %8195 = vmatpush1.bf16.msra.mxu0 %v10485_v53  ;;  %7918 = vmatprep.subr.bf16.mxu1 %v10490_v32  ;;  %v10568_v53 = vld [vmem:[%s12398_s24 + $0x2d4] ss:$8 sps:$4 sm:$0xff]  }
 0x2a7   : > { %8205 = vmatprep.subr.bf16.mxu0 %v10493_v33  ;;  %v10571_v32 = vld [vmem:[%s12398_s24 + $0x9d4] ss:$8 sps:$4 sm:$0xff]   ;;  %v10566_v33 = vld [vmem:[%s12398_s24 + $0x2d0] ss:$8 sps:$4 sm:$0xff]  }
 0x2a8   : > { %7910 = vmatmul.mubr.bf16.vlgmr.msra.gmra.mrb[0].mxu1 %v5093_v35  ;;  %v10574_v35 = vld [vmem:[%s12398_s24 + $0x2e4] ss:$8 sps:$4 sm:$0xff]  }
 0x2a9   : > { %8197 = vmatmul.mubr.bf16.vlgmr.msra.gmra.mrb[0].mxu0 %v12589_v37  ;;  %7919 = vmatpush1.bf16.msra.mxu1 %v10488_v36  ;;  %v10577_v36 = vld [vmem:[%s12398_s24 + $0x9e4] ss:$8 sps:$4 sm:$0xff]  }
 0x2aa   : > { %8206 = vmatpush1.bf16.msra.mxu0 %v10491_v38  ;;  %7920 = vmatprep.subr.bf16.mxu1 %v10496_v39  ;;  %v5146_v38 = vcombine.high %v12526_v49, %v12526_v49  ;;  %v10572_v39 = vld [vmem:[%s12398_s24 + $0x2e0] ss:$8 sps:$4 sm:$0xff]   ;;  %v10581_v49 = vld [vmem:[%s12398_s24 + $0x9f0] ss:$8 sps:$4 sm:$0xff]  }
 0x2ab   : > { %8207 = vmatprep.subr.bf16.mxu0 %v10499_v40  ;;  %7950 = vmatprep.mubr.bf16.mxu1 %v12595_v41  ;;  %v10575_v40 = vld [vmem:[%s12398_s24 + $0x9e0] ss:$8 sps:$4 sm:$0xff]  }
 0x2ac   : > { %8237 = vmatprep.mubr.bf16.mxu0 %v5193_v20  ;;  %v10580_v20 = vld [vmem:[%s12398_s24 + $0x2f4] ss:$8 sps:$4 sm:$0xff]  }
 0x2ad   : > { %7921 = vmatpush1.bf16.msra.mxu1 %v10494_v42  ;;  %v10583_v42 = vld [vmem:[%s12398_s24 + $0x9f4] ss:$8 sps:$4 sm:$0xff]  }
 0x2ae   : > { %8208 = vmatpush1.bf16.msra.mxu0 %v10497_v43  ;;  %7922 = vmatprep.subr.bf16.mxu1 %v10502_v44  ;;  %v12660_v43 = vrot.slane %v5146_v38, %v12450_v52  ;;  %v10578_v44 = vld [vmem:[%s12398_s24 + $0x2f0] ss:$8 sps:$4 sm:$0xff]  }
 0x2af   : > { %8209 = vmatprep.subr.bf16.mxu0 %v10505_v45  ;;  %v10586_v45 = vld [vmem:[%s12398_s24 + $0x304] ss:$8 sps:$4 sm:$0xff]   ;;  %v10653_v38 = vld [vmem:[%s12398_s24 + $0xab0] ss:$8 sps:$4 sm:$0xff]  }
 0x2b1   : > { %7923 = vmatpush1.bf16.msra.mxu1 %v10500_v47  ;;  %v10589_v47 = vld [vmem:[%s12398_s24 + $0xa04] ss:$8 sps:$4 sm:$0xff]  }
 0x2b2   : > { %8210 = vmatpush1.bf16.msra.mxu0 %v10503_v48  ;;  %7924 = vmatprep.subr.bf16.mxu1 %v10508_v50  ;;  %v5162_v48 = vcombine.high %v12660_v43, %v12660_v43  ;;  %v10584_v50 = vld [vmem:[%s12398_s24 + $0x300] ss:$8 sps:$4 sm:$0xff]  }
 0x2b3   : > { %8211 = vmatprep.subr.bf16.mxu0 %v10511_v51  ;;  %v12671_v51 = vrot.slane %v12576_v30, %v12450_v52 }
 0x2b4   : > { %v12681_v30 = vrot.slane %v5162_v48, %v12450_v52  ;;  %v10670_v48 = vld [vmem:[%s12398_s24 + $0x3e4] ss:$8 sps:$4 sm:$0xff]  }
 0x2b5   : > { %7925 = vmatpush1.bf16.msra.mxu1 %v10506_v54  ;;  %v5191_v54 = vcombine.high %v12589_v37, %v12589_v37  ;;  %v10590_v37 = vld [vmem:[%s12398_s24 + $0x310] ss:$8 sps:$4 sm:$0xff]  }
 0x2b6   : > { %8212 = vmatpush1.bf16.msra.mxu0 %v10509_v55  ;;  %7926 = vmatprep.subr.bf16.mxu1 %v10514_v56  ;;  %v10587_v55 = vld [vmem:[%s12398_s24 + $0xa00] ss:$8 sps:$4 sm:$0xff]   ;;  %v10592_v56 = vld [vmem:[%s12398_s24 + $0x314] ss:$8 sps:$4 sm:$0xff]  }
 0x2b7   : > { %8213 = vmatprep.subr.bf16.mxu0 %v10517_v57  ;;  %v10595_v57 = vld [vmem:[%s12398_s24 + $0xa14] ss:$8 sps:$4 sm:$0xff]  }
 0x2b9   : > { %7927 = vmatpush1.bf16.msra.mxu1 %v10512_v58  ;;  %v5096_v58 = vcombine.high %v12595_v41, %v12595_v41  ;;  %v10601_v41 = vld [vmem:[%s12398_s24 + $0xa24] ss:$8 sps:$4 sm:$0xff]  }
 0x2ba   : > { %8214 = vmatpush1.bf16.msra.mxu0 %v10515_v59  ;;  %7928 = vmatprep.subr.bf16.mxu1 %v10520_v60  ;;  %v10593_v59 = vld [vmem:[%s12398_s24 + $0xa10] ss:$8 sps:$4 sm:$0xff]   ;;  %v10598_v60 = vld [vmem:[%s12398_s24 + $0x324] ss:$8 sps:$4 sm:$0xff]  }
 0x2bb   : > { %8215 = vmatprep.subr.bf16.mxu0 %v10523_v61  ;;  %v10596_v61 = vld [vmem:[%s12398_s24 + $0x320] ss:$8 sps:$4 sm:$0xff]  }
 0x2bd   : > { %7929 = vmatpush1.bf16.msra.mxu1 %v10518_v62  ;;  %v10599_v62 = vld [vmem:[%s12398_s24 + $0xa20] ss:$8 sps:$4 sm:$0xff]  }
 0x2be   : > { %8216 = vmatpush1.bf16.msra.mxu0 %v10521_v63  ;;  %7930 = vmatprep.subr.bf16.mxu1 %v10526_v0  ;;  %v10604_v63 = vld [vmem:[%s12398_s24 + $0x334] ss:$8 sps:$4 sm:$0xff]  }
 0x2bf   : > { %8217 = vmatprep.subr.bf16.mxu0 %v10529_v1  ;;  %v10607_v0 = vld [vmem:[%s12398_s24 + $0xa34] ss:$8 sps:$4 sm:$0xff]   ;;  %v10602_v1 = vld [vmem:[%s12398_s24 + $0x330] ss:$8 sps:$4 sm:$0xff]  }
 0x2c1   : > { %7931 = vmatpush1.bf16.msra.mxu1 %v10524_v2  ;;  %v10605_v2 = vld [vmem:[%s12398_s24 + $0xa30] ss:$8 sps:$4 sm:$0xff]  }
 0x2c2   : > { %8218 = vmatpush1.bf16.msra.mxu0 %v10527_v3  ;;  %7932 = vmatprep.subr.bf16.mxu1 %v10532_v4  ;;  %v10610_v3 = vld [vmem:[%s12398_s24 + $0x344] ss:$8 sps:$4 sm:$0xff]  }
 0x2c3   : > { %8219 = vmatprep.subr.bf16.mxu0 %v10535_v6  ;;  %v10613_v4 = vld [vmem:[%s12398_s24 + $0xa44] ss:$8 sps:$4 sm:$0xff]   ;;  %v10608_v6 = vld [vmem:[%s12398_s24 + $0x340] ss:$8 sps:$4 sm:$0xff]  }
 0x2c5   : > { %7933 = vmatpush1.bf16.msra.mxu1 %v10530_v7  ;;  %v10611_v7 = vld [vmem:[%s12398_s24 + $0xa40] ss:$8 sps:$4 sm:$0xff]  }
 0x2c6   : > { %8220 = vmatpush1.bf16.msra.mxu0 %v10533_v8  ;;  %7934 = vmatprep.subr.bf16.mxu1 %v10538_v9  ;;  %v10616_v8 = vld [vmem:[%s12398_s24 + $0x354] ss:$8 sps:$4 sm:$0xff]  }
 0x2c7   : > { %8221 = vmatprep.subr.bf16.mxu0 %v10541_v10  ;;  %v10619_v9 = vld [vmem:[%s12398_s24 + $0xa54] ss:$8 sps:$4 sm:$0xff]   ;;  %v10614_v10 = vld [vmem:[%s12398_s24 + $0x350] ss:$8 sps:$4 sm:$0xff]  }
 0x2c9   : > { %7935 = vmatpush1.bf16.msra.mxu1 %v10536_v11  ;;  %v10617_v11 = vld [vmem:[%s12398_s24 + $0xa50] ss:$8 sps:$4 sm:$0xff]  }
 0x2ca   : > { %8222 = vmatpush1.bf16.msra.mxu0 %v10539_v12  ;;  %7936 = vmatprep.subr.bf16.mxu1 %v10544_v13  ;;  %v10622_v12 = vld [vmem:[%s12398_s24 + $0x364] ss:$8 sps:$4 sm:$0xff]  }
 0x2cb   : > { %8223 = vmatprep.subr.bf16.mxu0 %v10547_v14  ;;  %v10625_v13 = vld [vmem:[%s12398_s24 + $0xa64] ss:$8 sps:$4 sm:$0xff]   ;;  %v10620_v14 = vld [vmem:[%s12398_s24 + $0x360] ss:$8 sps:$4 sm:$0xff]  }
 0x2cd   : > { %7937 = vmatpush1.bf16.msra.mxu1 %v10542_v16  ;;  %v10623_v16 = vld [vmem:[%s12398_s24 + $0xa60] ss:$8 sps:$4 sm:$0xff]  }
 0x2ce   : > { %8224 = vmatpush1.bf16.msra.mxu0 %v10545_v17  ;;  %7938 = vmatprep.subr.bf16.mxu1 %v10550_v18  ;;  %v10628_v17 = vld [vmem:[%s12398_s24 + $0x374] ss:$8 sps:$4 sm:$0xff]  }
 0x2cf   : > { %8225 = vmatprep.subr.bf16.mxu0 %v10553_v19  ;;  %v10631_v18 = vld [vmem:[%s12398_s24 + $0xa74] ss:$8 sps:$4 sm:$0xff]   ;;  %v10626_v19 = vld [vmem:[%s12398_s24 + $0x370] ss:$8 sps:$4 sm:$0xff]  }
 0x2d1   : > { %7939 = vmatpush1.bf16.msra.mxu1 %v10548_v21  ;;  %v10629_v21 = vld [vmem:[%s12398_s24 + $0xa70] ss:$8 sps:$4 sm:$0xff]  }
 0x2d2   : > { %8226 = vmatpush1.bf16.msra.mxu0 %v10551_v22  ;;  %7940 = vmatprep.subr.bf16.mxu1 %v10556_v23  ;;  %v10634_v22 = vld [vmem:[%s12398_s24 + $0x384] ss:$8 sps:$4 sm:$0xff]  }
 0x2d3   : > { %8227 = vmatprep.subr.bf16.mxu0 %v10559_v24  ;;  %v10637_v23 = vld [vmem:[%s12398_s24 + $0xa84] ss:$8 sps:$4 sm:$0xff]   ;;  %v10632_v24 = vld [vmem:[%s12398_s24 + $0x380] ss:$8 sps:$4 sm:$0xff]  }
 0x2d5   : > { %7941 = vmatpush1.bf16.msra.mxu1 %v10554_v25  ;;  %v10635_v25 = vld [vmem:[%s12398_s24 + $0xa80] ss:$8 sps:$4 sm:$0xff]  }
 0x2d6   : > { %8228 = vmatpush1.bf16.msra.mxu0 %v10557_v26  ;;  %7942 = vmatprep.subr.bf16.mxu1 %v10562_v27  ;;  %v10640_v26 = vld [vmem:[%s12398_s24 + $0x394] ss:$8 sps:$4 sm:$0xff]  }
 0x2d7   : > { %8229 = vmatprep.subr.bf16.mxu0 %v10565_v28  ;;  %v10643_v27 = vld [vmem:[%s12398_s24 + $0xa94] ss:$8 sps:$4 sm:$0xff]   ;;  %v10638_v28 = vld [vmem:[%s12398_s24 + $0x390] ss:$8 sps:$4 sm:$0xff]  }
 0x2d9   : > { %7943 = vmatpush1.bf16.msra.mxu1 %v10560_v29  ;;  %v10641_v29 = vld [vmem:[%s12398_s24 + $0xa90] ss:$8 sps:$4 sm:$0xff]  }
 0x2da   : > { %8230 = vmatpush1.bf16.msra.mxu0 %v10563_v31  ;;  %7944 = vmatprep.subr.bf16.mxu1 %v10568_v53  ;;  %v10646_v31 = vld [vmem:[%s12398_s24 + $0x3a4] ss:$8 sps:$4 sm:$0xff]  }
 0x2db   : > { %8231 = vmatprep.subr.bf16.mxu0 %v10571_v32  ;;  %v10649_v53 = vld [vmem:[%s12398_s24 + $0xaa4] ss:$8 sps:$4 sm:$0xff]   ;;  %v10644_v32 = vld [vmem:[%s12398_s24 + $0x3a0] ss:$8 sps:$4 sm:$0xff]  }
 0x2dd   : > { %7945 = vmatpush1.bf16.msra.mxu1 %v10566_v33  ;;  %v10647_v33 = vld [vmem:[%s12398_s24 + $0xaa0] ss:$8 sps:$4 sm:$0xff]  }
 0x2de   : > { %8232 = vmatpush1.bf16.msra.mxu0 %v10569_v34  ;;  %7946 = vmatprep.subr.bf16.mxu1 %v10574_v35  ;;  %v10652_v34 = vld [vmem:[%s12398_s24 + $0x3b4] ss:$8 sps:$4 sm:$0xff]  }
 0x2df   : > { %8233 = vmatprep.subr.bf16.mxu0 %v10577_v36  ;;  %v10655_v35 = vld [vmem:[%s12398_s24 + $0xab4] ss:$8 sps:$4 sm:$0xff]   ;;  %v10650_v36 = vld [vmem:[%s12398_s24 + $0x3b0] ss:$8 sps:$4 sm:$0xff]  }
 0x2e1   : > { %7947 = vmatpush1.bf16.msra.mxu1 %v10572_v39  ;;  %v10658_v39 = vld [vmem:[%s12398_s24 + $0x3c4] ss:$8 sps:$4 sm:$0xff]  }
 0x2e2   : > { %8234 = vmatpush1.bf16.msra.mxu0 %v10575_v40  ;;  %7948 = vmatprep.subr.bf16.mxu1 %v10580_v20  ;;  %v10661_v40 = vld [vmem:[%s12398_s24 + $0xac4] ss:$8 sps:$4 sm:$0xff]   ;;  %v10656_v20 = vld [vmem:[%s12398_s24 + $0x3c0] ss:$8 sps:$4 sm:$0xff]  }
 0x2e3   : > { %8235 = vmatprep.subr.bf16.mxu0 %v10583_v42  ;;  %v10659_v42 = vld [vmem:[%s12398_s24 + $0xac0] ss:$8 sps:$4 sm:$0xff]  }
 0x2e5   : > { %7949 = vmatpush1.bf16.msra.mxu1 %v10578_v44  ;;  %v10664_v44 = vld [vmem:[%s12398_s24 + $0x3d4] ss:$8 sps:$4 sm:$0xff]  }
 0x2e6   : > { %8236 = vmatpush1.bf16.msra.mxu0 %v10581_v49  ;;  %7959 = vmatprep.subr.bf16.mxu1 %v10586_v45  ;;  %v10667_v49 = vld [vmem:[%s12398_s24 + $0xad4] ss:$8 sps:$4 sm:$0xff]   ;;  %v10662_v45 = vld [vmem:[%s12398_s24 + $0x3d0] ss:$8 sps:$4 sm:$0xff]  }
 0x2e7   : > { %8246 = vmatprep.subr.bf16.mxu0 %v10589_v47  ;;  %v10665_v47 = vld [vmem:[%s12398_s24 + $0xad0] ss:$8 sps:$4 sm:$0xff]  }
 0x2e8   : > { %7951 = vmatmul.mubr.bf16.vlgmr.msra.gmra.mrb[0].mxu1 %v12671_v51 }
 0x2e9   : > { %8238 = vmatmul.mubr.bf16.vlgmr.msra.gmra.mrb[0].mxu0 %v5191_v54  ;;  %7960 = vmatpush1.bf16.msra.mxu1 %v10584_v50  ;;  %v10673_v50 = vld [vmem:[%s12398_s24 + $0xae4] ss:$8 sps:$4 sm:$0xff]   ;;  %v10668_v54 = vld [vmem:[%s12398_s24 + $0x3e0] ss:$8 sps:$4 sm:$0xff]  }
 0x2ea   : > { %8247 = vmatpush1.bf16.msra.mxu0 %v10587_v55  ;;  %7961 = vmatprep.subr.bf16.mxu1 %v10592_v56  ;;  %v10671_v55 = vld [vmem:[%s12398_s24 + $0xae0] ss:$8 sps:$4 sm:$0xff]   ;;  %v10676_v56 = vld [vmem:[%s12398_s24 + $0x3f4] ss:$8 sps:$4 sm:$0xff]  }
 0x2eb   : > { %8248 = vmatprep.subr.bf16.mxu0 %v10595_v57  ;;  %7991 = vmatprep.mubr.bf16.mxu1 %v5096_v58  ;;  %v10679_v57 = vld [vmem:[%s12398_s24 + $0xaf4] ss:$8 sps:$4 sm:$0xff]   ;;  %v12744_v58 = vld.sshfl [vmem:[%s13316_s0 + $0x8] sm:$0xff pattern:$0x75316420] }
 0x2ec   : > { %8278 = vmatprep.mubr.bf16.mxu0 %v12681_v30 }
 0x2ed   : > { %7962 = vmatpush1.bf16.msra.mxu1 %v10590_v37  ;;  %v10674_v37 = vld [vmem:[%s12398_s24 + $0x3f0] ss:$8 sps:$4 sm:$0xff]  }
 0x2ee   : > { %8249 = vmatpush1.bf16.msra.mxu0 %v10593_v59  ;;  %7963 = vmatprep.subr.bf16.mxu1 %v10598_v60  ;;  %v10677_v59 = vld [vmem:[%s12398_s24 + $0xaf0] ss:$8 sps:$4 sm:$0xff]   ;;  %v10682_v60 = vld [vmem:[%s12398_s24 + $0x404] ss:$8 sps:$4 sm:$0xff]  }
 0x2ef   : > { %8250 = vmatprep.subr.bf16.mxu0 %v10601_v41  ;;  %v10686_v41 = vld [vmem:[%s12398_s24 + $0xb04] ss:$8 sps:$4 sm:$0xff]  }
 0x2f1   : > { %7964 = vmatpush1.bf16.msra.mxu1 %v10596_v61  ;;  %v5112_v61 = vcombine.high %v12744_v58, %v12744_v58 }
 0x2f2   : > { %8251 = vmatpush1.bf16.msra.mxu0 %v10599_v62  ;;  %7965 = vmatprep.subr.bf16.mxu1 %v10604_v63  ;;  %v10680_v62 = vld [vmem:[%s12398_s24 + $0x400] ss:$8 sps:$4 sm:$0xff]   ;;  %v5094_v63 = vcombine.high %v12671_v51, %v12671_v51  ;;  %v5194_v51 = vcombine.high %v12681_v30, %v12681_v30 }
 0x2f3   : > { %8252 = vmatprep.subr.bf16.mxu0 %v10607_v0  ;;  %v12757_v0 = vrot.slane %v12660_v43, %v12450_v52  ;;  %v10687_v43 = vld [vmem:[%s12398_s24 + $0x410] ss:$8 sps:$4 sm:$0xff]   ;;  %v10693_v30 = vld [vmem:[%s12398_s24 + $0x420] ss:$8 sps:$4 sm:$0xff]  }
 0x2f5   : > { %7966 = vmatpush1.bf16.msra.mxu1 %v10602_v1  ;;  %v10684_v1 = vld [vmem:[%s12398_s24 + $0xb00] ss:$8 sps:$4 sm:$0xff]  }
 0x2f6   : > { %8253 = vmatpush1.bf16.msra.mxu0 %v10605_v2  ;;  %7967 = vmatprep.subr.bf16.mxu1 %v10610_v3  ;;  %v10689_v2 = vld [vmem:[%s12398_s24 + $0x414] ss:$8 sps:$4 sm:$0xff]  }
 0x2f7   : > { %8254 = vmatprep.subr.bf16.mxu0 %v10613_v4  ;;  %v10692_v3 = vld [vmem:[%s12398_s24 + $0xb14] ss:$8 sps:$4 sm:$0xff]   ;;  %v12763_v4 = vrot.slane %v5112_v61, %v12450_v52  ;;  %v10767_v61 = vld [vmem:[%s12398_s24 + $0x4e4] ss:$8 sps:$4 sm:$0xff]  }
 0x2f9   : > { %7968 = vmatpush1.bf16.msra.mxu1 %v10608_v6  ;;  %v10690_v6 = vld [vmem:[%s12398_s24 + $0xb10] ss:$8 sps:$4 sm:$0xff]  }
 0x2fa   : > { %8255 = vmatpush1.bf16.msra.mxu0 %v10611_v7  ;;  %7969 = vmatprep.subr.bf16.mxu1 %v10616_v8  ;;  %v10695_v7 = vld [vmem:[%s12398_s24 + $0x424] ss:$8 sps:$4 sm:$0xff]  }
 0x2fb   : > { %8256 = vmatprep.subr.bf16.mxu0 %v10619_v9  ;;  %v10698_v8 = vld [vmem:[%s12398_s24 + $0xb24] ss:$8 sps:$4 sm:$0xff]   ;;  %v10696_v9 = vld [vmem:[%s12398_s24 + $0xb20] ss:$8 sps:$4 sm:$0xff]  }
 0x2fd   : > { %7970 = vmatpush1.bf16.msra.mxu1 %v10614_v10  ;;  %v10701_v10 = vld [vmem:[%s12398_s24 + $0x434] ss:$8 sps:$4 sm:$0xff]  }
 0x2fe   : > { %8257 = vmatpush1.bf16.msra.mxu0 %v10617_v11  ;;  %7971 = vmatprep.subr.bf16.mxu1 %v10622_v12  ;;  %v10704_v11 = vld [vmem:[%s12398_s24 + $0xb34] ss:$8 sps:$4 sm:$0xff]   ;;  %v10699_v12 = vld [vmem:[%s12398_s24 + $0x430] ss:$8 sps:$4 sm:$0xff]  }
 0x2ff   : > { %8258 = vmatprep.subr.bf16.mxu0 %v10625_v13  ;;  %v10702_v13 = vld [vmem:[%s12398_s24 + $0xb30] ss:$8 sps:$4 sm:$0xff]  }
 0x301   : > { %7972 = vmatpush1.bf16.msra.mxu1 %v10620_v14  ;;  %v10707_v14 = vld [vmem:[%s12398_s24 + $0x444] ss:$8 sps:$4 sm:$0xff]  }
 0x302   : > { %8259 = vmatpush1.bf16.msra.mxu0 %v10623_v16  ;;  %7973 = vmatprep.subr.bf16.mxu1 %v10628_v17  ;;  %v10710_v16 = vld [vmem:[%s12398_s24 + $0xb44] ss:$8 sps:$4 sm:$0xff]   ;;  %v10705_v17 = vld [vmem:[%s12398_s24 + $0x440] ss:$8 sps:$4 sm:$0xff]  }
 0x303   : > { %8260 = vmatprep.subr.bf16.mxu0 %v10631_v18  ;;  %v10708_v18 = vld [vmem:[%s12398_s24 + $0xb40] ss:$8 sps:$4 sm:$0xff]  }
 0x305   : > { %7974 = vmatpush1.bf16.msra.mxu1 %v10626_v19  ;;  %v10713_v19 = vld [vmem:[%s12398_s24 + $0x454] ss:$8 sps:$4 sm:$0xff]  }
 0x306   : > { %8261 = vmatpush1.bf16.msra.mxu0 %v10629_v21  ;;  %7975 = vmatprep.subr.bf16.mxu1 %v10634_v22  ;;  %v10716_v21 = vld [vmem:[%s12398_s24 + $0xb54] ss:$8 sps:$4 sm:$0xff]   ;;  %v10711_v22 = vld [vmem:[%s12398_s24 + $0x450] ss:$8 sps:$4 sm:$0xff]  }
 0x307   : > { %8262 = vmatprep.subr.bf16.mxu0 %v10637_v23  ;;  %v10714_v23 = vld [vmem:[%s12398_s24 + $0xb50] ss:$8 sps:$4 sm:$0xff]  }
 0x309   : > { %7976 = vmatpush1.bf16.msra.mxu1 %v10632_v24  ;;  %v10719_v24 = vld [vmem:[%s12398_s24 + $0x464] ss:$8 sps:$4 sm:$0xff]  }
 0x30a   : > { %8263 = vmatpush1.bf16.msra.mxu0 %v10635_v25  ;;  %7977 = vmatprep.subr.bf16.mxu1 %v10640_v26  ;;  %v10722_v25 = vld [vmem:[%s12398_s24 + $0xb64] ss:$8 sps:$4 sm:$0xff]   ;;  %v10717_v26 = vld [vmem:[%s12398_s24 + $0x460] ss:$8 sps:$4 sm:$0xff]  }
 0x30b   : > { %8264 = vmatprep.subr.bf16.mxu0 %v10643_v27  ;;  %v10720_v27 = vld [vmem:[%s12398_s24 + $0xb60] ss:$8 sps:$4 sm:$0xff]  }
 0x30d   : > { %7978 = vmatpush1.bf16.msra.mxu1 %v10638_v28  ;;  %v10725_v28 = vld [vmem:[%s12398_s24 + $0x474] ss:$8 sps:$4 sm:$0xff]  }
 0x30e   : > { %8265 = vmatpush1.bf16.msra.mxu0 %v10641_v29  ;;  %7979 = vmatprep.subr.bf16.mxu1 %v10646_v31  ;;  %v10728_v29 = vld [vmem:[%s12398_s24 + $0xb74] ss:$8 sps:$4 sm:$0xff]   ;;  %v10723_v31 = vld [vmem:[%s12398_s24 + $0x470] ss:$8 sps:$4 sm:$0xff]  }
 0x30f   : > { %8266 = vmatprep.subr.bf16.mxu0 %v10649_v53  ;;  %v10726_v53 = vld [vmem:[%s12398_s24 + $0xb70] ss:$8 sps:$4 sm:$0xff]  }
 0x311   : > { %7980 = vmatpush1.bf16.msra.mxu1 %v10644_v32  ;;  %v10731_v32 = vld [vmem:[%s12398_s24 + $0x484] ss:$8 sps:$4 sm:$0xff]  }
 0x312   : > { %8267 = vmatpush1.bf16.msra.mxu0 %v10647_v33  ;;  %7981 = vmatprep.subr.bf16.mxu1 %v10652_v34  ;;  %v10734_v33 = vld [vmem:[%s12398_s24 + $0xb84] ss:$8 sps:$4 sm:$0xff]   ;;  %v10729_v34 = vld [vmem:[%s12398_s24 + $0x480] ss:$8 sps:$4 sm:$0xff]  }
 0x313   : > { %8268 = vmatprep.subr.bf16.mxu0 %v10655_v35  ;;  %v10732_v35 = vld [vmem:[%s12398_s24 + $0xb80] ss:$8 sps:$4 sm:$0xff]  }
 0x315   : > { %7982 = vmatpush1.bf16.msra.mxu1 %v10650_v36  ;;  %v10737_v36 = vld [vmem:[%s12398_s24 + $0x494] ss:$8 sps:$4 sm:$0xff]  }
 0x316   : > { %8269 = vmatpush1.bf16.msra.mxu0 %v10653_v38  ;;  %7983 = vmatprep.subr.bf16.mxu1 %v10658_v39  ;;  %v10740_v38 = vld [vmem:[%s12398_s24 + $0xb94] ss:$8 sps:$4 sm:$0xff]   ;;  %v10735_v39 = vld [vmem:[%s12398_s24 + $0x490] ss:$8 sps:$4 sm:$0xff]  }
 0x317   : > { %8270 = vmatprep.subr.bf16.mxu0 %v10661_v40  ;;  %v10738_v40 = vld [vmem:[%s12398_s24 + $0xb90] ss:$8 sps:$4 sm:$0xff]  }
 0x319   : > { %7984 = vmatpush1.bf16.msra.mxu1 %v10656_v20  ;;  %v10743_v20 = vld [vmem:[%s12398_s24 + $0x4a4] ss:$8 sps:$4 sm:$0xff]  }
 0x31a   : > { %8271 = vmatpush1.bf16.msra.mxu0 %v10659_v42  ;;  %7985 = vmatprep.subr.bf16.mxu1 %v10664_v44  ;;  %v10746_v42 = vld [vmem:[%s12398_s24 + $0xba4] ss:$8 sps:$4 sm:$0xff]   ;;  %v10741_v44 = vld [vmem:[%s12398_s24 + $0x4a0] ss:$8 sps:$4 sm:$0xff]  }
 0x31b   : > { %8272 = vmatprep.subr.bf16.mxu0 %v10667_v49  ;;  %v10744_v49 = vld [vmem:[%s12398_s24 + $0xba0] ss:$8 sps:$4 sm:$0xff]  }
 0x31d   : > { %7986 = vmatpush1.bf16.msra.mxu1 %v10662_v45  ;;  %v10749_v45 = vld [vmem:[%s12398_s24 + $0x4b4] ss:$8 sps:$4 sm:$0xff]  }
 0x31e   : > { %8273 = vmatpush1.bf16.msra.mxu0 %v10665_v47  ;;  %7987 = vmatprep.subr.bf16.mxu1 %v10670_v48  ;;  %v10752_v47 = vld [vmem:[%s12398_s24 + $0xbb4] ss:$8 sps:$4 sm:$0xff]   ;;  %v10747_v48 = vld [vmem:[%s12398_s24 + $0x4b0] ss:$8 sps:$4 sm:$0xff]  }
 0x31f   : > { %8274 = vmatprep.subr.bf16.mxu0 %v10673_v50  ;;  %v10750_v50 = vld [vmem:[%s12398_s24 + $0xbb0] ss:$8 sps:$4 sm:$0xff]  }
 0x321   : > { %7988 = vmatpush1.bf16.msra.mxu1 %v10668_v54  ;;  %v10755_v54 = vld [vmem:[%s12398_s24 + $0x4c4] ss:$8 sps:$4 sm:$0xff]  }
 0x322   : > { %8275 = vmatpush1.bf16.msra.mxu0 %v10671_v55  ;;  %7989 = vmatprep.subr.bf16.mxu1 %v10676_v56  ;;  %v10758_v55 = vld [vmem:[%s12398_s24 + $0xbc4] ss:$8 sps:$4 sm:$0xff]   ;;  %v10753_v56 = vld [vmem:[%s12398_s24 + $0x4c0] ss:$8 sps:$4 sm:$0xff]  }
 0x323   : > { %8276 = vmatprep.subr.bf16.mxu0 %v10679_v57  ;;  %v10756_v57 = vld [vmem:[%s12398_s24 + $0xbc0] ss:$8 sps:$4 sm:$0xff]  }
 0x325   : > { %7990 = vmatpush1.bf16.msra.mxu1 %v10674_v37  ;;  %v10761_v37 = vld [vmem:[%s12398_s24 + $0x4d4] ss:$8 sps:$4 sm:$0xff]  }
 0x326   : > { %8277 = vmatpush1.bf16.msra.mxu0 %v10677_v59  ;;  %8000 = vmatprep.subr.bf16.mxu1 %v10682_v60  ;;  %v10764_v59 = vld [vmem:[%s12398_s24 + $0xbd4] ss:$8 sps:$4 sm:$0xff]   ;;  %v10759_v60 = vld [vmem:[%s12398_s24 + $0x4d0] ss:$8 sps:$4 sm:$0xff]  }
 0x327   : > { %8287 = vmatprep.subr.bf16.mxu0 %v10686_v41  ;;  %v10762_v41 = vld [vmem:[%s12398_s24 + $0xbd0] ss:$8 sps:$4 sm:$0xff]  }
 0x328   : > { %7992 = vmatmul.mubr.bf16.vlgmr.msra.gmra.mrb[0].mxu1 %v5094_v63  ;;  %v12824_v63 = vld [vmem:[%s13316_s0 + $0x18] sm:$0xff] }
 0x329   : > { %8279 = vmatmul.mubr.bf16.vlgmr.msra.gmra.mrb[0].mxu0 %v12757_v0  ;;  %8001 = vmatpush1.bf16.msra.mxu1 %v10680_v62  ;;  %v10770_v62 = vld [vmem:[%s12398_s24 + $0xbe4] ss:$8 sps:$4 sm:$0xff]  }
 0x32a   : > { %8288 = vmatpush1.bf16.msra.mxu0 %v10684_v1  ;;  %8002 = vmatprep.subr.bf16.mxu1 %v10689_v2  ;;  %v10765_v1 = vld [vmem:[%s12398_s24 + $0x4e0] ss:$8 sps:$4 sm:$0xff]  }
 0x32b   : > { %8289 = vmatprep.subr.bf16.mxu0 %v10692_v3  ;;  %8032 = vmatprep.mubr.bf16.mxu1 %v12763_v4  ;;  %v10768_v2 = vld [vmem:[%s12398_s24 + $0xbe0] ss:$8 sps:$4 sm:$0xff]   ;;  %v10773_v3 = vld [vmem:[%s12398_s24 + $0x4f4] ss:$8 sps:$4 sm:$0xff]  }
 0x32c   : > { %8319 = vmatprep.mubr.bf16.mxu0 %v5194_v51  ;;  %v10776_v51 = vld [vmem:[%s12398_s24 + $0xbf4] ss:$8 sps:$4 sm:$0xff]  }
 0x32d   : > { %8003 = vmatpush1.bf16.msra.mxu1 %v10687_v43  ;;  %v12832_v43 = vrot.slane %v12824_v63, %v12450_v52 }
 0x32e   : > { %8290 = vmatpush1.bf16.msra.mxu0 %v10690_v6  ;;  %8004 = vmatprep.subr.bf16.mxu1 %v10695_v7  ;;  %v10771_v6 = vld [vmem:[%s12398_s24 + $0x4f0] ss:$8 sps:$4 sm:$0xff]  }
 0x32f   : > { %8291 = vmatprep.subr.bf16.mxu0 %v10698_v8  ;;  %v10774_v7 = vld [vmem:[%s12398_s24 + $0xbf0] ss:$8 sps:$4 sm:$0xff]   ;;  %v10779_v8 = vld [vmem:[%s12398_s24 + $0x504] ss:$8 sps:$4 sm:$0xff]  }
 0x331   : > { %8005 = vmatpush1.bf16.msra.mxu1 %v10693_v30  ;;  %v10782_v30 = vld [vmem:[%s12398_s24 + $0xc04] ss:$8 sps:$4 sm:$0xff]  }
 0x332   : > { %8292 = vmatpush1.bf16.msra.mxu0 %v10696_v9  ;;  %8006 = vmatprep.subr.bf16.mxu1 %v10701_v10  ;;  %v10777_v9 = vld [vmem:[%s12398_s24 + $0x500] ss:$8 sps:$4 sm:$0xff]  }
 0x333   : > { %8293 = vmatprep.subr.bf16.mxu0 %v10704_v11  ;;  %v10780_v10 = vld [vmem:[%s12398_s24 + $0xc00] ss:$8 sps:$4 sm:$0xff]   ;;  %v5210_v11 = vcombine.high %v12832_v43, %v12832_v43 }
 0x335   : > { %8007 = vmatpush1.bf16.msra.mxu1 %v10699_v12  ;;  %v12844_v12 = vrot.slane %v12744_v58, %v12450_v52  ;;  %v12855_v58 = vrot.slane %v5210_v11, %v12450_v52  ;;  %v10866_v11 = vld [vmem:[%s12398_s24 + $0xce4] ss:$8 sps:$4 sm:$0xff]  }
 0x336   : > { %8294 = vmatpush1.bf16.msra.mxu0 %v10702_v13  ;;  %8008 = vmatprep.subr.bf16.mxu1 %v10707_v14  ;;  %v5192_v13 = vcombine.high %v12757_v0, %v12757_v0  ;;  %v10785_v14 = vld [vmem:[%s12398_s24 + $0x514] ss:$8 sps:$4 sm:$0xff]   ;;  %v10791_v0 = vld [vmem:[%s12398_s24 + $0x524] ss:$8 sps:$4 sm:$0xff]  }
 0x337   : > { %8295 = vmatprep.subr.bf16.mxu0 %v10710_v16  ;;  %v10788_v16 = vld [vmem:[%s12398_s24 + $0xc14] ss:$8 sps:$4 sm:$0xff]  }
 0x339   : > { %8009 = vmatpush1.bf16.msra.mxu1 %v10705_v17  ;;  %v10783_v17 = vld [vmem:[%s12398_s24 + $0x510] ss:$8 sps:$4 sm:$0xff]  }
 0x33a   : > { %8296 = vmatpush1.bf16.msra.mxu0 %v10708_v18  ;;  %8010 = vmatprep.subr.bf16.mxu1 %v10713_v19  ;;  %v10786_v18 = vld [vmem:[%s12398_s24 + $0xc10] ss:$8 sps:$4 sm:$0xff]   ;;  %v5144_v19 = vcombine.high %v12763_v4, %v12763_v4  ;;  %v10792_v4 = vld [vmem:[%s12398_s24 + $0xc20] ss:$8 sps:$4 sm:$0xff]  }
 0x33b   : > { %8297 = vmatprep.subr.bf16.mxu0 %v10716_v21  ;;  %v10794_v21 = vld [vmem:[%s12398_s24 + $0xc24] ss:$8 sps:$4 sm:$0xff]  }
 0x33d   : > { %8011 = vmatpush1.bf16.msra.mxu1 %v10711_v22  ;;  %v10789_v22 = vld [vmem:[%s12398_s24 + $0x520] ss:$8 sps:$4 sm:$0xff]  }
 0x33e   : > { %8298 = vmatpush1.bf16.msra.mxu0 %v10714_v23  ;;  %8012 = vmatprep.subr.bf16.mxu1 %v10719_v24  ;;  %v10797_v23 = vld [vmem:[%s12398_s24 + $0x534] ss:$8 sps:$4 sm:$0xff]  }
 0x33f   : > { %8299 = vmatprep.subr.bf16.mxu0 %v10722_v25  ;;  %v10800_v24 = vld [vmem:[%s12398_s24 + $0xc34] ss:$8 sps:$4 sm:$0xff]   ;;  %v10795_v25 = vld [vmem:[%s12398_s24 + $0x530] ss:$8 sps:$4 sm:$0xff]  }
 0x341   : > { %8013 = vmatpush1.bf16.msra.mxu1 %v10717_v26  ;;  %v10798_v26 = vld [vmem:[%s12398_s24 + $0xc30] ss:$8 sps:$4 sm:$0xff]  }
 0x342   : > { %8300 = vmatpush1.bf16.msra.mxu0 %v10720_v27  ;;  %8014 = vmatprep.subr.bf16.mxu1 %v10725_v28  ;;  %v10803_v27 = vld [vmem:[%s12398_s24 + $0x544] ss:$8 sps:$4 sm:$0xff]  }
 0x343   : > { %8301 = vmatprep.subr.bf16.mxu0 %v10728_v29  ;;  %v10806_v28 = vld [vmem:[%s12398_s24 + $0xc44] ss:$8 sps:$4 sm:$0xff]   ;;  %v10801_v29 = vld [vmem:[%s12398_s24 + $0x540] ss:$8 sps:$4 sm:$0xff]  }
 0x345   : > { %8015 = vmatpush1.bf16.msra.mxu1 %v10723_v31  ;;  %v10804_v31 = vld [vmem:[%s12398_s24 + $0xc40] ss:$8 sps:$4 sm:$0xff]  }
 0x346   : > { %8302 = vmatpush1.bf16.msra.mxu0 %v10726_v53  ;;  %8016 = vmatprep.subr.bf16.mxu1 %v10731_v32  ;;  %v10809_v53 = vld [vmem:[%s12398_s24 + $0x554] ss:$8 sps:$4 sm:$0xff]  }
 0x347   : > { %8303 = vmatprep.subr.bf16.mxu0 %v10734_v33  ;;  %v10812_v32 = vld [vmem:[%s12398_s24 + $0xc54] ss:$8 sps:$4 sm:$0xff]   ;;  %v10807_v33 = vld [vmem:[%s12398_s24 + $0x550] ss:$8 sps:$4 sm:$0xff]  }
 0x349   : > { %8017 = vmatpush1.bf16.msra.mxu1 %v10729_v34  ;;  %v10810_v34 = vld [vmem:[%s12398_s24 + $0xc50] ss:$8 sps:$4 sm:$0xff]  }
 0x34a   : > { %8304 = vmatpush1.bf16.msra.mxu0 %v10732_v35  ;;  %8018 = vmatprep.subr.bf16.mxu1 %v10737_v36  ;;  %v10815_v35 = vld [vmem:[%s12398_s24 + $0x564] ss:$8 sps:$4 sm:$0xff]  }
 0x34b   : > { %8305 = vmatprep.subr.bf16.mxu0 %v10740_v38  ;;  %v10818_v36 = vld [vmem:[%s12398_s24 + $0xc64] ss:$8 sps:$4 sm:$0xff]   ;;  %v10813_v38 = vld [vmem:[%s12398_s24 + $0x560] ss:$8 sps:$4 sm:$0xff]  }
 0x34d   : > { %8019 = vmatpush1.bf16.msra.mxu1 %v10735_v39  ;;  %v10816_v39 = vld [vmem:[%s12398_s24 + $0xc60] ss:$8 sps:$4 sm:$0xff]  }
 0x34e   : > { %8306 = vmatpush1.bf16.msra.mxu0 %v10738_v40  ;;  %8020 = vmatprep.subr.bf16.mxu1 %v10743_v20  ;;  %v10821_v40 = vld [vmem:[%s12398_s24 + $0x574] ss:$8 sps:$4 sm:$0xff]  }
 0x34f   : > { %8307 = vmatprep.subr.bf16.mxu0 %v10746_v42  ;;  %v10824_v20 = vld [vmem:[%s12398_s24 + $0xc74] ss:$8 sps:$4 sm:$0xff]   ;;  %v10819_v42 = vld [vmem:[%s12398_s24 + $0x570] ss:$8 sps:$4 sm:$0xff]  }
 0x351   : > { %8021 = vmatpush1.bf16.msra.mxu1 %v10741_v44  ;;  %v10822_v44 = vld [vmem:[%s12398_s24 + $0xc70] ss:$8 sps:$4 sm:$0xff]  }
 0x352   : > { %8308 = vmatpush1.bf16.msra.mxu0 %v10744_v49  ;;  %8022 = vmatprep.subr.bf16.mxu1 %v10749_v45  ;;  %v10827_v49 = vld [vmem:[%s12398_s24 + $0x584] ss:$8 sps:$4 sm:$0xff]  }
 0x353   : > { %8309 = vmatprep.subr.bf16.mxu0 %v10752_v47  ;;  %v10830_v45 = vld [vmem:[%s12398_s24 + $0xc84] ss:$8 sps:$4 sm:$0xff]   ;;  %v10825_v47 = vld [vmem:[%s12398_s24 + $0x580] ss:$8 sps:$4 sm:$0xff]  }
 0x355   : > { %8023 = vmatpush1.bf16.msra.mxu1 %v10747_v48  ;;  %v10828_v48 = vld [vmem:[%s12398_s24 + $0xc80] ss:$8 sps:$4 sm:$0xff]  }
 0x356   : > { %8310 = vmatpush1.bf16.msra.mxu0 %v10750_v50  ;;  %8024 = vmatprep.subr.bf16.mxu1 %v10755_v54  ;;  %v10833_v50 = vld [vmem:[%s12398_s24 + $0x594] ss:$8 sps:$4 sm:$0xff]  }
 0x357   : > { %8311 = vmatprep.subr.bf16.mxu0 %v10758_v55  ;;  %v10836_v54 = vld [vmem:[%s12398_s24 + $0xc94] ss:$8 sps:$4 sm:$0xff]   ;;  %v10831_v55 = vld [vmem:[%s12398_s24 + $0x590] ss:$8 sps:$4 sm:$0xff]  }
 0x359   : > { %8025 = vmatpush1.bf16.msra.mxu1 %v10753_v56  ;;  %v10834_v56 = vld [vmem:[%s12398_s24 + $0xc90] ss:$8 sps:$4 sm:$0xff]  }
 0x35a   : > { %8312 = vmatpush1.bf16.msra.mxu0 %v10756_v57  ;;  %8026 = vmatprep.subr.bf16.mxu1 %v10761_v37  ;;  %v10839_v57 = vld [vmem:[%s12398_s24 + $0x5a4] ss:$8 sps:$4 sm:$0xff]  }
 0x35b   : > { %8313 = vmatprep.subr.bf16.mxu0 %v10764_v59  ;;  %v10842_v37 = vld [vmem:[%s12398_s24 + $0xca4] ss:$8 sps:$4 sm:$0xff]   ;;  %v10837_v59 = vld [vmem:[%s12398_s24 + $0x5a0] ss:$8 sps:$4 sm:$0xff]  }
 0x35d   : > { %8027 = vmatpush1.bf16.msra.mxu1 %v10759_v60  ;;  %v10840_v60 = vld [vmem:[%s12398_s24 + $0xca0] ss:$8 sps:$4 sm:$0xff]  }
 0x35e   : > { %8314 = vmatpush1.bf16.msra.mxu0 %v10762_v41  ;;  %8028 = vmatprep.subr.bf16.mxu1 %v10767_v61  ;;  %v10845_v41 = vld [vmem:[%s12398_s24 + $0x5b4] ss:$8 sps:$4 sm:$0xff]  }
 0x35f   : > { %8315 = vmatprep.subr.bf16.mxu0 %v10770_v62  ;;  %v10848_v61 = vld [vmem:[%s12398_s24 + $0xcb4] ss:$8 sps:$4 sm:$0xff]   ;;  %v10843_v62 = vld [vmem:[%s12398_s24 + $0x5b0] ss:$8 sps:$4 sm:$0xff]  }
 0x361   : > { %8029 = vmatpush1.bf16.msra.mxu1 %v10765_v1  ;;  %v10846_v1 = vld [vmem:[%s12398_s24 + $0xcb0] ss:$8 sps:$4 sm:$0xff]  }
 0x362   : > { %8316 = vmatpush1.bf16.msra.mxu0 %v10768_v2  ;;  %8030 = vmatprep.subr.bf16.mxu1 %v10773_v3  ;;  %v10851_v2 = vld [vmem:[%s12398_s24 + $0x5c4] ss:$8 sps:$4 sm:$0xff]  }
 0x363   : > { %8317 = vmatprep.subr.bf16.mxu0 %v10776_v51  ;;  %v10854_v3 = vld [vmem:[%s12398_s24 + $0xcc4] ss:$8 sps:$4 sm:$0xff]   ;;  %v10849_v51 = vld [vmem:[%s12398_s24 + $0x5c0] ss:$8 sps:$4 sm:$0xff]  }
 0x365   : > { %8031 = vmatpush1.bf16.msra.mxu1 %v10771_v6  ;;  %v10852_v6 = vld [vmem:[%s12398_s24 + $0xcc0] ss:$8 sps:$4 sm:$0xff]  }
 0x366   : > { %8318 = vmatpush1.bf16.msra.mxu0 %v10774_v7  ;;  %8041 = vmatprep.subr.bf16.mxu1 %v10779_v8  ;;  %v10857_v7 = vld [vmem:[%s12398_s24 + $0x5d4] ss:$8 sps:$4 sm:$0xff]  }
 0x367   : > { %8328 = vmatprep.subr.bf16.mxu0 %v10782_v30  ;;  %v10860_v8 = vld [vmem:[%s12398_s24 + $0xcd4] ss:$8 sps:$4 sm:$0xff]   ;;  %v10855_v30 = vld [vmem:[%s12398_s24 + $0x5d0] ss:$8 sps:$4 sm:$0xff]  }
 0x368   : > { %8033 = vmatmul.mubr.bf16.vlgmr.msra.gmra.mrb[0].mxu1 %v12844_v12 }
 0x369   : > { %8320 = vmatmul.mubr.bf16.vlgmr.msra.gmra.mrb[0].mxu0 %v5192_v13  ;;  %8042 = vmatpush1.bf16.msra.mxu1 %v10777_v9  ;;  %v10858_v9 = vld [vmem:[%s12398_s24 + $0xcd0] ss:$8 sps:$4 sm:$0xff]   ;;  %v10861_v13 = vld [vmem:[%s12398_s24 + $0x5e0] ss:$8 sps:$4 sm:$0xff]  }
 0x36a   : > { %8329 = vmatpush1.bf16.msra.mxu0 %v10780_v10  ;;  %8043 = vmatprep.subr.bf16.mxu1 %v10785_v14  ;;  %v10863_v10 = vld [vmem:[%s12398_s24 + $0x5e4] ss:$8 sps:$4 sm:$0xff]   ;;  %v10864_v14 = vld [vmem:[%s12398_s24 + $0xce0] ss:$8 sps:$4 sm:$0xff]  }
 0x36b   : > { %8330 = vmatprep.subr.bf16.mxu0 %v10788_v16  ;;  %8073 = vmatprep.mubr.bf16.mxu1 %v5144_v19  ;;  %v10869_v16 = vld [vmem:[%s12398_s24 + $0x5f4] ss:$8 sps:$4 sm:$0xff]   ;;  %v10870_v19 = vld [vmem:[%s12398_s24 + $0xcf0] ss:$8 sps:$4 sm:$0xff]  }
 0x36c   : > { %8360 = vmatprep.mubr.bf16.mxu0 %v12855_v58 }
 0x36d   : > { %8044 = vmatpush1.bf16.msra.mxu1 %v10783_v17  ;;  %v10872_v17 = vld [vmem:[%s12398_s24 + $0xcf4] ss:$8 sps:$4 sm:$0xff]  }
 0x36e   : > { %8331 = vmatpush1.bf16.msra.mxu0 %v10786_v18  ;;  %8045 = vmatprep.subr.bf16.mxu1 %v10791_v0  ;;  %v10867_v18 = vld [vmem:[%s12398_s24 + $0x5f0] ss:$8 sps:$4 sm:$0xff]   ;;  %v10875_v0 = vld [vmem:[%s12398_s24 + $0x604] ss:$8 sps:$4 sm:$0xff]  }
 0x36f   : > { %8332 = vmatprep.subr.bf16.mxu0 %v10794_v21  ;;  %v10878_v21 = vld [vmem:[%s12398_s24 + $0xd04] ss:$8 sps:$4 sm:$0xff]  }
 0x371   : > { %8046 = vmatpush1.bf16.msra.mxu1 %v10789_v22  ;;  %v5142_v22 = vcombine.high %v12844_v12, %v12844_v12  ;;  %v10882_v12 = vld [vmem:[%s12398_s24 + $0xd10] ss:$8 sps:$4 sm:$0xff]  }
 0x372   : > { %8333 = vmatpush1.bf16.msra.mxu0 %v10792_v4  ;;  %8047 = vmatprep.subr.bf16.mxu1 %v10797_v23  ;;  %v12921_v4 = vrot.slane %v12832_v43, %v12450_v52  ;;  %v10873_v23 = vld [vmem:[%s12398_s24 + $0x600] ss:$8 sps:$4 sm:$0xff]   ;;  %v10879_v43 = vld [vmem:[%s12398_s24 + $0x610] ss:$8 sps:$4 sm:$0xff]  }
 0x373   : > { %8334 = vmatprep.subr.bf16.mxu0 %v10800_v24  ;;  %v10876_v24 = vld [vmem:[%s12398_s24 + $0xd00] ss:$8 sps:$4 sm:$0xff]  }
 0x375   : > { %8048 = vmatpush1.bf16.msra.mxu1 %v10795_v25  ;;  %v10881_v25 = vld [vmem:[%s12398_s24 + $0x614] ss:$8 sps:$4 sm:$0xff]  }
 0x376   : > { %8335 = vmatpush1.bf16.msra.mxu0 %v10798_v26  ;;  %8049 = vmatprep.subr.bf16.mxu1 %v10803_v27  ;;  %v10884_v26 = vld [vmem:[%s12398_s24 + $0xd14] ss:$8 sps:$4 sm:$0xff]   ;;  %v5242_v27 = vcombine.high %v12855_v58, %v12855_v58  ;;  %v10885_v58 = vld [vmem:[%s12398_s24 + $0x620] ss:$8 sps:$4 sm:$0xff]  }
 0x377   : > { %8336 = vmatprep.subr.bf16.mxu0 %v10806_v28  ;;  %v10887_v28 = vld [vmem:[%s12398_s24 + $0x624] ss:$8 sps:$4 sm:$0xff]  }
 0x379   : > { %8050 = vmatpush1.bf16.msra.mxu1 %v10801_v29  ;;  %v10890_v29 = vld [vmem:[%s12398_s24 + $0xd24] ss:$8 sps:$4 sm:$0xff]  }
 0x37a   : > { %8337 = vmatpush1.bf16.msra.mxu0 %v10804_v31  ;;  %8051 = vmatprep.subr.bf16.mxu1 %v10809_v53  ;;  %v10888_v31 = vld [vmem:[%s12398_s24 + $0xd20] ss:$8 sps:$4 sm:$0xff]   ;;  %v10893_v53 = vld [vmem:[%s12398_s24 + $0x634] ss:$8 sps:$4 sm:$0xff]  }
 0x37b   : > { %8338 = vmatprep.subr.bf16.mxu0 %v10812_v32  ;;  %v10896_v32 = vld [vmem:[%s12398_s24 + $0xd34] ss:$8 sps:$4 sm:$0xff]  }
 0x37d   : > { %8052 = vmatpush1.bf16.msra.mxu1 %v10807_v33  ;;  %v10891_v33 = vld [vmem:[%s12398_s24 + $0x630] ss:$8 sps:$4 sm:$0xff]  }
 0x37e   : > { %8339 = vmatpush1.bf16.msra.mxu0 %v10810_v34  ;;  %8053 = vmatprep.subr.bf16.mxu1 %v10815_v35  ;;  %v10899_v34 = vld [vmem:[%s12398_s24 + $0x644] ss:$8 sps:$4 sm:$0xff]  }
 0x37f   : > { %8340 = vmatprep.subr.bf16.mxu0 %v10818_v36  ;;  %v10902_v35 = vld [vmem:[%s12398_s24 + $0xd44] ss:$8 sps:$4 sm:$0xff]   ;;  %v10897_v36 = vld [vmem:[%s12398_s24 + $0x640] ss:$8 sps:$4 sm:$0xff]  }
 0x381   : > { %8054 = vmatpush1.bf16.msra.mxu1 %v10813_v38  ;;  %v10900_v38 = vld [vmem:[%s12398_s24 + $0xd40] ss:$8 sps:$4 sm:$0xff]  }
 0x382   : > { %8341 = vmatpush1.bf16.msra.mxu0 %v10816_v39  ;;  %8055 = vmatprep.subr.bf16.mxu1 %v10821_v40  ;;  %v10905_v39 = vld [vmem:[%s12398_s24 + $0x654] ss:$8 sps:$4 sm:$0xff]  }
 0x383   : > { %8342 = vmatprep.subr.bf16.mxu0 %v10824_v20  ;;  %v10908_v40 = vld [vmem:[%s12398_s24 + $0xd54] ss:$8 sps:$4 sm:$0xff]   ;;  %v10903_v20 = vld [vmem:[%s12398_s24 + $0x650] ss:$8 sps:$4 sm:$0xff]  }
 0x385   : > { %8056 = vmatpush1.bf16.msra.mxu1 %v10819_v42  ;;  %v10906_v42 = vld [vmem:[%s12398_s24 + $0xd50] ss:$8 sps:$4 sm:$0xff]  }
 0x386   : > { %8343 = vmatpush1.bf16.msra.mxu0 %v10822_v44  ;;  %8057 = vmatprep.subr.bf16.mxu1 %v10827_v49  ;;  %v10911_v44 = vld [vmem:[%s12398_s24 + $0x664] ss:$8 sps:$4 sm:$0xff]  }
 0x387   : > { %8344 = vmatprep.subr.bf16.mxu0 %v10830_v45  ;;  %v10914_v49 = vld [vmem:[%s12398_s24 + $0xd64] ss:$8 sps:$4 sm:$0xff]   ;;  %v10909_v45 = vld [vmem:[%s12398_s24 + $0x660] ss:$8 sps:$4 sm:$0xff]  }
 0x389   : > { %8058 = vmatpush1.bf16.msra.mxu1 %v10825_v47  ;;  %v10912_v47 = vld [vmem:[%s12398_s24 + $0xd60] ss:$8 sps:$4 sm:$0xff]  }
 0x38a   : > { %8345 = vmatpush1.bf16.msra.mxu0 %v10828_v48  ;;  %8059 = vmatprep.subr.bf16.mxu1 %v10833_v50  ;;  %v10917_v48 = vld [vmem:[%s12398_s24 + $0x674] ss:$8 sps:$4 sm:$0xff]  }
 0x38b   : > { %8346 = vmatprep.subr.bf16.mxu0 %v10836_v54  ;;  %v10920_v50 = vld [vmem:[%s12398_s24 + $0xd74] ss:$8 sps:$4 sm:$0xff]   ;;  %v10915_v54 = vld [vmem:[%s12398_s24 + $0x670] ss:$8 sps:$4 sm:$0xff]  }
 0x38d   : > { %8060 = vmatpush1.bf16.msra.mxu1 %v10831_v55  ;;  %v10918_v55 = vld [vmem:[%s12398_s24 + $0xd70] ss:$8 sps:$4 sm:$0xff]  }
 0x38e   : > { %8347 = vmatpush1.bf16.msra.mxu0 %v10834_v56  ;;  %8061 = vmatprep.subr.bf16.mxu1 %v10839_v57  ;;  %v10923_v56 = vld [vmem:[%s12398_s24 + $0x684] ss:$8 sps:$4 sm:$0xff]  }
 0x38f   : > { %8348 = vmatprep.subr.bf16.mxu0 %v10842_v37  ;;  %v10926_v57 = vld [vmem:[%s12398_s24 + $0xd84] ss:$8 sps:$4 sm:$0xff]   ;;  %v10921_v37 = vld [vmem:[%s12398_s24 + $0x680] ss:$8 sps:$4 sm:$0xff]  }
 0x391   : > { %8062 = vmatpush1.bf16.msra.mxu1 %v10837_v59  ;;  %v10924_v59 = vld [vmem:[%s12398_s24 + $0xd80] ss:$8 sps:$4 sm:$0xff]  }
 0x392   : > { %8349 = vmatpush1.bf16.msra.mxu0 %v10840_v60  ;;  %8063 = vmatprep.subr.bf16.mxu1 %v10845_v41  ;;  %v10929_v60 = vld [vmem:[%s12398_s24 + $0x694] ss:$8 sps:$4 sm:$0xff]  }
 0x393   : > { %8350 = vmatprep.subr.bf16.mxu0 %v10848_v61  ;;  %v10932_v41 = vld [vmem:[%s12398_s24 + $0xd94] ss:$8 sps:$4 sm:$0xff]   ;;  %v10927_v61 = vld [vmem:[%s12398_s24 + $0x690] ss:$8 sps:$4 sm:$0xff]  }
 0x395   : > { %8064 = vmatpush1.bf16.msra.mxu1 %v10843_v62  ;;  %v10930_v62 = vld [vmem:[%s12398_s24 + $0xd90] ss:$8 sps:$4 sm:$0xff]  }
 0x396   : > { %8351 = vmatpush1.bf16.msra.mxu0 %v10846_v1  ;;  %8065 = vmatprep.subr.bf16.mxu1 %v10851_v2  ;;  %v10935_v1 = vld [vmem:[%s12398_s24 + $0x6a4] ss:$8 sps:$4 sm:$0xff]  }
 0x397   : > { %8352 = vmatprep.subr.bf16.mxu0 %v10854_v3  ;;  %v10938_v2 = vld [vmem:[%s12398_s24 + $0xda4] ss:$8 sps:$4 sm:$0xff]   ;;  %v10933_v3 = vld [vmem:[%s12398_s24 + $0x6a0] ss:$8 sps:$4 sm:$0xff]  }
 0x399   : > { %8066 = vmatpush1.bf16.msra.mxu1 %v10849_v51  ;;  %v10936_v51 = vld [vmem:[%s12398_s24 + $0xda0] ss:$8 sps:$4 sm:$0xff]  }
 0x39a   : > { %8353 = vmatpush1.bf16.msra.mxu0 %v10852_v6  ;;  %8067 = vmatprep.subr.bf16.mxu1 %v10857_v7  ;;  %v10941_v6 = vld [vmem:[%s12398_s24 + $0x6b4] ss:$8 sps:$4 sm:$0xff]  }
 0x39b   : > { %8354 = vmatprep.subr.bf16.mxu0 %v10860_v8  ;;  %v10944_v7 = vld [vmem:[%s12398_s24 + $0xdb4] ss:$8 sps:$4 sm:$0xff]   ;;  %v10939_v8 = vld [vmem:[%s12398_s24 + $0x6b0] ss:$8 sps:$4 sm:$0xff]  }
 0x39d   : > { %8068 = vmatpush1.bf16.msra.mxu1 %v10855_v30  ;;  %v10942_v30 = vld [vmem:[%s12398_s24 + $0xdb0] ss:$8 sps:$4 sm:$0xff]  }
 0x39e   : > { %8355 = vmatpush1.bf16.msra.mxu0 %v10858_v9  ;;  %8069 = vmatprep.subr.bf16.mxu1 %v10863_v10  ;;  %v10947_v9 = vld [vmem:[%s12398_s24 + $0x6c4] ss:$8 sps:$4 sm:$0xff]  }
 0x39f   : > { %8356 = vmatprep.subr.bf16.mxu0 %v10866_v11  ;;  %v10950_v10 = vld [vmem:[%s12398_s24 + $0xdc4] ss:$8 sps:$4 sm:$0xff]   ;;  %v10945_v11 = vld [vmem:[%s12398_s24 + $0x6c0] ss:$8 sps:$4 sm:$0xff]  }
 0x3a1   : > { %8070 = vmatpush1.bf16.msra.mxu1 %v10861_v13  ;;  %v10948_v13 = vld [vmem:[%s12398_s24 + $0xdc0] ss:$8 sps:$4 sm:$0xff]  }
 0x3a2   : > { %8357 = vmatpush1.bf16.msra.mxu0 %v10864_v14  ;;  %8071 = vmatprep.subr.bf16.mxu1 %v10869_v16  ;;  %v10953_v14 = vld [vmem:[%s12398_s24 + $0x6d4] ss:$8 sps:$4 sm:$0xff]  }
 0x3a3   : > { %8358 = vmatprep.subr.bf16.mxu0 %v10872_v17  ;;  %v10956_v16 = vld [vmem:[%s12398_s24 + $0xdd4] ss:$8 sps:$4 sm:$0xff]   ;;  %v10951_v17 = vld [vmem:[%s12398_s24 + $0x6d0] ss:$8 sps:$4 sm:$0xff]  }
 0x3a5   : > { %8072 = vmatpush1.bf16.msra.mxu1 %v10867_v18  ;;  %v10954_v18 = vld [vmem:[%s12398_s24 + $0xdd0] ss:$8 sps:$4 sm:$0xff]  }
 0x3a6   : > { %8359 = vmatpush1.bf16.msra.mxu0 %v10870_v19  ;;  %8082 = vmatprep.subr.bf16.mxu1 %v10875_v0  ;;  %v5195_v19 = vcombine.high %v12824_v63, %v12824_v63  ;;  %v10959_v0 = vld [vmem:[%s12398_s24 + $0x6e4] ss:$8 sps:$4 sm:$0xff]   ;;  %v10968_v63 = vld [vmem:[%s12398_s24 + $0xdf4] ss:$8 sps:$4 sm:$0xff]  }
 0x3a7   : > { %8369 = vmatprep.subr.bf16.mxu0 %v10878_v21  ;;  %v10962_v21 = vld [vmem:[%s12398_s24 + $0xde4] ss:$8 sps:$4 sm:$0xff]  }
 0x3a8   : > { %8074 = vmatmul.mubr.bf16.vlgmr.msra.gmra.mrb[0].mxu1 %v5142_v22  ;;  %v10957_v22 = vld [vmem:[%s12398_s24 + $0x6e0] ss:$8 sps:$4 sm:$0xff]  }
 0x3a9   : > { %8361 = vmatmul.mubr.bf16.vlgmr.msra.gmra.mrb[0].mxu0 %v12921_v4  ;;  %8083 = vmatpush1.bf16.msra.mxu1 %v10873_v23  ;;  %v10960_v23 = vld [vmem:[%s12398_s24 + $0xde0] ss:$8 sps:$4 sm:$0xff]  }
 0x3aa   : > { %8370 = vmatpush1.bf16.msra.mxu0 %v10876_v24  ;;  %8084 = vmatprep.subr.bf16.mxu1 %v10881_v25  ;;  %v12988_v24 = vrot.slane %v5195_v19, %v12450_v52  ;;  %v10965_v25 = vld [vmem:[%s12398_s24 + $0x6f4] ss:$8 sps:$4 sm:$0xff]  }
 0x3ab   : > { %8371 = vmatprep.subr.bf16.mxu0 %v10884_v26  ;;  %8114 = vmatprep.mubr.bf16.mxu1 %v12473_v5  ;;  %v10894_v5 = vld [vmem:[%s12398_s24 + $0xd30] ss:$8 sps:$4 sm:$0xff]   ;;  %v11068_v19 = vld [vmem:[%s12396_s13 + $0x4] ss:$16 sps:$4 sm:$0xff]  }
 0x3ac   : > { %8401 = vmatprep.mubr.bf16.mxu0 %v5242_v27  ;;  %v10963_v26 = vld [vmem:[%s12398_s24 + $0x6f0] ss:$8 sps:$4 sm:$0xff]  }
 0x3ad   : > { %8085 = vmatpush1.bf16.msra.mxu1 %v10879_v43  ;;  %v10966_v27 = vld [vmem:[%s12398_s24 + $0xdf0] ss:$8 sps:$4 sm:$0xff]   ;;  %v5211_v43 = vcombine.high %v12988_v24, %v12988_v24 }
 0x3ae   : > { %8372 = vmatpush1.bf16.msra.mxu0 %v10882_v12  ;;  %8086 = vmatprep.subr.bf16.mxu1 %v10887_v28  ;;  %v10971_v12 = vld [vmem:[%s12398_s24 + $0xe04] ss:$8 sps:$4 sm:$0xff]   ;;  %v5240_v28 = vcombine.high %v12921_v4, %v12921_v4 }
 0x3af   : > { %8373 = vmatprep.subr.bf16.mxu0 %v10890_v29  ;;  %v10969_v29 = vld [vmem:[%s12398_s24 + $0xe00] ss:$8 sps:$4 sm:$0xff]   ;;  %v10977_v4 = vld [vmem:[%s12398_s24 + $0xe24] ss:$8 sps:$4 sm:$0xff]  }
 0x3b1   : > { %8087 = vmatpush1.bf16.msra.mxu1 %v10885_v58  ;;  %v13001_v58 = vrot.slane %v5211_v43, %v12450_v52  ;;  %v11045_v43 = vld [vmem:[%s12398_s24 + $0xf90] ss:$8 sps:$4 sm:$0xff]  }
 0x3b2   : > { %8374 = vmatpush1.bf16.msra.mxu0 %v10888_v31  ;;  %8088 = vmatprep.subr.bf16.mxu1 %v10893_v53  ;;  %v10974_v31 = vld [vmem:[%s12398_s24 + $0xe14] ss:$8 sps:$4 sm:$0xff]   ;;  %v10972_v53 = vld [vmem:[%s12398_s24 + $0xe10] ss:$8 sps:$4 sm:$0xff]  }
 0x3b3   : > { %8375 = vmatprep.subr.bf16.mxu0 %v10896_v32  ;;  %v10975_v32 = vld [vmem:[%s12398_s24 + $0xe20] ss:$8 sps:$4 sm:$0xff]  }
 0x3b5   : > { %8089 = vmatpush1.bf16.msra.mxu1 %v10891_v33  ;;  %v10980_v33 = vld [vmem:[%s12398_s24 + $0xe34] ss:$8 sps:$4 sm:$0xff]  }
 0x3b6   : > { %8376 = vmatpush1.bf16.msra.mxu0 %v10894_v5  ;;  %8090 = vmatprep.subr.bf16.mxu1 %v10899_v34  ;;  %v10978_v5 = vld [vmem:[%s12398_s24 + $0xe30] ss:$8 sps:$4 sm:$0xff]   ;;  %v10981_v34 = vld [vmem:[%s12398_s24 + $0xe40] ss:$8 sps:$4 sm:$0xff]  }
 0x3b7   : > { %8377 = vmatprep.subr.bf16.mxu0 %v10902_v35  ;;  %v10986_v35 = vld [vmem:[%s12398_s24 + $0xe54] ss:$8 sps:$4 sm:$0xff]  }
 0x3b9   : > { %8091 = vmatpush1.bf16.msra.mxu1 %v10897_v36  ;;  %v10984_v36 = vld [vmem:[%s12398_s24 + $0xe50] ss:$8 sps:$4 sm:$0xff]  }
 0x3ba   : > { %8378 = vmatpush1.bf16.msra.mxu0 %v10900_v38  ;;  %8092 = vmatprep.subr.bf16.mxu1 %v10905_v39  ;;  %v10989_v38 = vld [vmem:[%s12398_s24 + $0xe64] ss:$8 sps:$4 sm:$0xff]   ;;  %v10987_v39 = vld [vmem:[%s12398_s24 + $0xe60] ss:$8 sps:$4 sm:$0xff]  }
 0x3bb   : > { %8379 = vmatprep.subr.bf16.mxu0 %v10908_v40  ;;  %v10992_v40 = vld [vmem:[%s12398_s24 + $0xe74] ss:$8 sps:$4 sm:$0xff]  }
 0x3bd   : > { %8093 = vmatpush1.bf16.msra.mxu1 %v10903_v20  ;;  %v10990_v20 = vld [vmem:[%s12398_s24 + $0xe70] ss:$8 sps:$4 sm:$0xff]  }
 0x3be   : > { %8380 = vmatpush1.bf16.msra.mxu0 %v10906_v42  ;;  %8094 = vmatprep.subr.bf16.mxu1 %v10911_v44  ;;  %v10995_v42 = vld [vmem:[%s12398_s24 + $0xe84] ss:$8 sps:$4 sm:$0xff]   ;;  %v10993_v44 = vld [vmem:[%s12398_s24 + $0xe80] ss:$8 sps:$4 sm:$0xff]  }
 0x3bf   : > { %8381 = vmatprep.subr.bf16.mxu0 %v10914_v49  ;;  %v10998_v49 = vld [vmem:[%s12398_s24 + $0xe94] ss:$8 sps:$4 sm:$0xff]  }
 0x3c1   : > { %8095 = vmatpush1.bf16.msra.mxu1 %v10909_v45  ;;  %v10996_v45 = vld [vmem:[%s12398_s24 + $0xe90] ss:$8 sps:$4 sm:$0xff]  }
 0x3c2   : > { %8382 = vmatpush1.bf16.msra.mxu0 %v10912_v47  ;;  %8096 = vmatprep.subr.bf16.mxu1 %v10917_v48  ;;  %v11001_v47 = vld [vmem:[%s12398_s24 + $0xea4] ss:$8 sps:$4 sm:$0xff]   ;;  %v10999_v48 = vld [vmem:[%s12398_s24 + $0xea0] ss:$8 sps:$4 sm:$0xff]  }
 0x3c3   : > { %8383 = vmatprep.subr.bf16.mxu0 %v10920_v50  ;;  %v11004_v50 = vld [vmem:[%s12398_s24 + $0xeb4] ss:$8 sps:$4 sm:$0xff]  }
 0x3c5   : > { %8097 = vmatpush1.bf16.msra.mxu1 %v10915_v54  ;;  %v11002_v54 = vld [vmem:[%s12398_s24 + $0xeb0] ss:$8 sps:$4 sm:$0xff]  }
 0x3c6   : > { %8384 = vmatpush1.bf16.msra.mxu0 %v10918_v55  ;;  %8098 = vmatprep.subr.bf16.mxu1 %v10923_v56  ;;  %v11007_v55 = vld [vmem:[%s12398_s24 + $0xec4] ss:$8 sps:$4 sm:$0xff]   ;;  %v11005_v56 = vld [vmem:[%s12398_s24 + $0xec0] ss:$8 sps:$4 sm:$0xff]  }
 0x3c7   : > { %8385 = vmatprep.subr.bf16.mxu0 %v10926_v57  ;;  %v11010_v57 = vld [vmem:[%s12398_s24 + $0xed4] ss:$8 sps:$4 sm:$0xff]  }
 0x3c9   : > { %8099 = vmatpush1.bf16.msra.mxu1 %v10921_v37  ;;  %v11008_v37 = vld [vmem:[%s12398_s24 + $0xed0] ss:$8 sps:$4 sm:$0xff]  }
 0x3ca   : > { %8386 = vmatpush1.bf16.msra.mxu0 %v10924_v59  ;;  %8100 = vmatprep.subr.bf16.mxu1 %v10929_v60  ;;  %v11013_v59 = vld [vmem:[%s12398_s24 + $0xee4] ss:$8 sps:$4 sm:$0xff]   ;;  %v11011_v60 = vld [vmem:[%s12398_s24 + $0xee0] ss:$8 sps:$4 sm:$0xff]  }
 0x3cb   : > { %8387 = vmatprep.subr.bf16.mxu0 %v10932_v41  ;;  %v11016_v41 = vld [vmem:[%s12398_s24 + $0xef4] ss:$8 sps:$4 sm:$0xff]  }
 0x3cd   : > { %8101 = vmatpush1.bf16.msra.mxu1 %v10927_v61  ;;  %v11014_v61 = vld [vmem:[%s12398_s24 + $0xef0] ss:$8 sps:$4 sm:$0xff]  }
 0x3ce   : > { %8388 = vmatpush1.bf16.msra.mxu0 %v10930_v62  ;;  %8102 = vmatprep.subr.bf16.mxu1 %v10935_v1  ;;  %v11020_v62 = vld [vmem:[%s12398_s24 + $0xf04] ss:$8 sps:$4 sm:$0xff]   ;;  %v13038_v1 = vrot.slane %v12988_v24, %v12450_v52 }
 0x3cf   : > { %8389 = vmatprep.subr.bf16.mxu0 %v10938_v2  ;;  %v11018_v2 = vld [vmem:[%s12398_s24 + $0xf00] ss:$8 sps:$4 sm:$0xff]   ;;  %v11026_v52 = vld [vmem:[%s12398_s24 + $0xf24] ss:$8 sps:$4 sm:$0xff]  }
 0x3d0   : > { %v11074_v24 = vld [vmem:[%s12396_s13 + $0x44] ss:$16 sps:$4 sm:$0xff]  }
 0x3d1   : > { %8103 = vmatpush1.bf16.msra.mxu1 %v10933_v3  ;;  %v5243_v3 = vcombine.high %v13001_v58, %v13001_v58 }
 0x3d2   : > { %8390 = vmatpush1.bf16.msra.mxu0 %v10936_v51  ;;  %8104 = vmatprep.subr.bf16.mxu1 %v10941_v6  ;;  %v11023_v51 = vld [vmem:[%s12398_s24 + $0xf14] ss:$8 sps:$4 sm:$0xff]   ;;  %v11021_v6 = vld [vmem:[%s12398_s24 + $0xf10] ss:$8 sps:$4 sm:$0xff]  }
 0x3d3   : > { %8391 = vmatprep.subr.bf16.mxu0 %v10944_v7  ;;  %v11024_v7 = vld [vmem:[%s12398_s24 + $0xf20] ss:$8 sps:$4 sm:$0xff]  }
 0x3d5   : > { %8105 = vmatpush1.bf16.msra.mxu1 %v10939_v8  ;;  %v11029_v8 = vld [vmem:[%s12398_s24 + $0xf34] ss:$8 sps:$4 sm:$0xff]  }
 0x3d6   : > { %8392 = vmatpush1.bf16.msra.mxu0 %v10942_v30  ;;  %8106 = vmatprep.subr.bf16.mxu1 %v10947_v9  ;;  %v11027_v30 = vld [vmem:[%s12398_s24 + $0xf30] ss:$8 sps:$4 sm:$0xff]   ;;  %v11032_v9 = vld [vmem:[%s12398_s24 + $0xf44] ss:$8 sps:$4 sm:$0xff]  }
 0x3d7   : > { %8393 = vmatprep.subr.bf16.mxu0 %v10950_v10  ;;  %v11030_v10 = vld [vmem:[%s12398_s24 + $0xf40] ss:$8 sps:$4 sm:$0xff]  }
 0x3d9   : > { %8107 = vmatpush1.bf16.msra.mxu1 %v10945_v11  ;;  %v11035_v11 = vld [vmem:[%s12398_s24 + $0xf54] ss:$8 sps:$4 sm:$0xff]  }
 0x3da   : > { %8394 = vmatpush1.bf16.msra.mxu0 %v10948_v13  ;;  %8108 = vmatprep.subr.bf16.mxu1 %v10953_v14  ;;  %v11033_v13 = vld [vmem:[%s12398_s24 + $0xf50] ss:$8 sps:$4 sm:$0xff]   ;;  %v11038_v14 = vld [vmem:[%s12398_s24 + $0xf64] ss:$8 sps:$4 sm:$0xff]  }
 0x3db   : > { %8395 = vmatprep.subr.bf16.mxu0 %v10956_v16  ;;  %v11036_v16 = vld [vmem:[%s12398_s24 + $0xf60] ss:$8 sps:$4 sm:$0xff]  }
 0x3dd   : > { %8109 = vmatpush1.bf16.msra.mxu1 %v10951_v17  ;;  %v11041_v17 = vld [vmem:[%s12398_s24 + $0xf74] ss:$8 sps:$4 sm:$0xff]  }
 0x3de   : > { %8396 = vmatpush1.bf16.msra.mxu0 %v10954_v18  ;;  %8110 = vmatprep.subr.bf16.mxu1 %v10959_v0  ;;  %v11066_v18 = vld [vmem:[%s12396_s13] ss:$16 sps:$4 sm:$0xff]   ;;  %v11071_v0 = vld [vmem:[%s12396_s13 + $0x24] ss:$16 sps:$4 sm:$0xff]  }
 0x3df   : > { %8397 = vmatprep.subr.bf16.mxu0 %v10962_v21  ;;  %v11039_v21 = vld [vmem:[%s12398_s24 + $0xf70] ss:$8 sps:$4 sm:$0xff]  }
 0x3e1   : > { %8111 = vmatpush1.bf16.msra.mxu1 %v10957_v22  ;;  %v11069_v22 = vld [vmem:[%s12396_s13 + $0x20] ss:$16 sps:$4 sm:$0xff]  }
 0x3e2   : > { %8398 = vmatpush1.bf16.msra.mxu0 %v10960_v23  ;;  %8112 = vmatprep.subr.bf16.mxu1 %v10965_v25  ;;  %v11044_v23 = vld [vmem:[%s12398_s24 + $0xf84] ss:$8 sps:$4 sm:$0xff]   ;;  %v11042_v25 = vld [vmem:[%s12398_s24 + $0xf80] ss:$8 sps:$4 sm:$0xff]  }
 0x3e3   : > { %8399 = vmatprep.subr.bf16.mxu0 %v10968_v63  ;;  %v11072_v63 = vld [vmem:[%s12396_s13 + $0x40] ss:$16 sps:$4 sm:$0xff]  }
 0x3e5   : > { %8113 = vmatpush1.bf16.msra.mxu1 %v10963_v26  ;;  %v11047_v26 = vld [vmem:[%s12398_s24 + $0xf94] ss:$8 sps:$4 sm:$0xff]  }
 0x3e6   : > { %8400 = vmatpush1.bf16.msra.mxu0 %v10966_v27  ;;  %8881 = vmatprep.subr.bf16.mxu1 %v11068_v19  ;;  %v11077_v27 = vld [vmem:[%s12396_s13 + $0x64] ss:$16 sps:$4 sm:$0xff]  }
 0x3e7   : > { %8410 = vmatprep.subr.bf16.mxu0 %v10971_v12  ;;  %v11075_v12 = vld [vmem:[%s12396_s13 + $0x60] ss:$16 sps:$4 sm:$0xff]  }
 0x3e8   : > { %8115 = vmatmul.mubr.bf16.vlgmr.msra.gmra.mrb[0].mxu1 %v12486_v15  ;;  %v10983_v15 = vld [vmem:[%s12398_s24 + $0xe44] ss:$8 sps:$4 sm:$0xff]  }
 0x3e9   : > { %8402 = vmatmul.mubr.bf16.vlgmr.msra.gmra.mrb[0].mxu0 %v5240_v28  ;;  %8882 = vmatpush1.bf16.msra.mxu1 %v11066_v18  ;;  %v11050_v28 = vld [vmem:[%s12398_s24 + $0xfa4] ss:$8 sps:$4 sm:$0xff]  }
 0x3ea   : > { %8411 = vmatpush1.bf16.msra.mxu0 %v10969_v29  ;;  %8442 = vmatprep.mubr.bf16.mxu0 %v13001_v58  ;;  %v11080_v29 = vld [vmem:[%s12396_s13 + $0x84] ss:$16 sps:$4 sm:$0xff]   ;;  %v11048_v58 = vld [vmem:[%s12398_s24 + $0xfa0] ss:$8 sps:$4 sm:$0xff]  }
 0x3eb   : > { %8412 = vmatprep.subr.bf16.mxu0 %v10974_v31  ;;  %8883 = vmatprep.subr.bf16.mxu1 %v11071_v0  ;;  %v11078_v31 = vld [vmem:[%s12396_s13 + $0x80] ss:$16 sps:$4 sm:$0xff]  }
 0x3ed   : > { %8884 = vmatpush1.bf16.msra.mxu1 %v11069_v22 }
 0x3ee   : > { %8413 = vmatpush1.bf16.msra.mxu0 %v10972_v53  ;;  %8885 = vmatprep.subr.bf16.mxu1 %v11074_v24  ;;  %v11053_v53 = vld [vmem:[%s12398_s24 + $0xfb4] ss:$8 sps:$4 sm:$0xff]  }
 0x3ef   : > { %8414 = vmatprep.subr.bf16.mxu0 %v10977_v4  ;;  %v11083_v4 = vld [vmem:[%s12396_s13 + $0xa4] ss:$16 sps:$4 sm:$0xff]  }
 0x3f1   : > { %8886 = vmatpush1.bf16.msra.mxu1 %v11072_v63  ;;  %v11114_v63 = vld [vmem:[%s12396_s13 + $0x8] ss:$16 sps:$4 sm:$0xff]  }
 0x3f2   : > { %8415 = vmatpush1.bf16.msra.mxu0 %v10975_v32  ;;  %8887 = vmatprep.subr.bf16.mxu1 %v11077_v27  ;;  %v11051_v32 = vld [vmem:[%s12398_s24 + $0xfb0] ss:$8 sps:$4 sm:$0xff]   ;;  %v11119_v27 = vld [vmem:[%s12396_s13 + $0x2c] ss:$16 sps:$4 sm:$0xff]  }
 0x3f3   : > { %8416 = vmatprep.subr.bf16.mxu0 %v10980_v33  ;;  %v11081_v33 = vld [vmem:[%s12396_s13 + $0xa0] ss:$16 sps:$4 sm:$0xff]  }
 0x3f5   : > { %8888 = vmatpush1.bf16.msra.mxu1 %v11075_v12  ;;  %v11122_v12 = vld [vmem:[%s12396_s13 + $0x4c] ss:$16 sps:$4 sm:$0xff]  }
 0x3f6   : > { %8417 = vmatpush1.bf16.msra.mxu0 %v10978_v5  ;;  %8889 = vmatprep.subr.bf16.mxu1 %v11080_v29  ;;  %v11056_v5 = vld [vmem:[%s12398_s24 + $0xfc4] ss:$8 sps:$4 sm:$0xff]  }
 0x3f7   : > { %8418 = vmatprep.subr.bf16.mxu0 %v10983_v15  ;;  %v11086_v15 = vld [vmem:[%s12396_s13 + $0xc4] ss:$16 sps:$4 sm:$0xff]   ;;  %v11125_v29 = vld [vmem:[%s12396_s13 + $0x6c] ss:$16 sps:$4 sm:$0xff]  }
 0x3f9   : > { %8890 = vmatpush1.bf16.msra.mxu1 %v11078_v31  ;;  %v11128_v31 = vld [vmem:[%s12396_s13 + $0x8c] ss:$16 sps:$4 sm:$0xff]  }
 0x3fa   : > { %8419 = vmatpush1.bf16.msra.mxu0 %v10981_v34  ;;  %8891 = vmatprep.subr.bf16.mxu1 %v11083_v4  ;;  %v11054_v34 = vld [vmem:[%s12398_s24 + $0xfc0] ss:$8 sps:$4 sm:$0xff]   ;;  %v11131_v4 = vld [vmem:[%s12396_s13 + $0xac] ss:$16 sps:$4 sm:$0xff]  }
 0x3fb   : > { %8420 = vmatprep.subr.bf16.mxu0 %v10986_v35  ;;  %v11084_v35 = vld [vmem:[%s12396_s13 + $0xc0] ss:$16 sps:$4 sm:$0xff]  }
 0x3fd   : > { %8892 = vmatpush1.bf16.msra.mxu1 %v11081_v33  ;;  %v11134_v33 = vld [vmem:[%s12396_s13 + $0xcc] ss:$16 sps:$4 sm:$0xff]  }
 0x3fe   : > { %8421 = vmatpush1.bf16.msra.mxu0 %v10984_v36  ;;  %v11059_v36 = vld [vmem:[%s12398_s24 + $0xfd4] ss:$8 sps:$4 sm:$0xff]   ;;  %8893 = vmatprep.subr.bf16.mxu1 %v11086_v15 }
 0x3ff   : > { %8422 = vmatprep.subr.bf16.mxu0 %v10989_v38  ;;  %v11089_v38 = vld [vmem:[%s12396_s13 + $0xe4] ss:$16 sps:$4 sm:$0xff]   ;;  %v11137_v15 = vld [vmem:[%s12396_s13 + $0xec] ss:$16 sps:$4 sm:$0xff]  }
 0x401   : > { %8894 = vmatpush1.bf16.msra.mxu1 %v11084_v35  ;;  %v11140_v35 = vld [vmem:[%s12396_s13 + $0x10c] ss:$16 sps:$4 sm:$0xff]  }
 0x402   : > { %8423 = vmatpush1.bf16.msra.mxu0 %v10987_v39  ;;  %v11057_v39 = vld [vmem:[%s12398_s24 + $0xfd0] ss:$8 sps:$4 sm:$0xff]   ;;  %8895 = vmatprep.subr.bf16.mxu1 %v11089_v38  ;;  %v11143_v38 = vld [vmem:[%s12396_s13 + $0x12c] ss:$16 sps:$4 sm:$0xff]  }
 0x403   : > { %8424 = vmatprep.subr.bf16.mxu0 %v10992_v40  ;;  %v11087_v40 = vld [vmem:[%s12396_s13 + $0xe0] ss:$16 sps:$4 sm:$0xff]  }
 0x405   : > { %8896 = vmatpush1.bf16.msra.mxu1 %v11087_v40  ;;  %v11146_v40 = vld [vmem:[%s12396_s13 + $0x14c] ss:$16 sps:$4 sm:$0xff]  }
 0x406   : > { %8425 = vmatpush1.bf16.msra.mxu0 %v10990_v20  ;;  %v11062_v20 = vld [vmem:[%s12398_s24 + $0xfe4] ss:$8 sps:$4 sm:$0xff]  }
 0x407   : > { %8426 = vmatprep.subr.bf16.mxu0 %v10995_v42  ;;  %v11092_v42 = vld [vmem:[%s12396_s13 + $0x104] ss:$16 sps:$4 sm:$0xff]  }
 0x408   : > { %8897 = vmatprep.subr.bf16.mxu1 %v11092_v42  ;;  %v11149_v42 = vld [vmem:[%s12396_s13 + $0x16c] ss:$16 sps:$4 sm:$0xff]  }
 0x40a   : > { %8427 = vmatpush1.bf16.msra.mxu0 %v10993_v44  ;;  %v11060_v44 = vld [vmem:[%s12398_s24 + $0xfe0] ss:$8 sps:$4 sm:$0xff]  }
 0x40b   : > { %8428 = vmatprep.subr.bf16.mxu0 %v10998_v49  ;;  %v11090_v49 = vld [vmem:[%s12396_s13 + $0x100] ss:$16 sps:$4 sm:$0xff]  }
 0x40c   : > { %8898 = vmatpush1.bf16.msra.mxu1 %v11090_v49  ;;  %v11152_v49 = vld [vmem:[%s12396_s13 + $0x18c] ss:$16 sps:$4 sm:$0xff]  }
 0x40e   : > { %8429 = vmatpush1.bf16.msra.mxu0 %v10996_v45  ;;  %v11065_v45 = vld [vmem:[%s12398_s24 + $0xff4] ss:$8 sps:$4 sm:$0xff]  }
 0x40f   : > { %8430 = vmatprep.subr.bf16.mxu0 %v11001_v47  ;;  %v11095_v47 = vld [vmem:[%s12396_s13 + $0x124] ss:$16 sps:$4 sm:$0xff]  }
 0x410   : > { %8899 = vmatprep.subr.bf16.mxu1 %v11095_v47  ;;  %v11155_v47 = vld [vmem:[%s12396_s13 + $0x1ac] ss:$16 sps:$4 sm:$0xff]  }
 0x412   : > { %8431 = vmatpush1.bf16.msra.mxu0 %v10999_v48  ;;  %v11063_v48 = vld [vmem:[%s12398_s24 + $0xff0] ss:$8 sps:$4 sm:$0xff]  }
 0x413   : > { %8432 = vmatprep.subr.bf16.mxu0 %v11004_v50  ;;  %v11093_v50 = vld [vmem:[%s12396_s13 + $0x120] ss:$16 sps:$4 sm:$0xff]  }
 0x414   : > { %8900 = vmatpush1.bf16.msra.mxu1 %v11093_v50  ;;  %v11158_v50 = vld [vmem:[%s12396_s13 + $0x1cc] ss:$16 sps:$4 sm:$0xff]  }
 0x416   : > { %8433 = vmatpush1.bf16.msra.mxu0 %v11002_v54  ;;  %v11098_v54 = vld [vmem:[%s12396_s13 + $0x144] ss:$16 sps:$4 sm:$0xff]  }
 0x417   : > { %8434 = vmatprep.subr.bf16.mxu0 %v11007_v55  ;;  %v5241_v55 = vcombine.high %v13038_v1, %v13038_v1  ;;  %8901 = vmatprep.subr.bf16.mxu1 %v11098_v54  ;;  %v11156_v54 = vld [vmem:[%s12396_s13 + $0x1c8] ss:$16 sps:$4 sm:$0xff]  }
 0x41a   : > { %8435 = vmatpush1.bf16.msra.mxu0 %v11005_v56  ;;  %v11096_v56 = vld [vmem:[%s12396_s13 + $0x140] ss:$16 sps:$4 sm:$0xff]  }
 0x41b   : > { %8436 = vmatprep.subr.bf16.mxu0 %v11010_v57  ;;  %v11101_v57 = vld [vmem:[%s12396_s13 + $0x164] ss:$16 sps:$4 sm:$0xff]   ;;  %8902 = vmatpush1.bf16.msra.mxu1 %v11096_v56  ;;  %v11159_v56 = vld [vmem:[%s12396_s13 + $0x1e8] ss:$16 sps:$4 sm:$0xff]  }
 0x41c   : > { %8903 = vmatprep.subr.bf16.mxu1 %v11101_v57 }
 0x41e   : > { %8437 = vmatpush1.bf16.msra.mxu0 %v11008_v37  ;;  %v11099_v37 = vld [vmem:[%s12396_s13 + $0x160] ss:$16 sps:$4 sm:$0xff]  }
 0x41f   : > { %8438 = vmatprep.subr.bf16.mxu0 %v11013_v59  ;;  %v11104_v59 = vld [vmem:[%s12396_s13 + $0x184] ss:$16 sps:$4 sm:$0xff]   ;;  %8904 = vmatpush1.bf16.msra.mxu1 %v11099_v37 }
 0x420   : > { %8905 = vmatprep.subr.bf16.mxu1 %v11104_v59 }
 0x422   : > { %8439 = vmatpush1.bf16.msra.mxu0 %v11011_v60  ;;  %v11102_v60 = vld [vmem:[%s12396_s13 + $0x180] ss:$16 sps:$4 sm:$0xff]  }
 0x423   : > { %8440 = vmatprep.subr.bf16.mxu0 %v11016_v41  ;;  %v11107_v41 = vld [vmem:[%s12396_s13 + $0x1a4] ss:$16 sps:$4 sm:$0xff]   ;;  %8906 = vmatpush1.bf16.msra.mxu1 %v11102_v60 }
 0x424   : > { %8907 = vmatprep.subr.bf16.mxu1 %v11107_v41 }
 0x426   : > { %8441 = vmatpush1.bf16.msra.mxu0 %v11014_v61  ;;  %v11105_v61 = vld [vmem:[%s12396_s13 + $0x1a0] ss:$16 sps:$4 sm:$0xff]  }
 0x427   : > { %8451 = vmatprep.subr.bf16.mxu0 %v11020_v62  ;;  %8908 = vmatpush1.bf16.msra.mxu1 %v11105_v61  ;;  %v11110_v62 = vld [vmem:[%s12396_s13 + $0x1c4] ss:$16 sps:$4 sm:$0xff]   ;;  %v11268_v61 = vmov 1983009808  }
 0x428   : > { %8909 = vmatprep.subr.bf16.mxu1 %v11110_v62  ;;  %v8970_v62 = vunpack.c.l.s4 %v11268_v61 }
 0x429   : > { %8443 = vmatmul.mubr.bf16.vlgmr.msra.gmra.mrb[0].mxu0 %v13038_v1  ;;  %v11108_v1 = vld [vmem:[%s12396_s13 + $0x1c0] ss:$16 sps:$4 sm:$0xff]  }
 0x42a   : > { %8452 = vmatpush1.bf16.msra.mxu0 %v11018_v2  ;;  %8483 = vmatprep.mubr.bf16.mxu0 %v5243_v3 }
 0x42b   : > { %8453 = vmatprep.subr.bf16.mxu0 %v11023_v51  ;;  %8910 = vmatpush1.bf16.msra.mxu1 %v11108_v1  ;;  %v8971_v1 = vunpack.c.0.s8 %v8970_v62 }
 0x42e   : > { %8454 = vmatpush1.bf16.msra.mxu0 %v11021_v6  ;;  %v11113_v6 = vld [vmem:[%s12396_s13 + $0x1e4] ss:$16 sps:$4 sm:$0xff]  }
 0x42f   : > { %8455 = vmatprep.subr.bf16.mxu0 %v11026_v52  ;;  %8911 = vmatprep.subr.bf16.mxu1 %v11113_v6 }
 0x432   : > { %8456 = vmatpush1.bf16.msra.mxu0 %v11024_v7  ;;  %v11111_v7 = vld [vmem:[%s12396_s13 + $0x1e0] ss:$16 sps:$4 sm:$0xff]  }
 0x433   : > { %8457 = vmatprep.subr.bf16.mxu0 %v11029_v8  ;;  %8912 = vmatpush1.bf16.msra.mxu1 %v11111_v7  ;;  %v11116_v8 = vld [vmem:[%s12396_s13 + $0xc] ss:$16 sps:$4 sm:$0xff]  }
 0x434   : > { %8922 = vmatprep.subr.bf16.mxu1 %v11116_v8 }
 0x436   : > { %8458 = vmatpush1.bf16.msra.mxu0 %v11027_v30  ;;  %v5036_v30 = vsub.s32 0, %v12443_v46 }
 0x437   : > { %8459 = vmatprep.subr.bf16.mxu0 %v11032_v9  ;;  %v5032_v9 = vld [vmem:[%s4501_s8] sm:$0x3] }
 0x43a   : > { %8460 = vmatpush1.bf16.msra.mxu0 %v11030_v10  ;;  %v5040_v10 = vsub.s32 1, %v12443_v46 }
 0x43b   : > { %8461 = vmatprep.subr.bf16.mxu0 %v11035_v11  ;;  %v5037_v11 = vrot.slane %v5032_v9, %v5036_v30 }
 0x43e   : > { %8462 = vmatpush1.bf16.msra.mxu0 %v11033_v13  ;;  %v5041_v13 = vrot.slane %v5032_v9, %v5040_v10 }
 0x43f   : > { %8463 = vmatprep.subr.bf16.mxu0 %v11038_v14 }
 0x442   : > { %8464 = vmatpush1.bf16.msra.mxu0 %v11036_v16 }
 0x443   : > { %8465 = vmatprep.subr.bf16.mxu0 %v11041_v17 }
 0x446   : > { %8466 = vmatpush1.bf16.msra.mxu0 %v11039_v21 }
 0x447   : > { %8467 = vmatprep.subr.bf16.mxu0 %v11044_v23 }
 0x44a   : > { %8468 = vmatpush1.bf16.msra.mxu0 %v11042_v25 }
 0x44b   : > { %8469 = vmatprep.subr.bf16.mxu0 %v11047_v26 }
 0x44e   : > { %8470 = vmatpush1.bf16.msra.mxu0 %v11045_v43  ;;  %v11117_v43 = vld [vmem:[%s12396_s13 + $0x28] ss:$16 sps:$4 sm:$0xff]  }
 0x44f   : > { %8471 = vmatprep.subr.bf16.mxu0 %v11050_v28  ;;  %v11120_v28 = vld [vmem:[%s12396_s13 + $0x48] ss:$16 sps:$4 sm:$0xff]  }
 0x452   : > { %8472 = vmatpush1.bf16.msra.mxu0 %v11048_v58  ;;  %v11123_v58 = vld [vmem:[%s12396_s13 + $0x68] ss:$16 sps:$4 sm:$0xff]  }
 0x453   : > { %8473 = vmatprep.subr.bf16.mxu0 %v11053_v53  ;;  %v11126_v53 = vld [vmem:[%s12396_s13 + $0x88] ss:$16 sps:$4 sm:$0xff]  }
 0x456   : > { %8474 = vmatpush1.bf16.msra.mxu0 %v11051_v32  ;;  %v11129_v32 = vld [vmem:[%s12396_s13 + $0xa8] ss:$16 sps:$4 sm:$0xff]  }
 0x457   : > { %8475 = vmatprep.subr.bf16.mxu0 %v11056_v5  ;;  %v11132_v5 = vld [vmem:[%s12396_s13 + $0xc8] ss:$16 sps:$4 sm:$0xff]  }
 0x45a   : > { %8476 = vmatpush1.bf16.msra.mxu0 %v11054_v34  ;;  %v11135_v34 = vld [vmem:[%s12396_s13 + $0xe8] ss:$16 sps:$4 sm:$0xff]  }
 0x45b   : > { %8477 = vmatprep.subr.bf16.mxu0 %v11059_v36  ;;  %v11138_v36 = vld [vmem:[%s12396_s13 + $0x108] ss:$16 sps:$4 sm:$0xff]  }
 0x45e   : > { %8478 = vmatpush1.bf16.msra.mxu0 %v11057_v39  ;;  %v11141_v39 = vld [vmem:[%s12396_s13 + $0x128] ss:$16 sps:$4 sm:$0xff]  }
 0x45f   : > { %8479 = vmatprep.subr.bf16.mxu0 %v11062_v20  ;;  %v11144_v20 = vld [vmem:[%s12396_s13 + $0x148] ss:$16 sps:$4 sm:$0xff]  }
 0x462   : > { %8480 = vmatpush1.bf16.msra.mxu0 %v11060_v44  ;;  %v11147_v44 = vld [vmem:[%s12396_s13 + $0x168] ss:$16 sps:$4 sm:$0xff]  }
 0x463   : > { %8481 = vmatprep.subr.bf16.mxu0 %v11065_v45  ;;  %v11150_v45 = vld [vmem:[%s12396_s13 + $0x188] ss:$16 sps:$4 sm:$0xff]  }
 0x466   : > { %8482 = vmatpush1.bf16.msra.mxu0 %v11063_v48  ;;  %v11153_v48 = vld [vmem:[%s12396_s13 + $0x1a8] ss:$16 sps:$4 sm:$0xff]  }
 0x469   : > { %8484 = vmatmul.mubr.bf16.vlgmr.msra.gmra.mrb[0].mxu0 %v5241_v55  ;;  %v11161_v55 = vld [vmem:[%s12396_s13 + $0x1ec] ss:$16 sps:$4 sm:$0xff]  }
 0x4bb   : > { %v8116_v2 = vpop.f32.mrb[0].mxu1 }
 0x4bc   : > { %v8118_v3 = vpop.f32.mrb[1].mxu1  ;;  %v10184_v14 = vadd.f32 %v8116_v2, %v5037_v11  ;;  %v13156_v2 = vsub.s32 %v8971_v1, %v12443_v46  ;;  %v8494_v11 = vld [vmem:[#allocation2] sm:$0xff] }
 0x4bd   : > { %v8120_v51 = vpop.f32.mrb[2].mxu1  ;;  %v10186_v16 = vadd.f32 %v8118_v3, %v5041_v13 }
 0x4be   : > { %v8121_v52 = vpop.f32.mrb[3].mxu1 }
 0x53c   : > { %v8485_v17 = vpop.f32.mrb[0].mxu0 }
 0x53d   : > { %v10185_v18 = vadd.f32 %v10184_v14, %v8485_v17  ;;  %v8487_v19 = vpop.f32.mrb[1].mxu0  ;;  %v11164_v17 = vld [vmem:[%s13321_s5 + $0xc0] sm:$0xff] (!%p10100_p12)  }
 0x53e   : > { %v10187_v0 = vadd.f32 %v10186_v16, %v8487_v19  ;;  %v8489_v21 = vpop.f32.mrb[2].mxu0  ;;  %v11163_v16 = vld [vmem:[%s13321_s5 + $0x40] sm:$0xff] (!%p10100_p12)  }
 0x53f   : > { %v8492_v22 = vmax.f32 %v10185_v18, 0.0  ;;  %v8490_v23 = vpop.f32.mrb[3].mxu0  ;;  %10140 = vmatprep.subr.bf16.mxu0 (!%p10100_p12), %v11163_v16  ;;  %v11165_v18 = vld [vmem:[%s13321_s5] sm:$0xff] (!%p10100_p12)   ;;  %v11168_v21 = vld [vmem:[%s13321_s5 + $0xc8] sm:$0xff] (!%p10100_p12)  }
 0x540   : > { %v8493_v24 = vmax.f32 %v10187_v0, 0.0  ;;  %v11166_v19 = vld [vmem:[%s13321_s5 + $0x80] sm:$0xff] (!%p10100_p12)   ;;  %10141 = vmatpush3.bf16.msra.mxu0 (!%p10100_p12), %v11165_v18  ;;  %v11167_v0 = vld [vmem:[%s13321_s5 + $0x48] sm:$0xff] (!%p10100_p12)  }
 0x541   : > { %v13121_v26 = vpack.c.bf16 %v8492_v22, %v8492_v22  ;;  %10142 = vmatprep.subr.bf16.mxu0 (!%p10100_p12), %v11167_v0  ;;  %v11169_v22 = vld [vmem:[%s13321_s5 + $0x8] sm:$0xff] (!%p10100_p12)  }
 0x542   : > { %v8496_v25 = vpack.c.bf16 %v8493_v24, %v8493_v24  ;;  %v11170_v23 = vld [vmem:[%s13321_s5 + $0x88] sm:$0xff] (!%p10100_p12)   ;;  %v11171_v24 = vld [vmem:[%s13321_s5 + $0x50] sm:$0xff] (!%p10100_p12)  }
 0x544   : > { %8913 = vmatprep.mubr.bf16.mxu1 %v8496_v25  ;;  %10143 = vmatpush3.bf16.msra.mxu0 (!%p10100_p12), %v11169_v22 }
 0x545   : > { %8914 = vmatmul.mubr.bf16.vlgmr.msra.gmra.mrb[4].mxu1 %v13121_v26  ;;  %10144 = vmatprep.subr.bf16.mxu0 (!%p10100_p12), %v11171_v24 }
 0x546   : > { %8923 = vmatpush1.bf16.msra.mxu1 %v11114_v63  ;;  %8954 = vmatprep.mubr.bf16.mxu1 %v8496_v25  ;;  %v11172_v25 = vld [vmem:[%s13321_s5 + $0xd0] sm:$0xff] (!%p10100_p12)  }
 0x547   : > { %8924 = vmatprep.subr.bf16.mxu1 %v11119_v27  ;;  %v11173_v63 = vld [vmem:[%s13321_s5 + $0x10] sm:$0xff] (!%p10100_p12)   ;;  %v11175_v27 = vld [vmem:[%s13321_s5 + $0x58] sm:$0xff] (!%p10100_p12)  }
 0x548   : > { %10145 = vmatpush3.bf16.msra.mxu0 (!%p10100_p12), %v11173_v63 }
 0x549   : > { %10146 = vmatprep.subr.bf16.mxu0 (!%p10100_p12), %v11175_v27 }
 0x54a   : > { %8925 = vmatpush1.bf16.msra.mxu1 %v11117_v43  ;;  %v11176_v43 = vld [vmem:[%s13321_s5 + $0xd8] sm:$0xff] (!%p10100_p12)  }
 0x54b   : > { %8926 = vmatprep.subr.bf16.mxu1 %v11122_v12  ;;  %v11177_v12 = vld [vmem:[%s13321_s5 + $0x18] sm:$0xff] (!%p10100_p12)  }
 0x54c   : > { %10147 = vmatpush3.bf16.msra.mxu0 (!%p10100_p12), %v11177_v12 }
 0x54e   : > { %8927 = vmatpush1.bf16.msra.mxu1 %v11120_v28  ;;  %v11178_v28 = vld [vmem:[%s13321_s5 + $0x98] sm:$0xff] (!%p10100_p12)  }
 0x54f   : > { %8928 = vmatprep.subr.bf16.mxu1 %v11125_v29  ;;  %v11179_v29 = vld [vmem:[%s13321_s5 + $0x60] sm:$0xff] (!%p10100_p12)  }
 0x550   : > { %10148 = vmatprep.subr.bf16.mxu0 (!%p10100_p12), %v11179_v29 }
 0x552   : > { %8929 = vmatpush1.bf16.msra.mxu1 %v11123_v58  ;;  %v11180_v58 = vld [vmem:[%s13321_s5 + $0xe0] sm:$0xff] (!%p10100_p12)  }
 0x553   : > { %8930 = vmatprep.subr.bf16.mxu1 %v11128_v31  ;;  %v11181_v31 = vld [vmem:[%s13321_s5 + $0x20] sm:$0xff] (!%p10100_p12)  }
 0x554   : > { %10149 = vmatpush3.bf16.msra.mxu0 (!%p10100_p12), %v11181_v31 }
 0x556   : > { %8931 = vmatpush1.bf16.msra.mxu1 %v11126_v53  ;;  %v11182_v53 = vld [vmem:[%s13321_s5 + $0xa0] sm:$0xff] (!%p10100_p12)  }
 0x557   : > { %8932 = vmatprep.subr.bf16.mxu1 %v11131_v4  ;;  %v11183_v4 = vld [vmem:[%s13321_s5 + $0x68] sm:$0xff] (!%p10100_p12)  }
 0x558   : > { %10150 = vmatprep.subr.bf16.mxu0 (!%p10100_p12), %v11183_v4 }
 0x55a   : > { %8933 = vmatpush1.bf16.msra.mxu1 %v11129_v32  ;;  %v11184_v32 = vld [vmem:[%s13321_s5 + $0xe8] sm:$0xff] (!%p10100_p12)  }
 0x55b   : > { %8934 = vmatprep.subr.bf16.mxu1 %v11134_v33  ;;  %v11185_v33 = vld [vmem:[%s13321_s5 + $0x28] sm:$0xff] (!%p10100_p12)  }
 0x55c   : > { %10151 = vmatpush3.bf16.msra.mxu0 (!%p10100_p12), %v11185_v33 }
 0x55e   : > { %8935 = vmatpush1.bf16.msra.mxu1 %v11132_v5  ;;  %v11186_v5 = vld [vmem:[%s13321_s5 + $0xa8] sm:$0xff] (!%p10100_p12)  }
 0x55f   : > { %8936 = vmatprep.subr.bf16.mxu1 %v11137_v15  ;;  %v11187_v15 = vld [vmem:[%s13321_s5 + $0x70] sm:$0xff] (!%p10100_p12)  }
 0x560   : > { %10152 = vmatprep.subr.bf16.mxu0 (!%p10100_p12), %v11187_v15 }
 0x562   : > { %8937 = vmatpush1.bf16.msra.mxu1 %v11135_v34  ;;  %v11188_v34 = vld [vmem:[%s13321_s5 + $0xf0] sm:$0xff] (!%p10100_p12)  }
 0x563   : > { %8938 = vmatprep.subr.bf16.mxu1 %v11140_v35  ;;  %v11189_v35 = vld [vmem:[%s13321_s5 + $0x30] sm:$0xff] (!%p10100_p12)  }
 0x564   : > { %10153 = vmatpush3.bf16.msra.mxu0 (!%p10100_p12), %v11189_v35 }
 0x566   : > { %8939 = vmatpush1.bf16.msra.mxu1 %v11138_v36  ;;  %v11190_v36 = vld [vmem:[%s13321_s5 + $0xb0] sm:$0xff] (!%p10100_p12)  }
 0x567   : > { %8940 = vmatprep.subr.bf16.mxu1 %v11143_v38  ;;  %v11191_v38 = vld [vmem:[%s13321_s5 + $0x78] sm:$0xff] (!%p10100_p12)  }
 0x568   : > { %10154 = vmatprep.subr.bf16.mxu0 (!%p10100_p12), %v11191_v38 }
 0x56a   : > { %8941 = vmatpush1.bf16.msra.mxu1 %v11141_v39  ;;  %v9004_v39 = vsub.s32 (!%p10100_p12), 2, %v12443_v46 }
 0x56b   : > { %8942 = vmatprep.subr.bf16.mxu1 %v11146_v40  ;;  %v11192_v40 = vld [vmem:[%s13321_s5 + $0xf8] sm:$0xff] (!%p10100_p12)  }
 0x56e   : > { %8943 = vmatpush1.bf16.msra.mxu1 %v11144_v20  ;;  %v9008_v20 = vsub.s32 (!%p10100_p12), 3, %v12443_v46 }
 0x56f   : > { %8944 = vmatprep.subr.bf16.mxu1 %v11149_v42  ;;  %v11193_v42 = vld [vmem:[%s13321_s5 + $0x38] sm:$0xff] (!%p10100_p12)  }
 0x570   : > { %10155 = vmatpush3.bf16.msra.mxu0 (!%p10100_p12), %v11193_v42 }
 0x572   : > { %8945 = vmatpush1.bf16.msra.mxu1 %v11147_v44  ;;  %v11194_v44 = vld [vmem:[%s13321_s5 + $0xb8] sm:$0xff] (!%p10100_p12)  }
 0x573   : > { %8946 = vmatprep.subr.bf16.mxu1 %v11152_v49  ;;  %v8992_v49 = vld [vmem:[%s13320_s4] sm:$0xf] (!%p10100_p12) }
 0x576   : > { %8947 = vmatpush1.bf16.msra.mxu1 %v11150_v45  ;;  %v8997_v45 = vrot.slane (!%p10100_p12), %v8992_v49, %v5036_v30 }
 0x577   : > { %8948 = vmatprep.subr.bf16.mxu1 %v11155_v47  ;;  %v9001_v47 = vrot.slane (!%p10100_p12), %v8992_v49, %v5040_v10 }
 0x57a   : > { %8949 = vmatpush1.bf16.msra.mxu1 %v11153_v48  ;;  %v9005_v48 = vrot.slane (!%p10100_p12), %v8992_v49, %v9004_v39 }
 0x57b   : > { %8950 = vmatprep.subr.bf16.mxu1 %v11158_v50  ;;  %v9009_v50 = vrot.slane (!%p10100_p12), %v8992_v49, %v9008_v20 }
 0x57e   : > { %8951 = vmatpush1.bf16.msra.mxu1 %v11156_v54  ;;  %v9010_v54 = vcombine.low (!%p10100_p12), %v8997_v45, %v9001_v47 }
 0x57f   : > { %8952 = vmatprep.subr.bf16.mxu1 %v11161_v55  ;;  %v9011_v55 = vcombine.low (!%p10100_p12), %v9005_v48, %v9009_v50 }
 0x582   : > { %8953 = vmatpush1.bf16.msra.mxu1 %v11159_v56  ;;  %v9018_v56 = vrot.slane (!%p10100_p12), %v9010_v54, %v13156_v2 }
 0x583   : > { %10162 = vmatprep.subr.bf16.mxu1 (!%p10100_p12), %v11164_v17 }
 0x585   : > { %8955 = vmatmul.mubr.bf16.vlgmr.msra.gmra.mrb[8].mxu1 %v13121_v26  ;;  %v11174_v26 = vld [vmem:[%s13321_s5 + $0x90] sm:$0xff] (!%p10100_p12)  }
 0x586   : > { %10163 = vmatpush3.bf16.msra.mxu1 (!%p10100_p12), %v11166_v19 }
 0x587   : > { %10164 = vmatprep.subr.bf16.mxu1 (!%p10100_p12), %v11168_v21 }
 0x58a   : > { %10165 = vmatpush3.bf16.msra.mxu1 (!%p10100_p12), %v11170_v23 }
 0x58b   : > { %10166 = vmatprep.subr.bf16.mxu1 (!%p10100_p12), %v11172_v25 }
 0x58e   : > { %10167 = vmatpush3.bf16.msra.mxu1 (!%p10100_p12), %v11174_v26 }
 0x58f   : > { %10168 = vmatprep.subr.bf16.mxu1 (!%p10100_p12), %v11176_v43 }
 0x592   : > { %10169 = vmatpush3.bf16.msra.mxu1 (!%p10100_p12), %v11178_v28 }
 0x593   : > { %10170 = vmatprep.subr.bf16.mxu1 (!%p10100_p12), %v11180_v58 }
 0x596   : > { %10171 = vmatpush3.bf16.msra.mxu1 (!%p10100_p12), %v11182_v53 }
 0x597   : > { %10172 = vmatprep.subr.bf16.mxu1 (!%p10100_p12), %v11184_v32 }
 0x59a   : > { %10173 = vmatpush3.bf16.msra.mxu1 (!%p10100_p12), %v11186_v5 }
 0x59b   : > { %10174 = vmatprep.subr.bf16.mxu1 (!%p10100_p12), %v11188_v34 }
 0x59e   : > { %10175 = vmatpush3.bf16.msra.mxu1 (!%p10100_p12), %v11190_v36 }
 0x59f   : > { %10176 = vmatprep.subr.bf16.mxu1 (!%p10100_p12), %v11192_v40 }
 0x5a2   : > { %10177 = vmatpush3.bf16.msra.mxu1 (!%p10100_p12), %v11194_v44 }
 0x618   : > { %v8915_v57 = vpop.f32.mrb[4].mxu1 }
 0x619   : > { %v8917_v37 = vpop.f32.mrb[5].mxu1 }
 0x61a   : > { %v8967_v59 = vcombine.low %v8915_v57, %v8917_v37  ;;  %v8919_v60 = vpop.f32.mrb[6].mxu1  ;;  %v9025_v57 = vrot.slane (!%p10100_p12), %v9011_v55, %v13156_v2 }
 0x61b   : > { %v8920_v41 = vpop.f32.mrb[7].mxu1 }
 0x61c   : > { %v8975_v8 = vrot.slane %v8967_v59, %v13156_v2  ;;  %v9026_v59 = vcombine.low (!%p10100_p12), %v9018_v56, %v9025_v57 }
 0x658   : > { %v8956_v3 = vpop.f32.mrb[8].mxu1 }
 0x659   : > { %v8958_v51 = vpop.f32.mrb[9].mxu1 }
 0x65a   : > { %v8968_v6 = vcombine.low %v8956_v3, %v8958_v51  ;;  %v8960_v52 = vpop.f32.mrb[10].mxu1 }
 0x65b   : > { %v8961_v7 = vpop.f32.mrb[11].mxu1 }
 0x65c   : > { %v8982_v9 = vrot.slane %v8968_v6, %v13156_v2  ;;  %8990 = sbr.rel (%p10100_p12) target bundleno = 1873 (0x751), region = 108  ;;  %v10101_v7 = vld [vmem:[%s13322_s6] ss:$0 sm:$0xff] (!%p10100_p12) }
 0x65e   : > { %v8983_v13 = vcombine.low %v8975_v8, %v8982_v9 }
 0x660   : > { %v8985_v14 = vadd.f32 %v8983_v13, %v8494_v11 }
 0x662   : > { %8986 = vst [vmem:[#allocation2] sm:$0xff] %v8985_v14 }
 0x669   : > { %v8991_v37 = vld [vmem:[#allocation2] sm:$0xff] }
 0x66a   : > { %v9028_v60 = vadd.f32 %v9026_v59, %v8991_v37 }
 0x66c   : > { %v9029_v41 = vmax.f32 %v9028_v60, 0.0 }
 0x66e   : > { %v9038_v61 = vrot.slane %v9029_v41, %v13156_v2  ;;  %v9031_v62 = vcombine.high %v9029_v41, %v9029_v41 }
 0x670   : > { %v9046_v1 = vcombine.high %v9038_v61, %v9038_v61  ;;  %v9045_v30 = vrot.slane %v9031_v62, %v13156_v2  ;;  %v9052_v46 = vpack.c.bf16 %v9038_v61, %v9038_v61 }
 0x672   : > { %v9053_v10 = vpack.c.bf16 %v9046_v1, %v9046_v1  ;;  %v9047_v3 = vcombine.high %v9045_v30, %v9045_v30  ;;  %v9054_v51 = vpack.c.bf16 %v9045_v30, %v9045_v30 }
 0x674   : > { %9351 = vmatprep.mubr.bf16.mxu0 %v9053_v10  ;;  %v9055_v6 = vpack.c.bf16 %v9047_v3, %v9047_v3 }
 0x675   : > { %9352 = vmatmul.mubr.bf16.vlgmr.msra.gmra.mrb[0].mxu0 %v9052_v46 }
 0x676   : > { %9391 = vmatprep.mubr.bf16.mxu1 %v9055_v6 }
 0x677   : > { %9392 = vmatmul.mubr.bf16.vlgmr.msra.gmra.mrb[0].mxu1 %v9054_v51 }
 0x748   : > { %v10156_v52 = vpop.f32.mrb[0].mxu0 }
 0x749   : > { %v10157_v8 = vpop.f32.mrb[1].mxu0 }
 0x74a   : > { %v10178_v9 = vpop.f32.mrb[0].mxu1  ;;  %v10158_v11 = vadd.f32 %v10157_v8, %v10156_v52  ;;  %v10159_v13 = vpop.f32.mrb[2].mxu0 }
 0x74b   : > { %v10179_v14 = vpop.f32.mrb[1].mxu1  ;;  %v10160_v2 = vpop.f32.mrb[3].mxu0 }
 0x74c   : > { %v9354_v16 = vadd.f32 %v10158_v11, %v10101_v7  ;;  %v10180_v17 = vadd.f32 %v10179_v14, %v10178_v9  ;;  %v10181_v18 = vpop.f32.mrb[2].mxu1 }
 0x74d   : > { %v10182_v19 = vpop.f32.mrb[3].mxu1 }
 0x74e   : > { %v9394_v0 = vadd.f32 %v10180_v17, %v9354_v16 }
 0x750   : > { %9399 = vst [vmem:[#allocation4] sm:$0x3] %v9394_v0 }
 0x751 PF: > { %p13275_p13 = scmp.eq.s32.totalorder %s9510_s29, 3  ;;  %s11269_s8 = smov [#allocation4]  }
 0x752   : > { %s9409_s13 = sshll.u32 %s11269_s8, 4  ;;  %s9410_s13 = int_to_ptr.vmem [resolvable:$true] %s9409_s13 }
 0x753   : > { %s11196_s24 = scalar_lea.vmem %s9410_s13, 32  ;;  %p11203_p3 = scmp.lt.s32.totalorder %s9410_s13, %s9410_s13 }
 0x754   : > { %p11197_p0 = scmp.ne.s32.totalorder %s9410_s13, %s11196_s24  ;;  %p11204_p4 = scmp.lt.s32.totalorder %s11196_s24, %s11196_s24 }
 0x756   : > { %p11198_p1 = pnand %p11197_p0, %p13275_p13  ;;  %p11205_p5 = por %p11204_p4, %p11203_p3 }
 0x758   : > { %p11199_p2 = pneg %p11198_p1 }
 0x75a   : > { %p11206_p6 = pnand %p11205_p5, %p11199_p2 }
 0x75c   : > { %11209 = shalt.err (!%p11206_p6)
}
 0x75d   : > { %s11210_s29 = scalar_lea.hbm %s13323_s7, 32 }
 0x75e   : > { %p11211_p7 = scmp.ne.s32.totalorder %s13323_s7, %s11210_s29  ;;  %p11216_p10 = scmp.lt.u32.totalorder %s11210_s29, %s13323_s7 }
 0x760   : > { %p11212_p8 = pnand %p11211_p7, %p13275_p13 }
 0x762   : > { %p11213_p9 = pneg %p11212_p8 }
 0x764   : > { %p11218_p11 = pnand %p11216_p10, %p11213_p9 }
 0x766   : > { %11221 = shalt.err (!%p11218_p11)
}
 0x767   : > { %10245 = dma.vmem_to_hbm [thread:$0]  (%p13275_p13), %s9410_s13, 32, %s13323_s7, [#allocation5]  }
 0x768   : > { %11243 = dma.done.wait (%p13275_p13), [#allocation5], 32  }
 0x769   : > { %11245 = vsyncadd (%p13275_p13), [#allocation5], 4294967264 }
 0x76a PF: > { %s18_s28 = sadd.s32 1, %s11264_s28   ;;  %s13325_s24 = smov %s11252_s25 }
 0x76b   : > { %p15_p12 = scmp.ge.s32.totalorder %s18_s28, 6   ;;  %s13326_s25 = smov %s11346_s10 }
 0x76c   : > { %s13327_s26 = smov %s11260_s27  ;;  %s13328_s27 = smov %s13330_s30 }
 0x76d   :  { %17 = sbr.rel (!%p15_p12) target bundleno = 3 (0x3), region = 156 }
 0x774   :  { %9422 = vsyncpa [#allocation5], 1 }
 0x775   :  { %9424 = vsyncpa [#allocation5 + $0x1], 1 }

</bundles_post_ra>
